<compile_context>
chip_gen: v6e
topology: v6e:2x2x1
jax: 0.10.0
libtpu: 0.0.40
codegen_flags: <defaults>
</compile_context>

<pallas_src>
import functools

import jax
import jax.numpy as jnp
from jax import lax
from jax.experimental import pallas as pl
from jax.experimental.pallas import tpu as pltpu

# ----------------------------- model dimensions -----------------------------
INPUT_DIM = 128              # Seq_GRU input_dim
HIDDEN_DIM = 128             # Seq_GRU hidden_dim
X2_FEAT = 4352 - HIDDEN_DIM  # 4224, so fused feature = 4352
D1, D2, D3 = 256, 64, 5      # classifier: 4352 -> 256 -> 64 -> 5
M1, M2 = 3.0, 1.0            # Pusion(m1=3, m2=1)
OUT_PAD = 128                # lane-dense padded output width (sliced to D3 outside)

TIME_BLOCK = 128             # target GRU time steps per grid block
MAX_GRU_ROWS = 4096          # cap on rows per GRU block (keeps gi scratch VMEM bounded)
HEAD_TILE_M = 512            # head row-tile target (safe on v7x's 64 MiB VMEM; fine on v5e/v6e)


def _round_up(x, m):
    return ((x + m - 1) // m) * m


def _cdiv(a, b):
    return (a + b - 1) // b


# =============================== GRU kernel =================================
def gru_kernel(x_ref, wih_ref, whh_ref, bih_ref, bhhn_ref, out_ref, gi_ref, h_ref,
               *, time_block, batch_pad, unroll):
    """One grid step == one block of `time_block` time steps.

    x_ref/out_ref are time-major 2D slabs of shape (time_block*batch_pad, feat):
    rows [t*batch_pad, (t+1)*batch_pad) belong to time step t of this block.
    h_ref (VMEM scratch) carries the hidden state across grid blocks.
    b_ih already has the r/z chunks of b_hh folded in; only the n-chunk of b_hh remains.
    """
    H = HIDDEN_DIM

    @pl.when(pl.program_id(0) == 0)
    def _():
        h_ref[...] = jnp.zeros_like(h_ref)          # h0 = zeros

    # Hoisted input-to-hidden projection: ONE big MXU matmul for the whole time block.
    gi_ref[...] = (
        jnp.dot(x_ref[...], wih_ref[...], preferred_element_type=jnp.float32)
        + bih_ref[...]
    )

    # Hoist loop invariants (weights / broadcast n-bias) out of the recurrence.
    w_hh = whh_ref[...]
    b_hhn = jnp.broadcast_to(bhhn_ref[...], (batch_pad, H))

    def step(t, h):
        off = pl.multiple_of(t * batch_pad, 8)       # aligned sublane window
        gi = gi_ref[pl.ds(off, batch_pad), :]        # (B_pad, 3H)
        gh = jnp.dot(h, w_hh, preferred_element_type=jnp.float32)    # (B_pad, 3H)
        # one EUP call for both r and z over the concatenated 2H slab
        rz = jax.nn.sigmoid(gi[:, :2 * H] + gh[:, :2 * H])
        r = rz[:, :H]
        z = rz[:, H:]
        n = jnp.tanh(gi[:, 2 * H:] + r * (gh[:, 2 * H:] + b_hhn))
        h_new = n + z * (h - n)                      # == (1-z)*n + z*h, one fewer op
        out_ref[pl.ds(off, batch_pad), :] = h_new.astype(out_ref.dtype)
        return h_new

    h_ref[...] = lax.fori_loop(0, time_block, step, h_ref[...], unroll=unroll)


def seq_gru(x_btI, w_ih, w_hh, b_ih, b_hh):
    """x_btI: (B, T, I) batch_first (PyTorch convention). Returns (B, T, H)."""
    B, T, I = x_btI.shape
    H = HIDDEN_DIM

    B_pad = _round_up(B, 8)                          # aligned per-step sublane slabs

    # Balanced time blocks: at most (n_blocks-1) padded tail steps get executed.
    tb_cap = max(1, min(TIME_BLOCK, MAX_GRU_ROWS // B_pad))
    n_blocks = max(1, _cdiv(T, tb_cap))
    tb = _cdiv(T, n_blocks)
    T_pad = n_blocks * tb
    rows_per_block = tb * B_pad
    unroll = tb if tb <= 8 else 8

    # Fold the r/z chunks of b_hh into b_ih (they always add); keep only the n chunk.
    b_ih_eff = b_ih.at[:, :2 * H].add(b_hh[:, :2 * H])
    b_hhn = b_hh[:, 2 * H:]

    # Time-major, zero-padded, flattened to 2D (T_pad*B_pad, I).  Padded rows produce
    # garbage hidden states that are sliced off below; they never affect real rows.
    x = jnp.transpose(x_btI, (1, 0, 2))                              # (T, B, I)
    x = jnp.pad(x, ((0, T_pad - T), (0, B_pad - B), (0, 0)))
    x2d = x.reshape(T_pad * B_pad, I)

    kernel = functools.partial(gru_kernel, time_block=tb, batch_pad=B_pad, unroll=unroll)

    grid_spec = pltpu.PrefetchScalarGridSpec(
        num_scalar_prefetch=0,
        grid=(n_blocks,),
        in_specs=[
            pl.BlockSpec((rows_per_block, I), lambda i: (i, 0)),   # x time-block slab
            pl.BlockSpec((I, 3 * H), lambda i: (0, 0)),            # W_ih (resident)
            pl.BlockSpec((H, 3 * H), lambda i: (0, 0)),            # W_hh (resident)
            pl.BlockSpec((1, 3 * H), lambda i: (0, 0)),            # b_ih (+ folded b_hh r/z)
            pl.BlockSpec((1, H), lambda i: (0, 0)),                # b_hh n-chunk
        ],
        out_specs=pl.BlockSpec((rows_per_block, H), lambda i: (i, 0)),
        scratch_shapes=[
            pltpu.VMEM((rows_per_block, 3 * H), jnp.float32),      # gi for this block
            pltpu.VMEM((B_pad, H), jnp.float32),                   # carried hidden state
        ],
    )

    out2d = pl.pallas_call(
        kernel,
        out_shape=jax.ShapeDtypeStruct((T_pad * B_pad, H), jnp.float32),
        grid_spec=grid_spec,
        compiler_params=pltpu.CompilerParams(
            dimension_semantics=("arbitrary",)),     # sequential: h is carried
    )(x2d, w_ih, w_hh, b_ih_eff, b_hhn)

    out = out2d.reshape(T_pad, B_pad, H)[:T, :B]     # drop padding
    return jnp.transpose(out, (1, 0, 2))             # (B, T, H)


# ======================= fusion + collapsed head kernel =====================
def head_kernel(x1_ref, x2_ref, wa_ref, wb_ref, b_ref, out_ref):
    """Pusion(weighted concat) + collapsed Linear(4352,256)->(256,64)->(64,5).

    The activation-free chain is pre-collapsed host-side:
      Wa = (m1*W1[:128]) @ W2 @ W3_pad,  Wb = (m2*W1[128:]) @ W2 @ W3_pad,
      b  = b1@W2@W3_pad + b2@W3_pad + b3_pad,
    so the kernel is a single row-tiled y = x1@Wa + x2@Wb + b with a lane-dense
    (128-wide) output that is sliced to 5 classes outside.
    """
    y = (jnp.dot(x1_ref[...], wa_ref[...], preferred_element_type=jnp.float32)
         + jnp.dot(x2_ref[...], wb_ref[...], preferred_element_type=jnp.float32)
         + b_ref[...])
    out_ref[...] = y.astype(out_ref.dtype)


def classifier_head(x1_flat, x2_flat, wa, wb, bf):
    BT = x1_flat.shape[0]

    # Pick a row tile that (a) minimizes padding and (b) yields >= 2 grid steps when
    # there is enough work, so v7x's 2 TensorCores both participate ("parallel").
    n_tiles = max(1, _cdiv(BT, HEAD_TILE_M))
    if BT >= 16:
        n_tiles = max(n_tiles, 2)
    tile_m = _round_up(_cdiv(BT, n_tiles), 8)
    BT_pad = _round_up(BT, tile_m)
    if BT_pad != BT:
        x1_flat = jnp.pad(x1_flat, ((0, BT_pad - BT), (0, 0)))
        x2_flat = jnp.pad(x2_flat, ((0, BT_pad - BT), (0, 0)))

    grid_spec = pltpu.PrefetchScalarGridSpec(
        num_scalar_prefetch=0,
        grid=(BT_pad // tile_m,),
        in_specs=[
            pl.BlockSpec((tile_m, HIDDEN_DIM), lambda i: (i, 0)),    # x1 row tile
            pl.BlockSpec((tile_m, X2_FEAT), lambda i: (i, 0)),       # x2 row tile (streamed)
            pl.BlockSpec((HIDDEN_DIM, OUT_PAD), lambda i: (0, 0)),   # Wa collapsed (resident)
            pl.BlockSpec((X2_FEAT, OUT_PAD), lambda i: (0, 0)),      # Wb collapsed (resident)
            pl.BlockSpec((1, OUT_PAD), lambda i: (0, 0)),            # collapsed bias
        ],
        out_specs=pl.BlockSpec((tile_m, OUT_PAD), lambda i: (i, 0)),
    )

    y = pl.pallas_call(
        head_kernel,
        out_shape=jax.ShapeDtypeStruct((BT_pad, OUT_PAD), jnp.float32),
        grid_spec=grid_spec,
        compiler_params=pltpu.CompilerParams(
            dimension_semantics=("parallel",),        # shard rows across TCs (v7x)
            vmem_limit_bytes=48 * 1024 * 1024),
    )(x1_flat, x2_flat, wa, wb, bf)

    return y[:BT, :D3]


# ============================= full forward =================================
@functools.partial(jax.jit, static_argnames=("batch_size", "seq_len"))
def classifier_forward(x1, x2, params, *, batch_size, seq_len):
    # Seq_GRU
    g = seq_gru(x1, params["w_ih"], params["w_hh"], params["b_ih"], params["b_hh"])
    # reshapes as in the PyTorch forward
    g = g.reshape(batch_size, seq_len, -1)                       # (B, T, 128)
    x2r = x2.reshape(batch_size, seq_len, -1)                    # (B, T, 4224)

    # Collapse the activation-free linear chain and fold Pusion m1/m2 into W1's row blocks.
    w23 = params["w2"] @ params["w3"]                            # (256, 5)
    wa = (M1 * params["w1a"]) @ w23                              # (128, 5)
    wb = (M2 * params["w1b"]) @ w23                              # (4224, 5)
    bf = params["b1"] @ w23 + params["b2"] @ params["w3"] + params["b3"]   # (1, 5)
    # lane-dense padding (sliced back to D3 after the kernel)
    wa = jnp.pad(wa, ((0, 0), (0, OUT_PAD - D3)))
    wb = jnp.pad(wb, ((0, 0), (0, OUT_PAD - D3)))
    bf = jnp.pad(bf, ((0, 0), (0, OUT_PAD - D3)))

    y_flat = classifier_head(
        g.reshape(batch_size * seq_len, HIDDEN_DIM),
        x2r.reshape(batch_size * seq_len, X2_FEAT),
        wa, wb, bf)
    return y_flat.reshape(batch_size, seq_len, D3)               # (B, T, 5)


# ============================ pure-JAX reference ============================
def reference_forward(x1, x2, params, batch_size, seq_len):
    def step(h, x_t):
        gi = x_t @ params["w_ih"] + params["b_ih"][0]
        gh = h @ params["w_hh"] + params["b_hh"][0]
        H = HIDDEN_DIM
        r = jax.nn.sigmoid(gi[:, :H] + gh[:, :H])
        z = jax.nn.sigmoid(gi[:, H:2 * H] + gh[:, H:2 * H])
        n = jnp.tanh(gi[:, 2 * H:] + r * gh[:, 2 * H:])
        h_new = (1 - z) * n + z * h
        return h_new, h_new

    h0 = jnp.zeros((batch_size, HIDDEN_DIM), jnp.float32)
    _, out = lax.scan(step, h0, jnp.transpose(x1, (1, 0, 2)))
    g = jnp.transpose(out, (1, 0, 2)).reshape(batch_size, seq_len, -1)
    x2r = x2.reshape(batch_size, seq_len, -1)
    fused = jnp.concatenate([M1 * g, M2 * x2r], axis=-1)         # Pusion approximation
    w1 = jnp.concatenate([params["w1a"], params["w1b"]], axis=0)
    h1 = fused @ w1 + params["b1"][0]
    h2 = h1 @ params["w2"] + params["b2"][0]
    return h2 @ params["w3"] + params["b3"][0]


# ================================== main ====================================
def init_params(key):
    ks = jax.random.split(key, 12)

    def u(k, shape, fan_in):
        bound = 1.0 / jnp.sqrt(fan_in)
        return jax.random.uniform(k, shape, jnp.float32, -bound, bound)

    H, I = HIDDEN_DIM, INPUT_DIM
    return {
        # GRU (stored transposed so the kernel does x @ W)
        "w_ih": u(ks[0], (I, 3 * H), H),
        "w_hh": u(ks[1], (H, 3 * H), H),
        "b_ih": u(ks[2], (1, 3 * H), H),
        "b_hh": u(ks[3], (1, 3 * H), H),
        # classifier (W1 split into the x1 / x2 row blocks)
        "w1a": u(ks[4], (HIDDEN_DIM, D1), 4352),
        "w1b": u(ks[5], (X2_FEAT, D1), 4352),
        "b1":  u(ks[6], (1, D1), 4352),
        "w2":  u(ks[7], (D1, D2), D1),
        "b2":  u(ks[8], (1, D2), D1),
        "w3":  u(ks[9], (D2, D3), D2),
        "b3":  u(ks[10], (1, D3), D2),
    }


if __name__ == "__main__":
    B, T = 2, 4                                   # args.batch_size, args.seq_len (small)
    key = jax.random.PRNGKey(0)
    k1, k2, k3 = jax.random.split(key, 3)

    x1 = jax.random.normal(k1, (B, T, INPUT_DIM), jnp.float32)   # GRU input (batch_first)
    x2 = jax.random.normal(k2, (B, T, X2_FEAT), jnp.float32)     # second modality
    params = init_params(k3)

    out = classifier_forward(x1, x2, params, batch_size=B, seq_len=T)
    out = jax.block_until_ready(out)
    assert out.shape == (B, T, D3), out.shape

    ref = reference_forward(x1, x2, params, B, T)
    assert jnp.allclose(out, ref, atol=1e-3, rtol=1e-3), float(jnp.max(jnp.abs(out - ref)))

    print("KERNEL_OK")
</pallas_src>

<mosaic_0001>
module attributes {stable_mosaic.version = 11 : i64} {
  func.func @gru_kernel(%arg0: i32, %arg1: memref<32x128xf32, #tpu.memory_space<vmem>>, %arg2: memref<128x384xf32, #tpu.memory_space<vmem>>, %arg3: memref<128x384xf32, #tpu.memory_space<vmem>>, %arg4: memref<1x384xf32, #tpu.memory_space<vmem>>, %arg5: memref<1x128xf32, #tpu.memory_space<vmem>>, %arg6: memref<32x128xf32, #tpu.memory_space<vmem>>, %arg7: memref<32x384xf32, #tpu.memory_space<vmem>>, %arg8: memref<8x128xf32, #tpu.memory_space<vmem>>) attributes {dimension_semantics = [#tpu.dimension_semantics<arbitrary>], iteration_bounds = array<i64: 1>, scalar_prefetch = 0 : i64, scratch_operands = 2 : i64, tpu.core_type = #tpu.core_type<tc>, window_params = [{transform_indices = @transform_0, window_bounds = array<i64: 32, 128>}, {pipeline_mode = #tpu.pipeline_mode<synchronous>, transform_indices = @transform_1, window_bounds = array<i64: 128, 384>}, {pipeline_mode = #tpu.pipeline_mode<synchronous>, transform_indices = @transform_2, window_bounds = array<i64: 128, 384>}, {pipeline_mode = #tpu.pipeline_mode<synchronous>, transform_indices = @transform_3, window_bounds = array<i64: 1, 384>}, {pipeline_mode = #tpu.pipeline_mode<synchronous>, transform_indices = @transform_4, window_bounds = array<i64: 1, 128>}, {transform_indices = @transform_5, window_bounds = array<i64: 32, 128>}]} {
    %c0_i32 = arith.constant 0 : i32
    %0 = arith.cmpi eq, %arg0, %c0_i32 : i32
    %1 = arith.extui %0 : i1 to i32
    %c0_i32_0 = arith.constant 0 : i32
    %2 = arith.cmpi ne, %1, %c0_i32_0 : i32
    scf.if %2 {
      %cst_36 = arith.constant 0.000000e+00 : f32
      %120 = vector.broadcast %cst_36 : f32 to vector<8x128xf32>
      %c0_37 = arith.constant 0 : index
      %c0_38 = arith.constant 0 : index
      %121 = vector.load %arg8[%c0_37, %c0_38] : memref<8x128xf32, #tpu.memory_space<vmem>>, vector<8x128xf32>
      tpu.vector_store %arg8[%c0_37, %c0_38], %120 {strides = array<i32>} : memref<8x128xf32, #tpu.memory_space<vmem>>, vector<8x128xf32>,
    } else {
    }
    %c0 = arith.constant 0 : index
    %c0_1 = arith.constant 0 : index
    %3 = vector.load %arg1[%c0, %c0_1] : memref<32x128xf32, #tpu.memory_space<vmem>>, vector<32x128xf32>
    %c0_2 = arith.constant 0 : index
    %c0_3 = arith.constant 0 : index
    %4 = vector.load %arg2[%c0_2, %c0_3] : memref<128x384xf32, #tpu.memory_space<vmem>>, vector<128x384xf32>
    %cst = arith.constant dense<0.000000e+00> : vector<32x384xf32>
    %5 = tpu.matmul %3, %4, %cst {dimension_numbers = #tpu.dot_dimension_numbers<[1], [0], [0], [1], [0, 0, 1, 1], [], []>} : vector<32x128xf32>, vector<128x384xf32>, vector<32x384xf32> -> vector<32x384xf32>
    %c0_4 = arith.constant 0 : index
    %c0_5 = arith.constant 0 : index
    %6 = vector.load %arg4[%c0_4, %c0_5] : memref<1x384xf32, #tpu.memory_space<vmem>>, vector<1x384xf32>
    %7 = vector.broadcast %6 : vector<1x384xf32> to vector<32x384xf32>
    %8 = arith.addf %5, %7 : vector<32x384xf32>
    %c0_6 = arith.constant 0 : index
    %c0_7 = arith.constant 0 : index
    %9 = vector.load %arg7[%c0_6, %c0_7] : memref<32x384xf32, #tpu.memory_space<vmem>>, vector<32x384xf32>
    tpu.vector_store %arg7[%c0_6, %c0_7], %8 {strides = array<i32>} : memref<32x384xf32, #tpu.memory_space<vmem>>, vector<32x384xf32>,
    %c0_8 = arith.constant 0 : index
    %c0_9 = arith.constant 0 : index
    %10 = vector.load %arg3[%c0_8, %c0_9] : memref<128x384xf32, #tpu.memory_space<vmem>>, vector<128x384xf32>
    %c0_10 = arith.constant 0 : index
    %c0_11 = arith.constant 0 : index
    %11 = vector.load %arg5[%c0_10, %c0_11] : memref<1x128xf32, #tpu.memory_space<vmem>>, vector<1x128xf32>
    %12 = vector.shape_cast %11 : vector<1x128xf32> to vector<1x128xf32>
    %13 = vector.broadcast %12 : vector<1x128xf32> to vector<8x128xf32>
    %c0_12 = arith.constant 0 : index
    %c0_13 = arith.constant 0 : index
    %14 = vector.load %arg8[%c0_12, %c0_13] : memref<8x128xf32, #tpu.memory_space<vmem>>, vector<8x128xf32>
    %c0_i32_14 = arith.constant 0 : i32
    %c8_i32 = arith.constant 8 : i32
    %15 = arith.muli %c0_i32_14, %c8_i32 : i32
    %16 = tpu.assume_multiple %15, 8 : i32
    %17 = arith.index_cast %16 : i32 to index
    %c0_15 = arith.constant 0 : index
    %18 = vector.load %arg7[%17, %c0_15] : memref<32x384xf32, #tpu.memory_space<vmem>>, vector<8x384xf32>
    %cst_16 = arith.constant dense<0.000000e+00> : vector<8x384xf32>
    %19 = tpu.matmul %14, %10, %cst_16 {dimension_numbers = #tpu.dot_dimension_numbers<[1], [0], [0], [1], [0, 0, 1, 1], [], []>} : vector<8x128xf32>, vector<128x384xf32>, vector<8x384xf32> -> vector<8x384xf32>
    %20 = vector.extract_strided_slice %18 {offsets = [0, 0], sizes = [8, 256], strides = [1, 1]} : vector<8x384xf32> to vector<8x256xf32>
    %21 = vector.extract_strided_slice %19 {offsets = [0, 0], sizes = [8, 256], strides = [1, 1]} : vector<8x384xf32> to vector<8x256xf32>
    %22 = arith.addf %20, %21 : vector<8x256xf32>
    %23 = arith.negf %22 : vector<8x256xf32>
    %24 = math.exp %23 : vector<8x256xf32>
    %cst_17 = arith.constant 1.000000e+00 : f32
    %25 = vector.broadcast %cst_17 : f32 to vector<8x256xf32>
    %26 = arith.addf %25, %24 : vector<8x256xf32>
    %27 = arith.divf %25, %26 : vector<8x256xf32>
    %28 = vector.extract_strided_slice %27 {offsets = [0, 0], sizes = [8, 128], strides = [1, 1]} : vector<8x256xf32> to vector<8x128xf32>
    %29 = vector.extract_strided_slice %27 {offsets = [0, 128], sizes = [8, 128], strides = [1, 1]} : vector<8x256xf32> to vector<8x128xf32>
    %30 = vector.extract_strided_slice %18 {offsets = [0, 256], sizes = [8, 128], strides = [1, 1]} : vector<8x384xf32> to vector<8x128xf32>
    %31 = vector.extract_strided_slice %19 {offsets = [0, 256], sizes = [8, 128], strides = [1, 1]} : vector<8x384xf32> to vector<8x128xf32>
    %32 = arith.addf %31, %13 : vector<8x128xf32>
    %33 = arith.mulf %28, %32 : vector<8x128xf32>
    %34 = arith.addf %30, %33 : vector<8x128xf32>
    %35 = math.tanh %34 : vector<8x128xf32>
    %36 = arith.subf %14, %35 : vector<8x128xf32>
    %37 = arith.mulf %29, %36 : vector<8x128xf32>
    %38 = arith.addf %35, %37 : vector<8x128xf32>
    %39 = arith.index_cast %16 : i32 to index
    %c0_18 = arith.constant 0 : index
    %40 = vector.load %arg6[%39, %c0_18] : memref<32x128xf32, #tpu.memory_space<vmem>>, vector<8x128xf32>
    tpu.vector_store %arg6[%39, %c0_18], %38 {strides = array<i32>} : memref<32x128xf32, #tpu.memory_space<vmem>>, vector<8x128xf32>,
    %c1_i32 = arith.constant 1 : i32
    %c8_i32_19 = arith.constant 8 : i32
    %41 = arith.muli %c1_i32, %c8_i32_19 : i32
    %42 = tpu.assume_multiple %41, 8 : i32
    %43 = arith.index_cast %42 : i32 to index
    %c0_20 = arith.constant 0 : index
    %44 = vector.load %arg7[%43, %c0_20] : memref<32x384xf32, #tpu.memory_space<vmem>>, vector<8x384xf32>
    %cst_21 = arith.constant dense<0.000000e+00> : vector<8x384xf32>
    %45 = tpu.matmul %38, %10, %cst_21 {dimension_numbers = #tpu.dot_dimension_numbers<[1], [0], [0], [1], [0, 0, 1, 1], [], []>} : vector<8x128xf32>, vector<128x384xf32>, vector<8x384xf32> -> vector<8x384xf32>
    %46 = vector.extract_strided_slice %44 {offsets = [0, 0], sizes = [8, 256], strides = [1, 1]} : vector<8x384xf32> to vector<8x256xf32>
    %47 = vector.extract_strided_slice %45 {offsets = [0, 0], sizes = [8, 256], strides = [1, 1]} : vector<8x384xf32> to vector<8x256xf32>
    %48 = arith.addf %46, %47 : vector<8x256xf32>
    %49 = arith.negf %48 : vector<8x256xf32>
    %50 = math.exp %49 : vector<8x256xf32>
    %cst_22 = arith.constant 1.000000e+00 : f32
    %51 = vector.broadcast %cst_22 : f32 to vector<8x256xf32>
    %52 = arith.addf %51, %50 : vector<8x256xf32>
    %53 = arith.divf %51, %52 : vector<8x256xf32>
    %54 = vector.extract_strided_slice %53 {offsets = [0, 0], sizes = [8, 128], strides = [1, 1]} : vector<8x256xf32> to vector<8x128xf32>
    %55 = vector.extract_strided_slice %53 {offsets = [0, 128], sizes = [8, 128], strides = [1, 1]} : vector<8x256xf32> to vector<8x128xf32>
    %56 = vector.extract_strided_slice %44 {offsets = [0, 256], sizes = [8, 128], strides = [1, 1]} : vector<8x384xf32> to vector<8x128xf32>
    %57 = vector.extract_strided_slice %45 {offsets = [0, 256], sizes = [8, 128], strides = [1, 1]} : vector<8x384xf32> to vector<8x128xf32>
    %58 = arith.addf %57, %13 : vector<8x128xf32>
    %59 = arith.mulf %54, %58 : vector<8x128xf32>
    %60 = arith.addf %56, %59 : vector<8x128xf32>
    %61 = math.tanh %60 : vector<8x128xf32>
    %62 = arith.subf %38, %61 : vector<8x128xf32>
    %63 = arith.mulf %55, %62 : vector<8x128xf32>
    %64 = arith.addf %61, %63 : vector<8x128xf32>
    %65 = arith.index_cast %42 : i32 to index
    %c0_23 = arith.constant 0 : index
    %66 = vector.load %arg6[%65, %c0_23] : memref<32x128xf32, #tpu.memory_space<vmem>>, vector<8x128xf32>
    tpu.vector_store %arg6[%65, %c0_23], %64 {strides = array<i32>} : memref<32x128xf32, #tpu.memory_space<vmem>>, vector<8x128xf32>,
    %c2_i32 = arith.constant 2 : i32
    %c8_i32_24 = arith.constant 8 : i32
    %67 = arith.muli %c2_i32, %c8_i32_24 : i32
    %68 = tpu.assume_multiple %67, 8 : i32
    %69 = arith.index_cast %68 : i32 to index
    %c0_25 = arith.constant 0 : index
    %70 = vector.load %arg7[%69, %c0_25] : memref<32x384xf32, #tpu.memory_space<vmem>>, vector<8x384xf32>
    %cst_26 = arith.constant dense<0.000000e+00> : vector<8x384xf32>
    %71 = tpu.matmul %64, %10, %cst_26 {dimension_numbers = #tpu.dot_dimension_numbers<[1], [0], [0], [1], [0, 0, 1, 1], [], []>} : vector<8x128xf32>, vector<128x384xf32>, vector<8x384xf32> -> vector<8x384xf32>
    %72 = vector.extract_strided_slice %70 {offsets = [0, 0], sizes = [8, 256], strides = [1, 1]} : vector<8x384xf32> to vector<8x256xf32>
    %73 = vector.extract_strided_slice %71 {offsets = [0, 0], sizes = [8, 256], strides = [1, 1]} : vector<8x384xf32> to vector<8x256xf32>
    %74 = arith.addf %72, %73 : vector<8x256xf32>
    %75 = arith.negf %74 : vector<8x256xf32>
    %76 = math.exp %75 : vector<8x256xf32>
    %cst_27 = arith.constant 1.000000e+00 : f32
    %77 = vector.broadcast %cst_27 : f32 to vector<8x256xf32>
    %78 = arith.addf %77, %76 : vector<8x256xf32>
    %79 = arith.divf %77, %78 : vector<8x256xf32>
    %80 = vector.extract_strided_slice %79 {offsets = [0, 0], sizes = [8, 128], strides = [1, 1]} : vector<8x256xf32> to vector<8x128xf32>
    %81 = vector.extract_strided_slice %79 {offsets = [0, 128], sizes = [8, 128], strides = [1, 1]} : vector<8x256xf32> to vector<8x128xf32>
    %82 = vector.extract_strided_slice %70 {offsets = [0, 256], sizes = [8, 128], strides = [1, 1]} : vector<8x384xf32> to vector<8x128xf32>
    %83 = vector.extract_strided_slice %71 {offsets = [0, 256], sizes = [8, 128], strides = [1, 1]} : vector<8x384xf32> to vector<8x128xf32>
    %84 = arith.addf %83, %13 : vector<8x128xf32>
    %85 = arith.mulf %80, %84 : vector<8x128xf32>
    %86 = arith.addf %82, %85 : vector<8x128xf32>
    %87 = math.tanh %86 : vector<8x128xf32>
    %88 = arith.subf %64, %87 : vector<8x128xf32>
    %89 = arith.mulf %81, %88 : vector<8x128xf32>
    %90 = arith.addf %87, %89 : vector<8x128xf32>
    %91 = arith.index_cast %68 : i32 to index
    %c0_28 = arith.constant 0 : index
    %92 = vector.load %arg6[%91, %c0_28] : memref<32x128xf32, #tpu.memory_space<vmem>>, vector<8x128xf32>
    tpu.vector_store %arg6[%91, %c0_28], %90 {strides = array<i32>} : memref<32x128xf32, #tpu.memory_space<vmem>>, vector<8x128xf32>,
    %c3_i32 = arith.constant 3 : i32
    %c8_i32_29 = arith.constant 8 : i32
    %93 = arith.muli %c3_i32, %c8_i32_29 : i32
    %94 = tpu.assume_multiple %93, 8 : i32
    %95 = arith.index_cast %94 : i32 to index
    %c0_30 = arith.constant 0 : index
    %96 = vector.load %arg7[%95, %c0_30] : memref<32x384xf32, #tpu.memory_space<vmem>>, vector<8x384xf32>
    %cst_31 = arith.constant dense<0.000000e+00> : vector<8x384xf32>
    %97 = tpu.matmul %90, %10, %cst_31 {dimension_numbers = #tpu.dot_dimension_numbers<[1], [0], [0], [1], [0, 0, 1, 1], [], []>} : vector<8x128xf32>, vector<128x384xf32>, vector<8x384xf32> -> vector<8x384xf32>
    %98 = vector.extract_strided_slice %96 {offsets = [0, 0], sizes = [8, 256], strides = [1, 1]} : vector<8x384xf32> to vector<8x256xf32>
    %99 = vector.extract_strided_slice %97 {offsets = [0, 0], sizes = [8, 256], strides = [1, 1]} : vector<8x384xf32> to vector<8x256xf32>
    %100 = arith.addf %98, %99 : vector<8x256xf32>
    %101 = arith.negf %100 : vector<8x256xf32>
    %102 = math.exp %101 : vector<8x256xf32>
    %cst_32 = arith.constant 1.000000e+00 : f32
    %103 = vector.broadcast %cst_32 : f32 to vector<8x256xf32>
    %104 = arith.addf %103, %102 : vector<8x256xf32>
    %105 = arith.divf %103, %104 : vector<8x256xf32>
    %106 = vector.extract_strided_slice %105 {offsets = [0, 0], sizes = [8, 128], strides = [1, 1]} : vector<8x256xf32> to vector<8x128xf32>
    %107 = vector.extract_strided_slice %105 {offsets = [0, 128], sizes = [8, 128], strides = [1, 1]} : vector<8x256xf32> to vector<8x128xf32>
    %108 = vector.extract_strided_slice %96 {offsets = [0, 256], sizes = [8, 128], strides = [1, 1]} : vector<8x384xf32> to vector<8x128xf32>
    %109 = vector.extract_strided_slice %97 {offsets = [0, 256], sizes = [8, 128], strides = [1, 1]} : vector<8x384xf32> to vector<8x128xf32>
    %110 = arith.addf %109, %13 : vector<8x128xf32>
    %111 = arith.mulf %106, %110 : vector<8x128xf32>
    %112 = arith.addf %108, %111 : vector<8x128xf32>
    %113 = math.tanh %112 : vector<8x128xf32>
    %114 = arith.subf %90, %113 : vector<8x128xf32>
    %115 = arith.mulf %107, %114 : vector<8x128xf32>
    %116 = arith.addf %113, %115 : vector<8x128xf32>
    %117 = arith.index_cast %94 : i32 to index
    %c0_33 = arith.constant 0 : index
    %118 = vector.load %arg6[%117, %c0_33] : memref<32x128xf32, #tpu.memory_space<vmem>>, vector<8x128xf32>
    tpu.vector_store %arg6[%117, %c0_33], %116 {strides = array<i32>} : memref<32x128xf32, #tpu.memory_space<vmem>>, vector<8x128xf32>,
    %c4_i32 = arith.constant 4 : i32
    %c0_34 = arith.constant 0 : index
    %c0_35 = arith.constant 0 : index
    %119 = vector.load %arg8[%c0_34, %c0_35] : memref<8x128xf32, #tpu.memory_space<vmem>>, vector<8x128xf32>
    tpu.vector_store %arg8[%c0_34, %c0_35], %116 {strides = array<i32>} : memref<8x128xf32, #tpu.memory_space<vmem>>, vector<8x128xf32>,
    return
  }
  func.func @transform_0(%arg0: i32) -> (i32, i32) {
    %c0_i32 = arith.constant 0 : i32
    %c0_i32_0 = arith.constant 0 : i32
    return %arg0, %c0_i32 : i32, i32
  }
  func.func @transform_1(%arg0: i32) -> (i32, i32) {
    %c0_i32 = arith.constant 0 : i32
    %c0_i32_0 = arith.constant 0 : i32
    %c0_i32_1 = arith.constant 0 : i32
    return %c0_i32, %c0_i32_0 : i32, i32
  }
  func.func @transform_2(%arg0: i32) -> (i32, i32) {
    %c0_i32 = arith.constant 0 : i32
    %c0_i32_0 = arith.constant 0 : i32
    %c0_i32_1 = arith.constant 0 : i32
    return %c0_i32, %c0_i32_0 : i32, i32
  }
  func.func @transform_3(%arg0: i32) -> (i32, i32) {
    %c0_i32 = arith.constant 0 : i32
    %c0_i32_0 = arith.constant 0 : i32
    %c0_i32_1 = arith.constant 0 : i32
    return %c0_i32, %c0_i32_0 : i32, i32
  }
  func.func @transform_4(%arg0: i32) -> (i32, i32) {
    %c0_i32 = arith.constant 0 : i32
    %c0_i32_0 = arith.constant 0 : i32
    %c0_i32_1 = arith.constant 0 : i32
    return %c0_i32, %c0_i32_0 : i32, i32
  }
  func.func @transform_5(%arg0: i32) -> (i32, i32) {
    %c0_i32 = arith.constant 0 : i32
    %c0_i32_0 = arith.constant 0 : i32
    return %arg0, %c0_i32 : i32, i32
  }
}

module attributes {stable_mosaic.version = 11 : i64} {
  func.func @head_kernel(%arg0: i32, %arg1: memref<8x128xf32, #tpu.memory_space<vmem>>, %arg2: memref<8x4224xf32, #tpu.memory_space<vmem>>, %arg3: memref<128x128xf32, #tpu.memory_space<vmem>>, %arg4: memref<4224x128xf32, #tpu.memory_space<vmem>>, %arg5: memref<1x128xf32, #tpu.memory_space<vmem>>, %arg6: memref<8x128xf32, #tpu.memory_space<vmem>>) attributes {dimension_semantics = [#tpu.dimension_semantics<parallel>], iteration_bounds = array<i64: 1>, scalar_prefetch = 0 : i64, scratch_operands = 0 : i64, tpu.core_type = #tpu.core_type<tc>, window_params = [{transform_indices = @transform_0, window_bounds = array<i64: 8, 128>}, {transform_indices = @transform_1, window_bounds = array<i64: 8, 4224>}, {pipeline_mode = #tpu.pipeline_mode<synchronous>, transform_indices = @transform_2, window_bounds = array<i64: 128, 128>}, {pipeline_mode = #tpu.pipeline_mode<synchronous>, transform_indices = @transform_3, window_bounds = array<i64: 4224, 128>}, {pipeline_mode = #tpu.pipeline_mode<synchronous>, transform_indices = @transform_4, window_bounds = array<i64: 1, 128>}, {transform_indices = @transform_5, window_bounds = array<i64: 8, 128>}]} {
    %c0 = arith.constant 0 : index
    %c0_0 = arith.constant 0 : index
    %0 = vector.load %arg1[%c0, %c0_0] : memref<8x128xf32, #tpu.memory_space<vmem>>, vector<8x128xf32>
    %c0_1 = arith.constant 0 : index
    %c0_2 = arith.constant 0 : index
    %1 = vector.load %arg3[%c0_1, %c0_2] : memref<128x128xf32, #tpu.memory_space<vmem>>, vector<128x128xf32>
    %cst = arith.constant dense<0.000000e+00> : vector<8x128xf32>
    %2 = tpu.matmul %0, %1, %cst {dimension_numbers = #tpu.dot_dimension_numbers<[1], [0], [0], [1], [0, 0, 1, 1], [], []>} : vector<8x128xf32>, vector<128x128xf32>, vector<8x128xf32> -> vector<8x128xf32>
    %c0_3 = arith.constant 0 : index
    %c0_4 = arith.constant 0 : index
    %3 = vector.load %arg2[%c0_3, %c0_4] : memref<8x4224xf32, #tpu.memory_space<vmem>>, vector<8x4224xf32>
    %c0_5 = arith.constant 0 : index
    %c0_6 = arith.constant 0 : index
    %4 = vector.load %arg4[%c0_5, %c0_6] : memref<4224x128xf32, #tpu.memory_space<vmem>>, vector<4224x128xf32>
    %cst_7 = arith.constant dense<0.000000e+00> : vector<8x128xf32>
    %5 = tpu.matmul %3, %4, %cst_7 {dimension_numbers = #tpu.dot_dimension_numbers<[1], [0], [0], [1], [0, 0, 1, 1], [], []>} : vector<8x4224xf32>, vector<4224x128xf32>, vector<8x128xf32> -> vector<8x128xf32>
    %6 = arith.addf %2, %5 : vector<8x128xf32>
    %c0_8 = arith.constant 0 : index
    %c0_9 = arith.constant 0 : index
    %7 = vector.load %arg5[%c0_8, %c0_9] : memref<1x128xf32, #tpu.memory_space<vmem>>, vector<1x128xf32>
    %8 = vector.broadcast %7 : vector<1x128xf32> to vector<8x128xf32>
    %9 = arith.addf %6, %8 : vector<8x128xf32>
    %c0_10 = arith.constant 0 : index
    %c0_11 = arith.constant 0 : index
    %10 = vector.load %arg6[%c0_10, %c0_11] : memref<8x128xf32, #tpu.memory_space<vmem>>, vector<8x128xf32>
    tpu.vector_store %arg6[%c0_10, %c0_11], %9 {strides = array<i32>} : memref<8x128xf32, #tpu.memory_space<vmem>>, vector<8x128xf32>,
    return
  }
  func.func @transform_0(%arg0: i32) -> (i32, i32) {
    %c0_i32 = arith.constant 0 : i32
    %c0_i32_0 = arith.constant 0 : i32
    return %arg0, %c0_i32 : i32, i32
  }
  func.func @transform_1(%arg0: i32) -> (i32, i32) {
    %c0_i32 = arith.constant 0 : i32
    %c0_i32_0 = arith.constant 0 : i32
    return %arg0, %c0_i32 : i32, i32
  }
  func.func @transform_2(%arg0: i32) -> (i32, i32) {
    %c0_i32 = arith.constant 0 : i32
    %c0_i32_0 = arith.constant 0 : i32
    %c0_i32_1 = arith.constant 0 : i32
    return %c0_i32, %c0_i32_0 : i32, i32
  }
  func.func @transform_3(%arg0: i32) -> (i32, i32) {
    %c0_i32 = arith.constant 0 : i32
    %c0_i32_0 = arith.constant 0 : i32
    %c0_i32_1 = arith.constant 0 : i32
    return %c0_i32, %c0_i32_0 : i32, i32
  }
  func.func @transform_4(%arg0: i32) -> (i32, i32) {
    %c0_i32 = arith.constant 0 : i32
    %c0_i32_0 = arith.constant 0 : i32
    %c0_i32_1 = arith.constant 0 : i32
    return %c0_i32, %c0_i32_0 : i32, i32
  }
  func.func @transform_5(%arg0: i32) -> (i32, i32) {
    %c0_i32 = arith.constant 0 : i32
    %c0_i32_0 = arith.constant 0 : i32
    return %arg0, %c0_i32 : i32, i32
  }
}

</mosaic_0001>

<bundles_post_ra>
// kernel: classifier_forward.2
= control target key start
LH: loop header
LB: loop body
LE: loop exit
PB: predicated region body
PF: predicated region fallthrough
CT: control target
= control target key end

     0   :  { %v2126_v3 = vmov 0.0   ;;  %vm1344_vm0 = vmmov 0   ;;  %s2120_s1 = inlined_call_operand.vmem [shape: f32[128,384], index: 1, kind: input, shape index: {}]   ;;  %s2121_s0 = inlined_call_operand.vmem [shape: f32[32,128], index: 0, kind: input, shape index: {}]   ;;  %s2122_s2 = inlined_call_operand.vmem [shape: f32[128,384], index: 2, kind: input, shape index: {}]   ;;  %s2123_s3 = inlined_call_operand.vmem [shape: f32[1,384], index: 3, kind: input, shape index: {}]   ;;  %s2124_s4 = inlined_call_operand.vmem [shape: f32[1,128], index: 4, kind: input, shape index: {}]   ;;  %s2125_s5 = inlined_call_operand.vmem [shape: f32[32,128], index: 5, kind: output, shape index: {}]  }
   0x1   :  { %v75_v0 = vld [vmem:[%s2120_s1 + $0x170] sm:$0xff]  ;;  %v74_v1 = vld [vmem:[%s2120_s1 + $0x168] sm:$0xff]  ;;  %v72_v2 = vld [vmem:[%s2120_s1 + $0x158] sm:$0xff]  ;;  %158 = vmatprep.mubr.f32.mxu0 %v2126_v3 }
   0x2   :  { %94 = vmatprep.subr.mxu0 %v75_v0  ;;  %v71_v4 = vld [vmem:[%s2120_s1 + $0x150] sm:$0xff]  ;;  %v69_v5 = vld [vmem:[%s2120_s1 + $0x140] sm:$0xff]  ;;  %v68_v6 = vld [vmem:[%s2120_s1 + $0x138] sm:$0xff] }
   0x3   :  { %95 = vmatpush1.msra.mxu0 %v74_v1  ;;  %v66_v7 = vld [vmem:[%s2120_s1 + $0x128] sm:$0xff]  ;;  %v65_v8 = vld [vmem:[%s2120_s1 + $0x120] sm:$0xff]  ;;  %v63_v9 = vld [vmem:[%s2120_s1 + $0x110] sm:$0xff] }
   0x4   :  { %96 = vmatprep.subr.mxu0 %v72_v2  ;;  %v62_v10 = vld [vmem:[%s2120_s1 + $0x108] sm:$0xff]  ;;  %v60_v11 = vld [vmem:[%s2120_s1 + $0xf8] sm:$0xff]  ;;  %v59_v12 = vld [vmem:[%s2120_s1 + $0xf0] sm:$0xff] }
   0x5   :  { %97 = vmatpush1.msra.mxu0 %v71_v4  ;;  %v57_v13 = vld [vmem:[%s2120_s1 + $0xe0] sm:$0xff]  ;;  %v76_v14 = vld [vmem:[%s2120_s1 + $0x178] sm:$0xff]  ;;  %v54_v17 = vld [vmem:[%s2120_s1 + $0xc8] sm:$0xff] }
   0x6   :  { %98 = vmatprep.subr.mxu0 %v69_v5  ;;  %v56_v15 = vld [vmem:[%s2120_s1 + $0xd8] sm:$0xff]  ;;  %1123 = vmatprep.subr.mxu1 %v76_v14  ;;  %v73_v16 = vld [vmem:[%s2120_s1 + $0x160] sm:$0xff]  ;;  %v70_v18 = vld [vmem:[%s2120_s1 + $0x148] sm:$0xff] }
   0x7   :  { %99 = vmatpush1.msra.mxu0 %v68_v6  ;;  %1124 = vmatpush3.msra.mxu1 %v76_v14  ;;  %v53_v19 = vld [vmem:[%s2120_s1 + $0xc0] sm:$0xff]  ;;  %v51_v20 = vld [vmem:[%s2120_s1 + $0xb0] sm:$0xff]  ;;  %v50_v22 = vld [vmem:[%s2120_s1 + $0xa8] sm:$0xff] }
   0x8   :  { %100 = vmatprep.subr.mxu0 %v66_v7  ;;  %1125 = vmatprep.subr.mxu1 %v73_v16  ;;  %v67_v21 = vld [vmem:[%s2120_s1 + $0x130] sm:$0xff]  ;;  %v48_v23 = vld [vmem:[%s2120_s1 + $0x98] sm:$0xff]  ;;  %v45_v26 = vld [vmem:[%s2120_s1 + $0x80] sm:$0xff] }
   0x9   :  { %101 = vmatpush1.msra.mxu0 %v65_v8  ;;  %1126 = vmatpush3.msra.mxu1 %v73_v16  ;;  %v64_v24 = vld [vmem:[%s2120_s1 + $0x118] sm:$0xff]  ;;  %v47_v25 = vld [vmem:[%s2120_s1 + $0x90] sm:$0xff]  ;;  %v61_v27 = vld [vmem:[%s2120_s1 + $0x100] sm:$0xff] }
   0xa   :  { %102 = vmatprep.subr.mxu0 %v63_v9  ;;  %1127 = vmatprep.subr.mxu1 %v70_v18  ;;  %v44_v28 = vld [vmem:[%s2120_s1 + $0x78] sm:$0xff]  ;;  %v42_v29 = vld [vmem:[%s2120_s1 + $0x68] sm:$0xff]  ;;  %v41_v31 = vld [vmem:[%s2120_s1 + $0x60] sm:$0xff] }
   0xb   :  { %103 = vmatpush1.msra.mxu0 %v62_v10  ;;  %1128 = vmatpush3.msra.mxu1 %v70_v18  ;;  %v58_v30 = vld [vmem:[%s2120_s1 + $0xe8] sm:$0xff]  ;;  %v39_v32 = vld [vmem:[%s2120_s1 + $0x50] sm:$0xff]  ;;  %v36_v35 = vld [vmem:[%s2120_s1 + $0x38] sm:$0xff] }
   0xc   :  { %104 = vmatprep.subr.mxu0 %v60_v11  ;;  %1129 = vmatprep.subr.mxu1 %v67_v21  ;;  %v55_v33 = vld [vmem:[%s2120_s1 + $0xd0] sm:$0xff]  ;;  %v38_v34 = vld [vmem:[%s2120_s1 + $0x48] sm:$0xff]  ;;  %v52_v36 = vld [vmem:[%s2120_s1 + $0xb8] sm:$0xff] }
   0xd   :  { %105 = vmatpush1.msra.mxu0 %v59_v12  ;;  %1130 = vmatpush3.msra.mxu1 %v67_v21  ;;  %v35_v37 = vld [vmem:[%s2120_s1 + $0x30] sm:$0xff]  ;;  %v33_v38 = vld [vmem:[%s2120_s1 + $0x20] sm:$0xff]  ;;  %v32_v40 = vld [vmem:[%s2120_s1 + $0x18] sm:$0xff] }
   0xe   :  { %106 = vmatprep.subr.mxu0 %v57_v13  ;;  %1131 = vmatprep.subr.mxu1 %v64_v24  ;;  %v49_v39 = vld [vmem:[%s2120_s1 + $0xa0] sm:$0xff]  ;;  %v30_v41 = vld [vmem:[%s2120_s1 + $0x8] sm:$0xff]  ;;  %v1513_v45 = vld [vmem:[%s2122_s2 + $0x170] sm:$0xff] }
   0xf   :  { %107 = vmatpush1.msra.mxu0 %v56_v15  ;;  %1132 = vmatpush3.msra.mxu1 %v64_v24  ;;  %v46_v42 = vld [vmem:[%s2120_s1 + $0x88] sm:$0xff]  ;;  %v29_v43 = vld [vmem:[%s2120_s1] sm:$0xff]  ;;  %2141 = vst [vmem:[#allocation4_spill] sm:$0xff] %v1513_v45  ;;  %v1523_v47 = vld [vmem:[%s2122_s2 + $0x158] sm:$0xff] }
  0x10   :  { %108 = vmatprep.subr.mxu0 %v54_v17  ;;  %1133 = vmatprep.subr.mxu1 %v61_v27  ;;  %v1508_v44 = vld [vmem:[%s2121_s0] sm:$0xff]  ;;  %v1518_v46 = vld [vmem:[%s2122_s2 + $0x168] sm:$0xff]  ;;  %v43_v48 = vld [vmem:[%s2120_s1 + $0x70] sm:$0xff] }
  0x11   :  { %109 = vmatpush1.msra.mxu0 %v53_v19  ;;  %1134 = vmatpush3.msra.mxu1 %v61_v27  ;;  %v1533_v49 = vld [vmem:[%s2122_s2 + $0x150] sm:$0xff]  ;;  %v1539_v50 = vld [vmem:[%s2122_s2 + $0x140] sm:$0xff]  ;;  %v26_v51 = vld [vmem:[%s2121_s0 + $0x8] sm:$0xff] }
  0x12   :  { %110 = vmatprep.subr.mxu0 %v51_v20  ;;  %1135 = vmatprep.subr.mxu1 %v58_v30  ;;  %v1549_v52 = vld [vmem:[%s2122_s2 + $0x138] sm:$0xff]  ;;  %v1555_v53 = vld [vmem:[%s2122_s2 + $0x128] sm:$0xff]  ;;  %v1564_v55 = vld [vmem:[%s2122_s2 + $0x120] sm:$0xff] }
  0x13   :  { %111 = vmatpush1.msra.mxu0 %v50_v22  ;;  %1136 = vmatpush3.msra.mxu1 %v58_v30  ;;  %v40_v54 = vld [vmem:[%s2120_s1 + $0x58] sm:$0xff]  ;;  %v1570_v56 = vld [vmem:[%s2122_s2 + $0x110] sm:$0xff]  ;;  %v1582_v58 = vld [vmem:[%s2122_s2 + $0x108] sm:$0xff] }
  0x14   :  { %112 = vmatprep.subr.mxu0 %v48_v23  ;;  %1137 = vmatprep.subr.mxu1 %v55_v33  ;;  %v1576_v57 = vld [vmem:[%s2121_s0 + $0x10] sm:$0xff]  ;;  %v37_v59 = vld [vmem:[%s2120_s1 + $0x40] sm:$0xff]  ;;  %v1591_v60 = vld [vmem:[%s2122_s2 + $0xf8] sm:$0xff] }
  0x15   :  { %113 = vmatpush1.msra.mxu0 %v47_v25  ;;  %1138 = vmatpush3.msra.mxu1 %v55_v33  ;;  %v1597_v61 = vld [vmem:[%s2122_s2 + $0xf0] sm:$0xff]  ;;  %v1604_v62 = vld [vmem:[%s2122_s2 + $0xe0] sm:$0xff]  ;;  %v1609_v63 = vld [vmem:[%s2121_s0 + $0x18] sm:$0xff] }
  0x16   :  { %114 = vmatprep.subr.mxu0 %v45_v26  ;;  %1139 = vmatprep.subr.mxu1 %v52_v36  ;;  %v1615_v0 = vld [vmem:[%s2122_s2 + $0xd8] sm:$0xff]  ;;  %v34_v1 = vld [vmem:[%s2120_s1 + $0x28] sm:$0xff]  ;;  %v1631_v4 = vld [vmem:[%s2122_s2 + $0xc0] sm:$0xff] }
  0x17   :  { %115 = vmatpush1.msra.mxu0 %v44_v28  ;;  %1140 = vmatpush3.msra.mxu1 %v52_v36  ;;  %v1625_v2 = vld [vmem:[%s2122_s2 + $0xc8] sm:$0xff]  ;;  %v31_v5 = vld [vmem:[%s2120_s1 + $0x10] sm:$0xff]  ;;  %v1653_v8 = vld [vmem:[%s2122_s2 + $0x98] sm:$0xff] }
  0x18   :  { %116 = vmatprep.subr.mxu0 %v42_v29  ;;  %1141 = vmatprep.subr.mxu1 %v49_v39  ;;  %v1641_v6 = vld [vmem:[%s2122_s2 + $0xb0] sm:$0xff]  ;;  %v1647_v7 = vld [vmem:[%s2122_s2 + $0xa8] sm:$0xff]  ;;  %v1665_v10 = vld [vmem:[%s2122_s2 + $0x80] sm:$0xff] }
  0x19   :  { %117 = vmatpush1.msra.mxu0 %v41_v31  ;;  %1142 = vmatpush3.msra.mxu1 %v49_v39  ;;  %v1659_v9 = vld [vmem:[%s2122_s2 + $0x90] sm:$0xff]  ;;  %v1672_v11 = vld [vmem:[%s2122_s2 + $0x78] sm:$0xff]  ;;  %v1684_v13 = vld [vmem:[%s2122_s2 + $0x68] sm:$0xff] }
  0x1a   :  { %118 = vmatprep.subr.mxu0 %v39_v32  ;;  %1143 = vmatprep.subr.mxu1 %v46_v42  ;;  %v1678_v12 = vld [vmem:[%s2122_s2 + $0x178] sm:$0xff]  ;;  %v1690_v14 = vld [vmem:[%s2122_s2 + $0x60] sm:$0xff]  ;;  %v1702_v16 = vld [vmem:[%s2122_s2 + $0x50] sm:$0xff] }
  0x1b   :  { %119 = vmatpush1.msra.mxu0 %v38_v34  ;;  %1144 = vmatpush3.msra.mxu1 %v46_v42  ;;  %v1696_v15 = vld [vmem:[%s2122_s2 + $0x160] sm:$0xff]  ;;  %v1709_v17 = vld [vmem:[%s2122_s2 + $0x48] sm:$0xff]  ;;  %v1721_v19 = vld [vmem:[%s2122_s2 + $0x38] sm:$0xff] }
  0x1c   :  { %120 = vmatprep.subr.mxu0 %v36_v35  ;;  %1145 = vmatprep.subr.mxu1 %v43_v48  ;;  %v1715_v18 = vld [vmem:[%s2122_s2 + $0x148] sm:$0xff]  ;;  %v1728_v20 = vld [vmem:[%s2122_s2 + $0x30] sm:$0xff]  ;;  %v1740_v22 = vld [vmem:[%s2122_s2 + $0x20] sm:$0xff] }
  0x1d   :  { %121 = vmatpush1.msra.mxu0 %v35_v37  ;;  %1146 = vmatpush3.msra.mxu1 %v43_v48  ;;  %v1734_v21 = vld [vmem:[%s2122_s2 + $0x130] sm:$0xff]  ;;  %2142 = vst [vmem:[#allocation5_spill] sm:$0xff] %v1740_v22  ;;  %v1747_v23 = vld [vmem:[%s2122_s2 + $0x18] sm:$0xff]  ;;  %v1759_v25 = vld [vmem:[%s2122_s2 + $0x8] sm:$0xff] }
  0x1e   :  { %122 = vmatprep.subr.mxu0 %v33_v38  ;;  %1147 = vmatprep.subr.mxu1 %v40_v54  ;;  %2143 = vst [vmem:[#allocation6_spill] sm:$0xff] %v1747_v23  ;;  %v1753_v24 = vld [vmem:[%s2122_s2 + $0x118] sm:$0xff]  ;;  %2144 = vst [vmem:[#allocation7_spill] sm:$0xff] %v1759_v25  ;;  %v1766_v26 = vld [vmem:[%s2122_s2] sm:$0xff]  ;;  %v79_v38 = vlaneseq }
  0x1f   :  { %123 = vmatpush1.msra.mxu0 %v32_v40  ;;  %1148 = vmatpush3.msra.mxu1 %v40_v54  ;;  %2145 = vst [vmem:[#allocation8_spill] sm:$0xff] %v1766_v26  ;;  %v1772_v27 = vld [vmem:[%s2122_s2 + $0x100] sm:$0xff]  ;;  %v1781_v28 = vld [vmem:[%s2122_s2 + $0xe8] sm:$0xff]  ;;  %v1790_v29 = vld [vmem:[%s2122_s2 + $0xd0] sm:$0xff] }
  0x20   :  { %124 = vmatprep.subr.mxu0 %v30_v41  ;;  %1149 = vmatprep.subr.mxu1 %v37_v59  ;;  %v1798_v30 = vld [vmem:[%s2122_s2 + $0xb8] sm:$0xff]  ;;  %v1808_v31 = vld [vmem:[%s2122_s2 + $0xa0] sm:$0xff]  ;;  %v1817_v32 = vld [vmem:[%s2122_s2 + $0x88] sm:$0xff]  ;;  %v80_v39 = vshrl.u32 %v79_v38, 7 }
  0x21   :  { %125 = vmatpush1.msra.mxu0 %v29_v43  ;;  %1150 = vmatpush3.msra.mxu1 %v37_v59  ;;  %v1826_v33 = vld [vmem:[%s2122_s2 + $0x70] sm:$0xff]  ;;  %v1835_v34 = vld [vmem:[%s2122_s2 + $0x58] sm:$0xff]  ;;  %v1844_v35 = vld [vmem:[%s2122_s2 + $0x40] sm:$0xff] }
  0x22   :  { %159 = vmatmul.mubr.f32.vlgmr.msra.gmra.mxu0 %v1508_v44  ;;  %342 = vmatprep.subr.mxu0 %v1513_v45  ;;  %v1853_v36 = vld [vmem:[%s2122_s2 + $0x28] sm:$0xff]  ;;  %v1862_v37 = vld [vmem:[%s2122_s2 + $0x10] sm:$0xff]  ;;  %v81_v40 = vsub.s32 0, %v80_v39  ;;  %v77_v41 = vld [vmem:[%s2123_s3] sm:$0x7]  ;;  %v85_v43 = vsub.s32 1, %v80_v39 }
  0x23   :  { %343 = vmatpush1.msra.mxu0 %v1518_v46  ;;  %164 = vmatprep.mubr.f32.mxu0 %v2126_v3  ;;  %2146 = vst [vmem:[#allocation9_spill] sm:$0xff] %v1853_v36  ;;  %2147 = vst [vmem:[#allocation10_spill] sm:$0xff] %v1862_v37 }
  0x24   :  { %344 = vmatprep.subr.mxu0 %v1523_v47  ;;  %1151 = vmatprep.subr.mxu1 %v34_v1  ;;  %v82_v48 = vrot.slane %v77_v41, %v81_v40  ;;  %v86_v54 = vrot.slane %v77_v41, %v85_v43 }
  0x25   :  { %345 = vmatpush1.msra.mxu0 %v1533_v49  ;;  %1152 = vmatpush3.msra.mxu1 %v34_v1 }
  0x26   :  { %346 = vmatprep.subr.mxu0 %v1539_v50  ;;  %165 = vmatmul.mubr.f32.gmra.mxu0 %v26_v51 }
  0x27   :  { %347 = vmatpush1.msra.mxu0 %v1549_v52  ;;  %170 = vmatprep.mubr.f32.mxu0 %v2126_v3 }
  0x28   :  { %348 = vmatprep.subr.mxu0 %v1555_v53  ;;  %1153 = vmatprep.subr.mxu1 %v31_v5 }
  0x29   :  { %349 = vmatpush1.msra.mxu0 %v1564_v55  ;;  %1154 = vmatpush3.msra.mxu1 %v31_v5 }
  0x2a   :  { %350 = vmatprep.subr.mxu0 %v1570_v56  ;;  %171 = vmatmul.mubr.f32.gmra.mxu0 %v1576_v57 }
  0x2b   :  { %351 = vmatpush1.msra.mxu0 %v1582_v58  ;;  %176 = vmatprep.mubr.f32.mxu0 %v2126_v3 }
  0x2c   :  { %352 = vmatprep.subr.mxu0 %v1591_v60  ;;  %1155 = vmatprep.mubr.f32.mxu1 %v1508_v44 }
  0x2d   :  { %353 = vmatpush1.msra.mxu0 %v1597_v61  ;;  %1161 = vmatprep.subr.mxu1 %v2126_v3 }
  0x2e   :  { %354 = vmatprep.subr.mxu0 %v1604_v62  ;;  %177 = vmatmul.mubr.f32.gmra.mxu0 %v1609_v63 }
  0x2f   :  { %355 = vmatpush1.msra.mxu0 %v1615_v0  ;;  %1156 = vmatmul.mubr.f32.vlgmr.msra.gmra.mxu1 %v26_v51 }
  0x30   :  { %356 = vmatprep.subr.mxu0 %v1625_v2  ;;  %406 = vmatprep.mubr.f32.mxu0 %v2126_v3 }
  0x31   :  { %357 = vmatpush1.msra.mxu0 %v1631_v4  ;;  %1162 = vmatpush3.msra.mxu1 %v1678_v12 }
  0x32   :  { %358 = vmatprep.subr.mxu0 %v1641_v6  ;;  %1163 = vmatprep.subr.mxu1 %v2126_v3 }
  0x33   :  { %359 = vmatpush1.msra.mxu0 %v1647_v7  ;;  %1164 = vmatpush3.msra.mxu1 %v1696_v15 }
  0x34   :  { %360 = vmatprep.subr.mxu0 %v1653_v8  ;;  %1165 = vmatprep.subr.mxu1 %v2126_v3 }
  0x35   :  { %361 = vmatpush1.msra.mxu0 %v1659_v9  ;;  %1166 = vmatpush3.msra.mxu1 %v1715_v18 }
  0x36   :  { %362 = vmatprep.subr.mxu0 %v1665_v10  ;;  %1167 = vmatprep.subr.mxu1 %v2126_v3 }
  0x37   :  { %363 = vmatpush1.msra.mxu0 %v1672_v11  ;;  %1168 = vmatpush3.msra.mxu1 %v1734_v21 }
  0x38   :  { %364 = vmatprep.subr.mxu0 %v1684_v13  ;;  %1169 = vmatprep.subr.mxu1 %v2126_v3 }
  0x39   :  { %365 = vmatpush1.msra.mxu0 %v1690_v14  ;;  %1170 = vmatpush3.msra.mxu1 %v1753_v24 }
  0x3a   :  { %366 = vmatprep.subr.mxu0 %v1702_v16  ;;  %1171 = vmatprep.subr.mxu1 %v2126_v3 }
  0x3b   :  { %367 = vmatpush1.msra.mxu0 %v1709_v17  ;;  %1172 = vmatpush3.msra.mxu1 %v1772_v27 }
  0x3c   :  { %368 = vmatprep.subr.mxu0 %v1721_v19  ;;  %1173 = vmatprep.subr.mxu1 %v2126_v3 }
  0x3d   :  { %369 = vmatpush1.msra.mxu0 %v1728_v20  ;;  %1174 = vmatpush3.msra.mxu1 %v1781_v28 }
  0x3e   :  { %370 = vmatprep.subr.mxu0 %v1740_v22  ;;  %1158 = vmatprep.mubr.f32.mxu1 %v1576_v57 }
  0x3f   :  { %371 = vmatpush1.msra.mxu0 %v1747_v23  ;;  %1175 = vmatprep.subr.mxu1 %v2126_v3 }
  0x40   :  { %372 = vmatprep.subr.mxu0 %v1759_v25  ;;  %1159 = vmatmul.mubr.f32.gmra.mxu1 %v1609_v63 }
  0x41   :  { %373 = vmatpush1.msra.mxu0 %v1766_v26  ;;  %1176 = vmatpush3.msra.mxu1 %v1790_v29 }
  0x42   :  { %407 = vmatmul.mubr.f32.vlgmr.msra.gmra.mxu0 %v2126_v3  ;;  %1193 = vmatprep.mubr.msk.f32.mxu1 %vm1344_vm0, %v2126_v3 }
  0x43   :  { %1177 = vmatprep.subr.mxu1 %v2126_v3  ;;  %511 = vmatprep.subr.mxu0 %v1513_v45 }
  0x44   :  { %1178 = vmatpush3.msra.mxu1 %v1798_v30  ;;  %512 = vmatpush1.msra.mxu0 %v1518_v46 }
  0x45   :  { %1179 = vmatprep.subr.mxu1 %v2126_v3  ;;  %513 = vmatprep.subr.mxu0 %v1523_v47 }
  0x46   :  { %1180 = vmatpush3.msra.mxu1 %v1808_v31  ;;  %514 = vmatpush1.msra.mxu0 %v1533_v49 }
  0x47   :  { %1181 = vmatprep.subr.mxu1 %v2126_v3  ;;  %515 = vmatprep.subr.mxu0 %v1539_v50 }
  0x48   :  { %1182 = vmatpush3.msra.mxu1 %v1817_v32  ;;  %516 = vmatpush1.msra.mxu0 %v1549_v52 }
  0x49   :  { %1183 = vmatprep.subr.mxu1 %v2126_v3  ;;  %517 = vmatprep.subr.mxu0 %v1555_v53 }
  0x4a   :  { %1184 = vmatpush3.msra.mxu1 %v1826_v33  ;;  %518 = vmatpush1.msra.mxu0 %v1564_v55 }
  0x4b   :  { %1185 = vmatprep.subr.mxu1 %v2126_v3  ;;  %519 = vmatprep.subr.mxu0 %v1570_v56 }
  0x4c   :  { %1186 = vmatpush3.msra.mxu1 %v1835_v34  ;;  %520 = vmatpush1.msra.mxu0 %v1582_v58 }
  0x4d   :  { %1187 = vmatprep.subr.mxu1 %v2126_v3  ;;  %521 = vmatprep.subr.mxu0 %v1591_v60 }
  0x4e   :  { %1188 = vmatpush3.msra.mxu1 %v1844_v35  ;;  %522 = vmatpush1.msra.mxu0 %v1597_v61 }
  0x4f   :  { %1189 = vmatprep.subr.mxu1 %v2126_v3  ;;  %523 = vmatprep.subr.mxu0 %v1604_v62 }
  0x50   :  { %1190 = vmatpush3.msra.mxu1 %v1853_v36  ;;  %524 = vmatpush1.msra.mxu0 %v1615_v0 }
  0x51   :  { %1191 = vmatprep.subr.mxu1 %v2126_v3  ;;  %525 = vmatprep.subr.mxu0 %v1625_v2 }
  0x52   :  { %1192 = vmatpush3.msra.mxu1 %v1862_v37  ;;  %526 = vmatpush1.msra.mxu0 %v1631_v4 }
  0x53   :  { %1194 = vmatmul.mubr.f32.vlgmr.msra.gmra.mxu1 %v2126_v3  ;;  %1196 = vmatprep.subr.mxu1 %v2126_v3 }
  0x54   :  { %1197 = vmatpush3.msra.mxu1 %v1678_v12  ;;  %527 = vmatprep.subr.mxu0 %v1641_v6 }
  0x55   :  { %1198 = vmatprep.subr.mxu1 %v2126_v3  ;;  %528 = vmatpush1.msra.mxu0 %v1647_v7 }
  0x56   :  { %1199 = vmatpush3.msra.mxu1 %v1696_v15  ;;  %529 = vmatprep.subr.mxu0 %v1653_v8 }
  0x57   :  { %1200 = vmatprep.subr.mxu1 %v2126_v3  ;;  %530 = vmatpush1.msra.mxu0 %v1659_v9 }
  0x58   :  { %1201 = vmatpush3.msra.mxu1 %v1715_v18  ;;  %531 = vmatprep.subr.mxu0 %v1665_v10 }
  0x59   :  { %1202 = vmatprep.subr.mxu1 %v2126_v3  ;;  %532 = vmatpush1.msra.mxu0 %v1672_v11 }
  0x5a   :  { %1203 = vmatpush3.msra.mxu1 %v1734_v21  ;;  %533 = vmatprep.subr.mxu0 %v1684_v13 }
  0x5b   :  { %1204 = vmatprep.subr.mxu1 %v2126_v3  ;;  %534 = vmatpush1.msra.mxu0 %v1690_v14 }
  0x5c   :  { %1205 = vmatpush3.msra.mxu1 %v1753_v24  ;;  %535 = vmatprep.subr.mxu0 %v1702_v16 }
  0x5d   :  { %1206 = vmatprep.subr.mxu1 %v2126_v3  ;;  %536 = vmatpush1.msra.mxu0 %v1709_v17 }
  0x5e   :  { %1207 = vmatpush3.msra.mxu1 %v1772_v27  ;;  %537 = vmatprep.subr.mxu0 %v1721_v19 }
  0x5f   :  { %1208 = vmatprep.subr.mxu1 %v2126_v3  ;;  %538 = vmatpush1.msra.mxu0 %v1728_v20 }
  0x60   :  { %1209 = vmatpush3.msra.mxu1 %v1781_v28  ;;  %539 = vmatprep.subr.mxu0 %v1740_v22 }
  0x61   :  { %1210 = vmatprep.subr.mxu1 %v2126_v3  ;;  %540 = vmatpush1.msra.mxu0 %v1747_v23 }
  0x62   :  { %1211 = vmatpush3.msra.mxu1 %v1790_v29  ;;  %541 = vmatprep.subr.mxu0 %v1759_v25 }
  0x63   :  { %1212 = vmatprep.subr.mxu1 %v2126_v3  ;;  %542 = vmatpush1.msra.mxu0 %v1766_v26 }
  0x64   :  { %1213 = vmatpush3.msra.mxu1 %v1798_v30  ;;  %575 = vmatprep.mubr.f32.mxu0 %v2126_v3 }
  0x65   :  { %1214 = vmatprep.subr.mxu1 %v2126_v3  ;;  %1228 = vmatprep.mubr.msk.f32.mxu1 %vm1344_vm0, %v2126_v3 }
  0x66   :  { %1215 = vmatpush3.msra.mxu1 %v1808_v31  ;;  %681 = vmatprep.subr.mxu0 %v1513_v45 }
  0x67   :  { %1216 = vmatprep.subr.mxu1 %v2126_v3 }
  0x68   :  { %1217 = vmatpush3.msra.mxu1 %v1817_v32 }
  0x69   :  { %1218 = vmatprep.subr.mxu1 %v2126_v3 }
  0x6a   :  { %1219 = vmatpush3.msra.mxu1 %v1826_v33 }
  0x6b   :  { %1220 = vmatprep.subr.mxu1 %v2126_v3 }
  0x6c   :  { %1221 = vmatpush3.msra.mxu1 %v1835_v34 }
  0x6d   :  { %1222 = vmatprep.subr.mxu1 %v2126_v3 }
  0x6e   :  { %1223 = vmatpush3.msra.mxu1 %v1844_v35 }
  0x6f   :  { %1224 = vmatprep.subr.mxu1 %v2126_v3 }
  0x70   :  { %1225 = vmatpush3.msra.mxu1 %v1853_v36 }
  0x71   :  { %1226 = vmatprep.subr.mxu1 %v2126_v3 }
  0x72   :  { %1227 = vmatpush3.msra.mxu1 %v1862_v37  ;;  %v89_v37 = vsub.s32 2, %v80_v39 }
  0x73   :  { %1231 = vmatprep.subr.mxu1 %v2126_v3 }
  0x74   :  { %v90_v40 = vrot.slane %v77_v41, %v89_v37 }
  0xe2   :  { %v160_v42 = vpop.f32.mrf.mxu0 }
  0xe4   :  { %v162_v44 = vpop.f32.mrf.mxu0 }
  0xe6   :  { %v166_v51 = vpop.f32.mrf.mxu0 }
  0xe7   :  { %v1928_v57 = vadd.f32 %v166_v51, %v82_v48 }
  0xe8   :  { %v168_v59 = vpop.f32.mrf.mxu0 }
  0xe9   :  { %2148 = vst [vmem:[#allocation11_spill] sm:$0xff] %v1928_v57  ;;  %v1930_v63 = vadd.f32 %v168_v59, %v86_v54  ;;  %v161_v57 = vadd.f32 %v160_v42, %v82_v48 }
  0xea   :  { %v172_v1 = vpop.f32.mrf.mxu0 }
  0xeb   :  { %2149 = vst [vmem:[#allocation12_spill] sm:$0xff] %v1930_v63  ;;  %v1932_v5 = vadd.f32 %v172_v1, %v82_v48 }
  0xec   :  { %v174_v38 = vpop.f32.mrf.mxu0 }
  0xed   :  { %2150 = vst [vmem:[#allocation13_spill] sm:$0xff] %v1932_v5  ;;  %v1934_v3 = vadd.f32 %v174_v38, %v86_v54 }
  0xee   :  { %v178_v45 = vpop.f32.mrf.mxu0 }
  0xef   :  { %2151 = vst [vmem:[#allocation14_spill] sm:$0xff] %v1934_v3  ;;  %v1936_v26 = vadd.f32 %v178_v45, %v82_v48  ;;  %v1157_v43 = vpop.f32.mrf.mxu1 }
  0xf0   :  { %v180_v25 = vpop.f32.mrf.mxu0  ;;  %v1940_v51 = vadd.f32 %v1157_v43, %v90_v40 }
  0xf1   :  { %2152 = vst [vmem:[#allocation15_spill] sm:$0xff] %v1936_v26  ;;  %v1938_v36 = vadd.f32 %v180_v25, %v86_v54  ;;  %v249_v63 = vpop.f32.mrf.mxu1  ;;  %v163_v26 = vadd.f32 %v162_v44, %v86_v54 }
  0xf3   :  { %2153 = vst [vmem:[#allocation16_spill] sm:$0xff] %v1938_v36 }
 0x100   :  { %v1160_v1 = vpop.f32.mrf.mxu1 }
 0x101   :  { %v1942_v22 = vadd.f32 %v1160_v1, %v90_v40 }
 0x102   :  { %v408_v59 = vpop.f32.mrf.mxu0  ;;  %v259_v38 = vpop.f32.mrf.mxu1 }
 0x103   :  { %v483_v23 = vadd.f32 %v408_v59, %v161_v57  ;;  %2154 = vst [vmem:[#allocation17_spill] sm:$0xff] %v1942_v22  ;;  %v1944_v39 = vadd.f32 %v259_v38, %v90_v40  ;;  %v250_v59 = vadd.f32 %v249_v63, %v90_v40  ;;  %v2156_v63 = vmov 0.0   ;;  %v2157_v40 = vld [vmem:[#allocation5_spill] sm:$0xff] }
 0x104   :  { %v410_v45 = vpop.f32.mrf.mxu0 }
 0x105   :  { %v1024_v5 = vmul.f32 -1.442695, %v483_v23  ;;  %2155 = vst [vmem:[#allocation18_spill] sm:$0xff] %v1944_v39  ;;  %v484_v25 = vadd.f32 %v410_v45, %v163_v26  ;;  %v1949_v23 = vld [vmem:[%s2124_s4] ss:$0 sm:$0xff] }
 0x107   :  { %1303 = vpow2.f32 %v1024_v5  ;;  %v1025_v36 = vmul.f32 -1.442695, %v484_v25 }
 0x109   :  { %1305 = vpow2.f32 %v1025_v36 }
 0x113   :  { %v479_v43 = vpop.f32.mrf.mxu1 }
 0x114   :  { %v1304_v37 = vpop.eup %1303  ;;  %v497_v48 = vadd.f32 %v1949_v23, %v479_v43  ;;  %v2160_v43 = vld [vmem:[#allocation7_spill] sm:$0xff] }
 0x115   :  { %v491_v41 = vadd.f32 1.0, %v1304_v37  ;;  %v1195_v42 = vpop.f32.mrf.mxu1  ;;  %v2158_v37 = vld [vmem:[#allocation6_spill] sm:$0xff] }
 0x116   :  { %v1306_v57 = vpop.eup %1305  ;;  %v2161_v42 = vld [vmem:[#allocation8_spill] sm:$0xff] }
 0x117   :  { %1307 = vrcp.f32 %v491_v41  ;;  %v492_v44 = vadd.f32 1.0, %v1306_v57  ;;  %v2159_v41 = vld [vmem:[#allocation9_spill] sm:$0xff]  ;;  %v2163_v57 = vld [vmem:[#allocation4_spill] sm:$0xff] }
 0x124   :  { %v1308_v5 = vpop.eup %1307 }
 0x125   :  { %v498_v1 = vmul.f32 %v1308_v5, %v497_v48  ;;  %v2162_v48 = vld [vmem:[#allocation10_spill] sm:$0xff] }
 0x127   :  { %v499_v26 = vadd.f32 %v498_v1, %v250_v59  ;;  %v2164_v1 = vld [vmem:[#allocation11_spill] sm:$0xff] }
 0x129   :  { %1309 = vtanh.f32 %v499_v26 }
 0x12a   :  { %1311 = vrcp.f32 %v492_v44 }
 0x136   :  { %v1310_v54 = vpop.eup %1309 }
 0x137   :  { %v501_v36 = vsub.f32 0.0, %v1310_v54  ;;  %v1312_v38 = vpop.eup %1311 }
 0x139   :  { %v502_v45 = vmul.f32 %v1312_v38, %v501_v36  ;;  %v2165_v38 = vld [vmem:[#allocation12_spill] sm:$0xff] }
 0x13b   :  { %v1952_v25 = vadd.f32 %v1310_v54, %v502_v45 }
 0x13d   :  { %504 = vst [vmem:[%s2125_s5] sm:$0xff] %v1952_v25  ;;  %576 = vmatmul.mubr.f32.vlgmr.msra.gmra.mxu0 %v1952_v25  ;;  %1229 = vmatmul.mubr.f32.vlgmr.msra.gmra.mxu1 %v1952_v25 }
 0x13e   :  { %682 = vmatpush1.msra.mxu0 %v1518_v46  ;;  %1232 = vmatpush3.msra.mxu1 %v1678_v12 }
 0x13f   :  { %683 = vmatprep.subr.mxu0 %v1523_v47  ;;  %1233 = vmatprep.subr.mxu1 %v2156_v63 }
 0x140   :  { %684 = vmatpush1.msra.mxu0 %v1533_v49  ;;  %1234 = vmatpush3.msra.mxu1 %v1696_v15 }
 0x141   :  { %685 = vmatprep.subr.mxu0 %v1539_v50  ;;  %1235 = vmatprep.subr.mxu1 %v2156_v63 }
 0x142   :  { %686 = vmatpush1.msra.mxu0 %v1549_v52  ;;  %1236 = vmatpush3.msra.mxu1 %v1715_v18 }
 0x143   :  { %687 = vmatprep.subr.mxu0 %v1555_v53  ;;  %1237 = vmatprep.subr.mxu1 %v2156_v63 }
 0x144   :  { %688 = vmatpush1.msra.mxu0 %v1564_v55  ;;  %1238 = vmatpush3.msra.mxu1 %v1734_v21 }
 0x145   :  { %689 = vmatprep.subr.mxu0 %v1570_v56  ;;  %1239 = vmatprep.subr.mxu1 %v2156_v63 }
 0x146   :  { %690 = vmatpush1.msra.mxu0 %v1582_v58  ;;  %1240 = vmatpush3.msra.mxu1 %v1753_v24 }
 0x147   :  { %691 = vmatprep.subr.mxu0 %v1591_v60  ;;  %1241 = vmatprep.subr.mxu1 %v2156_v63 }
 0x148   :  { %692 = vmatpush1.msra.mxu0 %v1597_v61  ;;  %1242 = vmatpush3.msra.mxu1 %v1772_v27 }
 0x149   :  { %693 = vmatprep.subr.mxu0 %v1604_v62  ;;  %1243 = vmatprep.subr.mxu1 %v2156_v63 }
 0x14a   :  { %694 = vmatpush1.msra.mxu0 %v1615_v0  ;;  %1244 = vmatpush3.msra.mxu1 %v1781_v28 }
 0x14b   :  { %695 = vmatprep.subr.mxu0 %v1625_v2  ;;  %1245 = vmatprep.subr.mxu1 %v2156_v63 }
 0x14c   :  { %696 = vmatpush1.msra.mxu0 %v1631_v4  ;;  %1246 = vmatpush3.msra.mxu1 %v1790_v29 }
 0x14d   :  { %697 = vmatprep.subr.mxu0 %v1641_v6  ;;  %1247 = vmatprep.subr.mxu1 %v2156_v63 }
 0x14e   :  { %698 = vmatpush1.msra.mxu0 %v1647_v7  ;;  %1248 = vmatpush3.msra.mxu1 %v1798_v30 }
 0x14f   :  { %699 = vmatprep.subr.mxu0 %v1653_v8  ;;  %1249 = vmatprep.subr.mxu1 %v2156_v63 }
 0x150   :  { %700 = vmatpush1.msra.mxu0 %v1659_v9  ;;  %1250 = vmatpush3.msra.mxu1 %v1808_v31 }
 0x151   :  { %701 = vmatprep.subr.mxu0 %v1665_v10  ;;  %1251 = vmatprep.subr.mxu1 %v2156_v63 }
 0x152   :  { %702 = vmatpush1.msra.mxu0 %v1672_v11  ;;  %1252 = vmatpush3.msra.mxu1 %v1817_v32 }
 0x153   :  { %703 = vmatprep.subr.mxu0 %v1684_v13  ;;  %1253 = vmatprep.subr.mxu1 %v2156_v63 }
 0x154   :  { %704 = vmatpush1.msra.mxu0 %v1690_v14  ;;  %1254 = vmatpush3.msra.mxu1 %v1826_v33 }
 0x155   :  { %705 = vmatprep.subr.mxu0 %v1702_v16  ;;  %1255 = vmatprep.subr.mxu1 %v2156_v63 }
 0x156   :  { %706 = vmatpush1.msra.mxu0 %v1709_v17  ;;  %1256 = vmatpush3.msra.mxu1 %v1835_v34 }
 0x157   :  { %707 = vmatprep.subr.mxu0 %v1721_v19  ;;  %1257 = vmatprep.subr.mxu1 %v2156_v63 }
 0x158   :  { %708 = vmatpush1.msra.mxu0 %v1728_v20  ;;  %1258 = vmatpush3.msra.mxu1 %v1844_v35 }
 0x159   :  { %709 = vmatprep.subr.mxu0 %v2157_v40  ;;  %1259 = vmatprep.subr.mxu1 %v2156_v63 }
 0x15a   :  { %710 = vmatpush1.msra.mxu0 %v2158_v37  ;;  %1260 = vmatpush3.msra.mxu1 %v2159_v41 }
 0x15b   :  { %711 = vmatprep.subr.mxu0 %v2160_v43  ;;  %1261 = vmatprep.subr.mxu1 %v2156_v63 }
 0x15c   :  { %712 = vmatpush1.msra.mxu0 %v2161_v42  ;;  %745 = vmatprep.mubr.f32.mxu0 %v2156_v63 }
 0x15d   :  { %1262 = vmatpush3.msra.mxu1 %v2162_v48  ;;  %1263 = vmatprep.mubr.msk.f32.mxu1 %vm1344_vm0, %v2156_v63 }
 0x15e   :  { %851 = vmatprep.subr.mxu0 %v2163_v57  ;;  %1266 = vmatprep.subr.mxu1 %v2156_v63 }
 0x1fd   :  { %v577_v5 = vpop.f32.mrf.mxu0  ;;  %v648_v59 = vpop.f32.mrf.mxu1 }
 0x1fe   :  { %v652_v44 = vadd.f32 %v577_v5, %v2164_v1  ;;  %v666_v57 = vadd.f32 %v1949_v23, %v648_v59 }
 0x1ff   :  { %v1230_v26 = vpop.f32.mrf.mxu1  ;;  %v579_v36 = vpop.f32.mrf.mxu0 }
 0x200   :  { %v1026_v54 = vmul.f32 -1.442695, %v652_v44  ;;  %v653_v45 = vadd.f32 %v579_v36, %v2165_v38 }
 0x202   :  { %1313 = vpow2.f32 %v1026_v54  ;;  %v1027_v22 = vmul.f32 -1.442695, %v653_v45 }
 0x204   :  { %1315 = vpow2.f32 %v1027_v22 }
 0x20f   :  { %v1314_v39 = vpop.eup %1313 }
 0x210   :  { %v660_v3 = vadd.f32 1.0, %v1314_v39 }
 0x211   :  { %v1316_v48 = vpop.eup %1315 }
 0x212   :  { %1317 = vrcp.f32 %v660_v3  ;;  %v661_v37 = vadd.f32 1.0, %v1316_v48  ;;  %v2166_v3 = vld [vmem:[#allocation6_spill] sm:$0xff] }
 0x21f   :  { %v1318_v42 = vpop.eup %1317 }
 0x220   :  { %v667_v43 = vmul.f32 %v1318_v42, %v666_v57 }
 0x222   :  { %v668_v41 = vadd.f32 %v667_v43, %v1940_v51 }
 0x224   :  { %1319 = vtanh.f32 %v668_v41 }
 0x225   :  { %1321 = vrcp.f32 %v661_v37 }
 0x231   :  { %v1320_v5 = vpop.eup %1319 }
 0x232   :  { %v670_v1 = vsub.f32 %v1952_v25, %v1320_v5  ;;  %v1322_v44 = vpop.eup %1321  ;;  %v2176_v25 = vld [vmem:[#allocation17_spill] sm:$0xff] }
 0x234   :  { %v671_v26 = vmul.f32 %v1322_v44, %v670_v1 }
 0x236   :  { %v2032_v54 = vadd.f32 %v1320_v5, %v671_v26 }
 0x238   :  { %1028 = vst [vmem:[%s2125_s5 + $0x8] sm:$0xff] %v2032_v54  ;;  %746 = vmatmul.mubr.f32.vlgmr.msra.gmra.mxu0 %v2032_v54  ;;  %1264 = vmatmul.mubr.f32.vlgmr.msra.gmra.mxu1 %v2032_v54 }
 0x239   :  { %852 = vmatpush1.msra.mxu0 %v1518_v46  ;;  %1267 = vmatpush3.msra.mxu1 %v1678_v12  ;;  %v2167_v46 = vld [vmem:[#allocation9_spill] sm:$0xff] }
 0x23a   :  { %853 = vmatprep.subr.mxu0 %v1523_v47  ;;  %1268 = vmatprep.subr.mxu1 %v2156_v63  ;;  %v2168_v47 = vld [vmem:[#allocation7_spill] sm:$0xff] }
 0x23b   :  { %854 = vmatpush1.msra.mxu0 %v1533_v49  ;;  %1269 = vmatpush3.msra.mxu1 %v1696_v15  ;;  %v2169_v49 = vld [vmem:[#allocation8_spill] sm:$0xff] }
 0x23c   :  { %855 = vmatprep.subr.mxu0 %v1539_v50  ;;  %1270 = vmatprep.subr.mxu1 %v2156_v63  ;;  %v2170_v50 = vld [vmem:[#allocation10_spill] sm:$0xff] }
 0x23d   :  { %856 = vmatpush1.msra.mxu0 %v1549_v52  ;;  %1271 = vmatpush3.msra.mxu1 %v1715_v18 }
 0x23e   :  { %857 = vmatprep.subr.mxu0 %v1555_v53  ;;  %1272 = vmatprep.subr.mxu1 %v2156_v63 }
 0x23f   :  { %858 = vmatpush1.msra.mxu0 %v1564_v55  ;;  %1273 = vmatpush3.msra.mxu1 %v1734_v21  ;;  %v2171_v55 = vld [vmem:[#allocation13_spill] sm:$0xff]  ;;  %v2174_v21 = vld [vmem:[#allocation15_spill] sm:$0xff] }
 0x240   :  { %859 = vmatprep.subr.mxu0 %v1570_v56  ;;  %1274 = vmatprep.subr.mxu1 %v2156_v63 }
 0x241   :  { %860 = vmatpush1.msra.mxu0 %v1582_v58  ;;  %1275 = vmatpush3.msra.mxu1 %v1753_v24 }
 0x242   :  { %861 = vmatprep.subr.mxu0 %v1591_v60  ;;  %1276 = vmatprep.subr.mxu1 %v2156_v63 }
 0x243   :  { %862 = vmatpush1.msra.mxu0 %v1597_v61  ;;  %1277 = vmatpush3.msra.mxu1 %v1772_v27 }
 0x244   :  { %863 = vmatprep.subr.mxu0 %v1604_v62  ;;  %1278 = vmatprep.subr.mxu1 %v2156_v63  ;;  %v2172_v62 = vld [vmem:[#allocation14_spill] sm:$0xff] }
 0x245   :  { %864 = vmatpush1.msra.mxu0 %v1615_v0  ;;  %1279 = vmatpush3.msra.mxu1 %v1781_v28 }
 0x246   :  { %865 = vmatprep.subr.mxu0 %v1625_v2  ;;  %1280 = vmatprep.subr.mxu1 %v2156_v63 }
 0x247   :  { %866 = vmatpush1.msra.mxu0 %v1631_v4  ;;  %1281 = vmatpush3.msra.mxu1 %v1790_v29  ;;  %v2175_v29 = vld [vmem:[#allocation16_spill] sm:$0xff] }
 0x248   :  { %867 = vmatprep.subr.mxu0 %v1641_v6  ;;  %1282 = vmatprep.subr.mxu1 %v2156_v63 }
 0x249   :  { %868 = vmatpush1.msra.mxu0 %v1647_v7  ;;  %1283 = vmatpush3.msra.mxu1 %v1798_v30 }
 0x24a   :  { %869 = vmatprep.subr.mxu0 %v1653_v8  ;;  %1284 = vmatprep.subr.mxu1 %v2156_v63 }
 0x24b   :  { %870 = vmatpush1.msra.mxu0 %v1659_v9  ;;  %1285 = vmatpush3.msra.mxu1 %v1808_v31 }
 0x24c   :  { %871 = vmatprep.subr.mxu0 %v1665_v10  ;;  %1286 = vmatprep.subr.mxu1 %v2156_v63 }
 0x24d   :  { %872 = vmatpush1.msra.mxu0 %v1672_v11  ;;  %1287 = vmatpush3.msra.mxu1 %v1817_v32  ;;  %v2173_v11 = vld [vmem:[#allocation18_spill] sm:$0xff] }
 0x24e   :  { %873 = vmatprep.subr.mxu0 %v1684_v13  ;;  %1288 = vmatprep.subr.mxu1 %v2156_v63 }
 0x24f   :  { %874 = vmatpush1.msra.mxu0 %v1690_v14  ;;  %1289 = vmatpush3.msra.mxu1 %v1826_v33 }
 0x250   :  { %875 = vmatprep.subr.mxu0 %v1702_v16  ;;  %1290 = vmatprep.subr.mxu1 %v2156_v63 }
 0x251   :  { %876 = vmatpush1.msra.mxu0 %v1709_v17  ;;  %1291 = vmatpush3.msra.mxu1 %v1835_v34 }
 0x252   :  { %877 = vmatprep.subr.mxu0 %v1721_v19  ;;  %1292 = vmatprep.subr.mxu1 %v2156_v63 }
 0x253   :  { %878 = vmatpush1.msra.mxu0 %v1728_v20  ;;  %1293 = vmatpush3.msra.mxu1 %v1844_v35 }
 0x254   :  { %879 = vmatprep.subr.mxu0 %v2157_v40  ;;  %1294 = vmatprep.subr.mxu1 %v2156_v63 }
 0x255   :  { %880 = vmatpush1.msra.mxu0 %v2166_v3  ;;  %1295 = vmatpush3.msra.mxu1 %v2167_v46 }
 0x256   :  { %881 = vmatprep.subr.mxu0 %v2168_v47  ;;  %1296 = vmatprep.subr.mxu1 %v2156_v63 }
 0x257   :  { %882 = vmatpush1.msra.mxu0 %v2169_v49  ;;  %915 = vmatprep.mubr.f32.mxu0 %v2156_v63 }
 0x258   :  { %1297 = vmatpush3.msra.mxu1 %v2170_v50  ;;  %1298 = vmatprep.mubr.msk.f32.mxu1 %vm1344_vm0, %v2156_v63 }
 0x2f8   :  { %v747_v52 = vpop.f32.mrf.mxu0  ;;  %v818_v53 = vpop.f32.mrf.mxu1 }
 0x2f9   :  { %v822_v56 = vadd.f32 %v747_v52, %v2171_v55  ;;  %v836_v8 = vadd.f32 %v1949_v23, %v818_v53 }
 0x2fa   :  { %v1265_v58 = vpop.f32.mrf.mxu1  ;;  %v749_v61 = vpop.f32.mrf.mxu0 }
 0x2fb   :  { %v1029_v60 = vmul.f32 -1.442695, %v822_v56  ;;  %v823_v0 = vadd.f32 %v749_v61, %v2172_v62 }
 0x2fd   :  { %1323 = vpow2.f32 %v1029_v60  ;;  %v1030_v2 = vmul.f32 -1.442695, %v823_v0 }
 0x2ff   :  { %1325 = vpow2.f32 %v1030_v2 }
 0x30a   :  { %v1324_v4 = vpop.eup %1323 }
 0x30b   :  { %v830_v6 = vadd.f32 1.0, %v1324_v4 }
 0x30c   :  { %v1326_v7 = vpop.eup %1325 }
 0x30d   :  { %1327 = vrcp.f32 %v830_v6  ;;  %v831_v13 = vadd.f32 1.0, %v1326_v7 }
 0x31a   :  { %v1328_v9 = vpop.eup %1327 }
 0x31b   :  { %v837_v10 = vmul.f32 %v1328_v9, %v836_v8 }
 0x31d   :  { %v838_v12 = vadd.f32 %v837_v10, %v2173_v11 }
 0x31f   :  { %1329 = vtanh.f32 %v838_v12 }
 0x320   :  { %1331 = vrcp.f32 %v831_v13 }
 0x32c   :  { %v1330_v14 = vpop.eup %1329 }
 0x32d   :  { %v840_v15 = vsub.f32 %v2032_v54, %v1330_v14  ;;  %v1332_v16 = vpop.eup %1331 }
 0x32f   :  { %v841_v17 = vmul.f32 %v1332_v16, %v840_v15 }
 0x331   :  { %v842_v18 = vadd.f32 %v1330_v14, %v841_v17 }
 0x333   :  { %1031 = vst [vmem:[%s2125_s5 + $0x10] sm:$0xff] %v842_v18  ;;  %916 = vmatmul.mubr.f32.vlgmr.msra.gmra.mxu0 %v842_v18  ;;  %1299 = vmatmul.mubr.f32.vlgmr.msra.gmra.mxu1 %v842_v18 }
 0x3f3   :  { %v917_v19 = vpop.f32.mrf.mxu0  ;;  %v988_v20 = vpop.f32.mrf.mxu1 }
 0x3f4   :  { %v992_v22 = vadd.f32 %v917_v19, %v2174_v21  ;;  %v1006_v35 = vadd.f32 %v1949_v23, %v988_v20 }
 0x3f5   :  { %v1300_v24 = vpop.f32.mrf.mxu1  ;;  %v919_v28 = vpop.f32.mrf.mxu0 }
 0x3f6   :  { %v1032_v27 = vmul.f32 -1.442695, %v992_v22  ;;  %v993_v30 = vadd.f32 %v919_v28, %v2175_v29 }
 0x3f8   :  { %1333 = vpow2.f32 %v1032_v27  ;;  %v1033_v31 = vmul.f32 -1.442695, %v993_v30 }
 0x3fa   :  { %1335 = vpow2.f32 %v1033_v31 }
 0x405   :  { %v1334_v32 = vpop.eup %1333 }
 0x406   :  { %v1000_v33 = vadd.f32 1.0, %v1334_v32 }
 0x407   :  { %v1336_v34 = vpop.eup %1335 }
 0x408   :  { %1337 = vrcp.f32 %v1000_v33  ;;  %v1001_v40 = vadd.f32 1.0, %v1336_v34 }
 0x415   :  { %v1338_v51 = vpop.eup %1337 }
 0x416   :  { %v1007_v39 = vmul.f32 %v1338_v51, %v1006_v35 }
 0x418   :  { %v1008_v63 = vadd.f32 %v1007_v39, %v2176_v25 }
 0x41a   :  { %1339 = vtanh.f32 %v1008_v63 }
 0x41b   :  { %1341 = vrcp.f32 %v1001_v40 }
 0x427   :  { %v1340_v37 = vpop.eup %1339 }
 0x428   :  { %v1010_v41 = vsub.f32 %v842_v18, %v1340_v37  ;;  %v1342_v43 = vpop.eup %1341 }
 0x42a   :  { %v1011_v42 = vmul.f32 %v1342_v43, %v1010_v41 }
 0x42c   :  { %v1012_v48 = vadd.f32 %v1340_v37, %v1011_v42 }
 0x42e   :  { %1034 = vst [vmem:[%s2125_s5 + $0x18] sm:$0xff] %v1012_v48 }

// kernel: classifier_forward.3
= control target key start
LH: loop header
LB: loop body
LE: loop exit
PB: predicated region body
PF: predicated region fallthrough
CT: control target
= control target key end

     0   :  { %s4379_s0 = inlined_call_operand.vmem [shape: f32[8,128], index: 0, kind: input, shape index: {}]   ;;  %s4380_s1 = inlined_call_operand.vmem [shape: f32[8,4224], index: 1, kind: input, shape index: {}]   ;;  %s4381_s2 = inlined_call_operand.vmem [shape: f32[128,128], index: 2, kind: input, shape index: {}]   ;;  %s4382_s3 = inlined_call_operand.vmem [shape: f32[4224,128], index: 3, kind: input, shape index: {}]   ;;  %s4383_s4 = inlined_call_operand.vmem [shape: f32[1,128], index: 4, kind: input, shape index: {}]   ;;  %s4384_s5 = inlined_call_operand.hbm [shape: f32[8,128], index: 5, kind: output, shape index: {}]  }
   0x1   :  { %v102_v0 = vld [vmem:[%s4382_s3 + $0xf8] sm:$0xff]  ;;  %v101_v4 = vld [vmem:[%s4382_s3 + $0xf0] sm:$0xff]  ;;  %v100_v8 = vld [vmem:[%s4382_s3 + $0xe8] sm:$0xff] }
   0x2   :  { %v134_v1 = vld [vmem:[%s4382_s3 + $0x1f8] sm:$0xff]  ;;  %1883 = vmatprep.subr.mxu0 %v102_v0  ;;  %v133_v5 = vld [vmem:[%s4382_s3 + $0x1f0] sm:$0xff]  ;;  %v132_v9 = vld [vmem:[%s4382_s3 + $0x1e8] sm:$0xff] }
   0x3   :  { %v86_v2 = vld [vmem:[%s4382_s3 + $0x78] sm:$0xff]  ;;  %1918 = vmatprep.subr.mxu1 %v134_v1  ;;  %v85_v6 = vld [vmem:[%s4382_s3 + $0x70] sm:$0xff]  ;;  %v84_v10 = vld [vmem:[%s4382_s3 + $0x68] sm:$0xff] }
   0x4   :  { %v118_v3 = vld [vmem:[%s4382_s3 + $0x178] sm:$0xff]  ;;  %1884 = vmatpush3.msra.mxu0 %v86_v2  ;;  %v117_v7 = vld [vmem:[%s4382_s3 + $0x170] sm:$0xff]  ;;  %v116_v11 = vld [vmem:[%s4382_s3 + $0x168] sm:$0xff] }
   0x5   :  { %1919 = vmatpush3.msra.mxu1 %v118_v3  ;;  %1885 = vmatprep.subr.mxu0 %v101_v4  ;;  %v99_v12 = vld [vmem:[%s4382_s3 + $0xe0] sm:$0xff]  ;;  %v98_v16 = vld [vmem:[%s4382_s3 + $0xd8] sm:$0xff]  ;;  %v97_v20 = vld [vmem:[%s4382_s3 + $0xd0] sm:$0xff] }
   0x6   :  { %1920 = vmatprep.subr.mxu1 %v133_v5  ;;  %1886 = vmatpush3.msra.mxu0 %v85_v6  ;;  %v131_v13 = vld [vmem:[%s4382_s3 + $0x1e0] sm:$0xff]  ;;  %v130_v17 = vld [vmem:[%s4382_s3 + $0x1d8] sm:$0xff]  ;;  %v129_v21 = vld [vmem:[%s4382_s3 + $0x1d0] sm:$0xff] }
   0x7   :  { %1921 = vmatpush3.msra.mxu1 %v117_v7  ;;  %1887 = vmatprep.subr.mxu0 %v100_v8  ;;  %v83_v14 = vld [vmem:[%s4382_s3 + $0x60] sm:$0xff]  ;;  %v82_v18 = vld [vmem:[%s4382_s3 + $0x58] sm:$0xff]  ;;  %v81_v22 = vld [vmem:[%s4382_s3 + $0x50] sm:$0xff] }
   0x8   :  { %1922 = vmatprep.subr.mxu1 %v132_v9  ;;  %v115_v15 = vld [vmem:[%s4382_s3 + $0x160] sm:$0xff]  ;;  %1888 = vmatpush3.msra.mxu0 %v84_v10  ;;  %v114_v19 = vld [vmem:[%s4382_s3 + $0x158] sm:$0xff]  ;;  %v113_v23 = vld [vmem:[%s4382_s3 + $0x150] sm:$0xff] }
   0x9   :  { %1923 = vmatpush3.msra.mxu1 %v116_v11  ;;  %1889 = vmatprep.subr.mxu0 %v99_v12  ;;  %v96_v24 = vld [vmem:[%s4382_s3 + $0xc8] sm:$0xff]  ;;  %v95_v28 = vld [vmem:[%s4382_s3 + $0xc0] sm:$0xff]  ;;  %v94_v32 = vld [vmem:[%s4382_s3 + $0xb8] sm:$0xff] }
   0xa   :  { %1924 = vmatprep.subr.mxu1 %v131_v13  ;;  %1890 = vmatpush3.msra.mxu0 %v83_v14  ;;  %v128_v25 = vld [vmem:[%s4382_s3 + $0x1c8] sm:$0xff]  ;;  %v127_v29 = vld [vmem:[%s4382_s3 + $0x1c0] sm:$0xff]  ;;  %v126_v33 = vld [vmem:[%s4382_s3 + $0x1b8] sm:$0xff] }
   0xb   :  { %1925 = vmatpush3.msra.mxu1 %v115_v15  ;;  %1891 = vmatprep.subr.mxu0 %v98_v16  ;;  %v80_v26 = vld [vmem:[%s4382_s3 + $0x48] sm:$0xff]  ;;  %v79_v30 = vld [vmem:[%s4382_s3 + $0x40] sm:$0xff]  ;;  %v78_v34 = vld [vmem:[%s4382_s3 + $0x38] sm:$0xff] }
   0xc   :  { %1926 = vmatprep.subr.mxu1 %v130_v17  ;;  %1892 = vmatpush3.msra.mxu0 %v82_v18  ;;  %v112_v27 = vld [vmem:[%s4382_s3 + $0x148] sm:$0xff]  ;;  %v111_v31 = vld [vmem:[%s4382_s3 + $0x140] sm:$0xff]  ;;  %v110_v35 = vld [vmem:[%s4382_s3 + $0x138] sm:$0xff] }
   0xd   :  { %1927 = vmatpush3.msra.mxu1 %v114_v19  ;;  %1893 = vmatprep.subr.mxu0 %v97_v20  ;;  %v93_v36 = vld [vmem:[%s4382_s3 + $0xb0] sm:$0xff]  ;;  %v92_v40 = vld [vmem:[%s4382_s3 + $0xa8] sm:$0xff]  ;;  %v91_v44 = vld [vmem:[%s4382_s3 + $0xa0] sm:$0xff] }
   0xe   :  { %1928 = vmatprep.subr.mxu1 %v129_v21  ;;  %1894 = vmatpush3.msra.mxu0 %v81_v22  ;;  %v125_v37 = vld [vmem:[%s4382_s3 + $0x1b0] sm:$0xff]  ;;  %v124_v41 = vld [vmem:[%s4382_s3 + $0x1a8] sm:$0xff]  ;;  %v123_v45 = vld [vmem:[%s4382_s3 + $0x1a0] sm:$0xff] }
   0xf   :  { %1929 = vmatpush3.msra.mxu1 %v113_v23  ;;  %1895 = vmatprep.subr.mxu0 %v96_v24  ;;  %v77_v38 = vld [vmem:[%s4382_s3 + $0x30] sm:$0xff]  ;;  %v76_v42 = vld [vmem:[%s4382_s3 + $0x28] sm:$0xff]  ;;  %v75_v46 = vld [vmem:[%s4382_s3 + $0x20] sm:$0xff] }
  0x10   :  { %1930 = vmatprep.subr.mxu1 %v128_v25  ;;  %1896 = vmatpush3.msra.mxu0 %v80_v26  ;;  %v109_v39 = vld [vmem:[%s4382_s3 + $0x130] sm:$0xff]  ;;  %v108_v43 = vld [vmem:[%s4382_s3 + $0x128] sm:$0xff]  ;;  %v107_v47 = vld [vmem:[%s4382_s3 + $0x120] sm:$0xff] }
  0x11   :  { %1931 = vmatpush3.msra.mxu1 %v112_v27  ;;  %1897 = vmatprep.subr.mxu0 %v95_v28  ;;  %v90_v48 = vld [vmem:[%s4382_s3 + $0x98] sm:$0xff]  ;;  %v89_v52 = vld [vmem:[%s4382_s3 + $0x90] sm:$0xff]  ;;  %v88_v56 = vld [vmem:[%s4382_s3 + $0x88] sm:$0xff] }
  0x12   :  { %1932 = vmatprep.subr.mxu1 %v127_v29  ;;  %1898 = vmatpush3.msra.mxu0 %v79_v30  ;;  %v122_v49 = vld [vmem:[%s4382_s3 + $0x198] sm:$0xff]  ;;  %v121_v53 = vld [vmem:[%s4382_s3 + $0x190] sm:$0xff]  ;;  %v120_v57 = vld [vmem:[%s4382_s3 + $0x188] sm:$0xff] }
  0x13   :  { %1933 = vmatpush3.msra.mxu1 %v111_v31  ;;  %1899 = vmatprep.subr.mxu0 %v94_v32  ;;  %v74_v50 = vld [vmem:[%s4382_s3 + $0x18] sm:$0xff]  ;;  %v73_v54 = vld [vmem:[%s4382_s3 + $0x10] sm:$0xff]  ;;  %v72_v58 = vld [vmem:[%s4382_s3 + $0x8] sm:$0xff] }
  0x14   :  { %1934 = vmatprep.subr.mxu1 %v126_v33  ;;  %1900 = vmatpush3.msra.mxu0 %v78_v34  ;;  %v106_v51 = vld [vmem:[%s4382_s3 + $0x118] sm:$0xff]  ;;  %v105_v55 = vld [vmem:[%s4382_s3 + $0x110] sm:$0xff]  ;;  %v104_v59 = vld [vmem:[%s4382_s3 + $0x108] sm:$0xff] }
  0x15   :  { %1935 = vmatpush3.msra.mxu1 %v110_v35  ;;  %1901 = vmatprep.subr.mxu0 %v93_v36  ;;  %v87_v60 = vld [vmem:[%s4382_s3 + $0x80] sm:$0xff]  ;;  %v39_v63 = vld [vmem:[%s4380_s1 + $0x8] sm:$0xff]  ;;  %v41_v1 = vld [vmem:[%s4380_s1 + $0x18] sm:$0xff] }
  0x16   :  { %1936 = vmatprep.subr.mxu1 %v125_v37  ;;  %1902 = vmatpush3.msra.mxu0 %v77_v38  ;;  %v119_v61 = vld [vmem:[%s4382_s3 + $0x180] sm:$0xff]  ;;  %v40_v3 = vld [vmem:[%s4380_s1 + $0x10] sm:$0xff]  ;;  %v166_v4 = vld [vmem:[%s4382_s3 + $0x2f8] sm:$0xff] }
  0x17   :  { %1937 = vmatpush3.msra.mxu1 %v109_v39  ;;  %1903 = vmatprep.subr.mxu0 %v92_v40  ;;  %v71_v62 = vld [vmem:[%s4382_s3] sm:$0xff]  ;;  %v198_v5 = vld [vmem:[%s4382_s3 + $0x3f8] sm:$0xff]  ;;  %v165_v8 = vld [vmem:[%s4382_s3 + $0x2f0] sm:$0xff] }
  0x18   :  { %1938 = vmatprep.subr.mxu1 %v124_v41  ;;  %1904 = vmatpush3.msra.mxu0 %v76_v42  ;;  %v103_v0 = vld [vmem:[%s4382_s3 + $0x100] sm:$0xff]  ;;  %v150_v6 = vld [vmem:[%s4382_s3 + $0x278] sm:$0xff]  ;;  %v197_v9 = vld [vmem:[%s4382_s3 + $0x3f0] sm:$0xff] }
  0x19   :  { %1939 = vmatpush3.msra.mxu1 %v108_v43  ;;  %1905 = vmatprep.subr.mxu0 %v91_v44  ;;  %v38_v2 = vld [vmem:[%s4380_s1] sm:$0xff]  ;;  %v182_v7 = vld [vmem:[%s4382_s3 + $0x378] sm:$0xff]  ;;  %v149_v10 = vld [vmem:[%s4382_s3 + $0x270] sm:$0xff] }
  0x1a   :  { %1940 = vmatprep.subr.mxu1 %v123_v45  ;;  %1906 = vmatpush3.msra.mxu0 %v75_v46  ;;  %v181_v11 = vld [vmem:[%s4382_s3 + $0x370] sm:$0xff]  ;;  %v164_v12 = vld [vmem:[%s4382_s3 + $0x2e8] sm:$0xff]  ;;  %v163_v16 = vld [vmem:[%s4382_s3 + $0x2e0] sm:$0xff] }
  0x1b   :  { %1941 = vmatpush3.msra.mxu1 %v107_v47  ;;  %1907 = vmatprep.subr.mxu0 %v90_v48  ;;  %v196_v13 = vld [vmem:[%s4382_s3 + $0x3e8] sm:$0xff]  ;;  %v195_v17 = vld [vmem:[%s4382_s3 + $0x3e0] sm:$0xff]  ;;  %v162_v20 = vld [vmem:[%s4382_s3 + $0x2d8] sm:$0xff] }
  0x1c   :  { %1942 = vmatprep.subr.mxu1 %v122_v49  ;;  %1908 = vmatpush3.msra.mxu0 %v74_v50  ;;  %v148_v14 = vld [vmem:[%s4382_s3 + $0x268] sm:$0xff]  ;;  %v147_v18 = vld [vmem:[%s4382_s3 + $0x260] sm:$0xff]  ;;  %v194_v21 = vld [vmem:[%s4382_s3 + $0x3d8] sm:$0xff] }
  0x1d   :  { %1943 = vmatpush3.msra.mxu1 %v106_v51  ;;  %1909 = vmatprep.subr.mxu0 %v89_v52  ;;  %v180_v15 = vld [vmem:[%s4382_s3 + $0x368] sm:$0xff]  ;;  %v179_v19 = vld [vmem:[%s4382_s3 + $0x360] sm:$0xff]  ;;  %v146_v22 = vld [vmem:[%s4382_s3 + $0x258] sm:$0xff] }
  0x1e   :  { %1944 = vmatprep.subr.mxu1 %v121_v53  ;;  %1910 = vmatpush3.msra.mxu0 %v73_v54  ;;  %v178_v23 = vld [vmem:[%s4382_s3 + $0x358] sm:$0xff]  ;;  %v161_v24 = vld [vmem:[%s4382_s3 + $0x2d0] sm:$0xff]  ;;  %v160_v28 = vld [vmem:[%s4382_s3 + $0x2c8] sm:$0xff] }
  0x1f   :  { %1945 = vmatpush3.msra.mxu1 %v105_v55  ;;  %1911 = vmatprep.subr.mxu0 %v88_v56  ;;  %v193_v25 = vld [vmem:[%s4382_s3 + $0x3d0] sm:$0xff]  ;;  %v192_v29 = vld [vmem:[%s4382_s3 + $0x3c8] sm:$0xff]  ;;  %v159_v32 = vld [vmem:[%s4382_s3 + $0x2c0] sm:$0xff] }
  0x20   :  { %1946 = vmatprep.subr.mxu1 %v120_v57  ;;  %1912 = vmatpush3.msra.mxu0 %v72_v58  ;;  %v145_v26 = vld [vmem:[%s4382_s3 + $0x250] sm:$0xff]  ;;  %v144_v30 = vld [vmem:[%s4382_s3 + $0x248] sm:$0xff]  ;;  %v191_v33 = vld [vmem:[%s4382_s3 + $0x3c0] sm:$0xff] }
  0x21   :  { %1947 = vmatpush3.msra.mxu1 %v104_v59  ;;  %1913 = vmatprep.subr.mxu0 %v87_v60  ;;  %v177_v27 = vld [vmem:[%s4382_s3 + $0x350] sm:$0xff]  ;;  %v176_v31 = vld [vmem:[%s4382_s3 + $0x348] sm:$0xff]  ;;  %v143_v34 = vld [vmem:[%s4382_s3 + $0x240] sm:$0xff] }
  0x22   :  { %1948 = vmatprep.subr.mxu1 %v119_v61  ;;  %1914 = vmatpush3.msra.mxu0 %v71_v62  ;;  %v175_v35 = vld [vmem:[%s4382_s3 + $0x340] sm:$0xff]  ;;  %v158_v36 = vld [vmem:[%s4382_s3 + $0x2b8] sm:$0xff]  ;;  %v157_v40 = vld [vmem:[%s4382_s3 + $0x2b0] sm:$0xff] }
  0x23   :  { %663 = vmatprep.mubr.f32.mxu0 %v39_v63  ;;  %1949 = vmatpush3.msra.mxu1 %v103_v0  ;;  %v190_v37 = vld [vmem:[%s4382_s3 + $0x3b8] sm:$0xff]  ;;  %v189_v41 = vld [vmem:[%s4382_s3 + $0x3b0] sm:$0xff]  ;;  %v156_v44 = vld [vmem:[%s4382_s3 + $0x2a8] sm:$0xff] }
  0x24   :  { %733 = vmatprep.mubr.f32.mxu1 %v41_v1  ;;  %664 = vmatmul.mubr.f32.vlgmr.msra.gmra.mxu0 %v38_v2  ;;  %v142_v38 = vld [vmem:[%s4382_s3 + $0x238] sm:$0xff]  ;;  %v141_v42 = vld [vmem:[%s4382_s3 + $0x230] sm:$0xff]  ;;  %v188_v45 = vld [vmem:[%s4382_s3 + $0x3a8] sm:$0xff] }
  0x25   :  { %734 = vmatmul.mubr.f32.vlgmr.msra.gmra.mxu1 %v40_v3  ;;  %1953 = vmatprep.subr.mxu0 %v166_v4  ;;  %v174_v39 = vld [vmem:[%s4382_s3 + $0x338] sm:$0xff]  ;;  %v173_v43 = vld [vmem:[%s4382_s3 + $0x330] sm:$0xff]  ;;  %v140_v46 = vld [vmem:[%s4382_s3 + $0x228] sm:$0xff] }
  0x26   :  { %1988 = vmatprep.subr.mxu1 %v198_v5  ;;  %1954 = vmatpush3.msra.mxu0 %v150_v6  ;;  %v172_v47 = vld [vmem:[%s4382_s3 + $0x328] sm:$0xff]  ;;  %v155_v48 = vld [vmem:[%s4382_s3 + $0x2a0] sm:$0xff]  ;;  %v154_v52 = vld [vmem:[%s4382_s3 + $0x298] sm:$0xff] }
  0x27   :  { %1989 = vmatpush3.msra.mxu1 %v182_v7  ;;  %1955 = vmatprep.subr.mxu0 %v165_v8  ;;  %v187_v49 = vld [vmem:[%s4382_s3 + $0x3a0] sm:$0xff]  ;;  %v186_v53 = vld [vmem:[%s4382_s3 + $0x398] sm:$0xff]  ;;  %v153_v56 = vld [vmem:[%s4382_s3 + $0x290] sm:$0xff] }
  0x28   :  { %1990 = vmatprep.subr.mxu1 %v197_v9  ;;  %1956 = vmatpush3.msra.mxu0 %v149_v10  ;;  %v139_v50 = vld [vmem:[%s4382_s3 + $0x220] sm:$0xff]  ;;  %v138_v54 = vld [vmem:[%s4382_s3 + $0x218] sm:$0xff]  ;;  %v185_v57 = vld [vmem:[%s4382_s3 + $0x390] sm:$0xff] }
  0x29   :  { %1991 = vmatpush3.msra.mxu1 %v181_v11  ;;  %1957 = vmatprep.subr.mxu0 %v164_v12  ;;  %v171_v51 = vld [vmem:[%s4382_s3 + $0x320] sm:$0xff]  ;;  %v170_v55 = vld [vmem:[%s4382_s3 + $0x318] sm:$0xff]  ;;  %v137_v58 = vld [vmem:[%s4382_s3 + $0x210] sm:$0xff] }
  0x2a   :  { %1992 = vmatprep.subr.mxu1 %v196_v13  ;;  %1958 = vmatpush3.msra.mxu0 %v148_v14  ;;  %v169_v59 = vld [vmem:[%s4382_s3 + $0x310] sm:$0xff]  ;;  %v152_v60 = vld [vmem:[%s4382_s3 + $0x288] sm:$0xff]  ;;  %v151_v0 = vld [vmem:[%s4382_s3 + $0x280] sm:$0xff] }
  0x2b   :  { %1993 = vmatpush3.msra.mxu1 %v180_v15  ;;  %1959 = vmatprep.subr.mxu0 %v163_v16  ;;  %v184_v61 = vld [vmem:[%s4382_s3 + $0x388] sm:$0xff]  ;;  %v183_v1 = vld [vmem:[%s4382_s3 + $0x380] sm:$0xff]  ;;  %v45_v6 = vld [vmem:[%s4380_s1 + $0x38] sm:$0xff] }
  0x2c   :  { %1994 = vmatprep.subr.mxu1 %v195_v17  ;;  %1960 = vmatpush3.msra.mxu0 %v147_v18  ;;  %v136_v62 = vld [vmem:[%s4382_s3 + $0x208] sm:$0xff]  ;;  %v135_v2 = vld [vmem:[%s4382_s3 + $0x200] sm:$0xff]  ;;  %v230_v7 = vld [vmem:[%s4382_s3 + $0x4f8] sm:$0xff] }
  0x2d   :  { %1995 = vmatpush3.msra.mxu1 %v179_v19  ;;  %1961 = vmatprep.subr.mxu0 %v162_v20  ;;  %v168_v63 = vld [vmem:[%s4382_s3 + $0x308] sm:$0xff]  ;;  %v167_v4 = vld [vmem:[%s4382_s3 + $0x300] sm:$0xff]  ;;  %v262_v8 = vld [vmem:[%s4382_s3 + $0x5f8] sm:$0xff] }
  0x2e   :  { %1996 = vmatprep.subr.mxu1 %v194_v21  ;;  %1962 = vmatpush3.msra.mxu0 %v146_v22  ;;  %v43_v3 = vld [vmem:[%s4380_s1 + $0x28] sm:$0xff]  ;;  %v42_v5 = vld [vmem:[%s4380_s1 + $0x20] sm:$0xff]  ;;  %v44_v9 = vld [vmem:[%s4380_s1 + $0x30] sm:$0xff] }
  0x2f   :  { %1997 = vmatpush3.msra.mxu1 %v178_v23  ;;  %1963 = vmatprep.subr.mxu0 %v161_v24  ;;  %v214_v10 = vld [vmem:[%s4382_s3 + $0x478] sm:$0xff]  ;;  %v229_v12 = vld [vmem:[%s4382_s3 + $0x4f0] sm:$0xff]  ;;  %v228_v16 = vld [vmem:[%s4382_s3 + $0x4e8] sm:$0xff] }
  0x30   :  { %1998 = vmatprep.subr.mxu1 %v193_v25  ;;  %1964 = vmatpush3.msra.mxu0 %v145_v26  ;;  %v246_v11 = vld [vmem:[%s4382_s3 + $0x578] sm:$0xff]  ;;  %v261_v13 = vld [vmem:[%s4382_s3 + $0x5f0] sm:$0xff]  ;;  %v260_v17 = vld [vmem:[%s4382_s3 + $0x5e8] sm:$0xff] }
  0x31   :  { %1999 = vmatpush3.msra.mxu1 %v177_v27  ;;  %1965 = vmatprep.subr.mxu0 %v160_v28  ;;  %v213_v14 = vld [vmem:[%s4382_s3 + $0x470] sm:$0xff]  ;;  %v212_v18 = vld [vmem:[%s4382_s3 + $0x468] sm:$0xff]  ;;  %v227_v20 = vld [vmem:[%s4382_s3 + $0x4e0] sm:$0xff] }
  0x32   :  { %2000 = vmatprep.subr.mxu1 %v192_v29  ;;  %1966 = vmatpush3.msra.mxu0 %v144_v30  ;;  %v245_v15 = vld [vmem:[%s4382_s3 + $0x570] sm:$0xff]  ;;  %v244_v19 = vld [vmem:[%s4382_s3 + $0x568] sm:$0xff]  ;;  %v259_v21 = vld [vmem:[%s4382_s3 + $0x5e0] sm:$0xff] }
  0x33   :  { %2001 = vmatpush3.msra.mxu1 %v176_v31  ;;  %1967 = vmatprep.subr.mxu0 %v159_v32  ;;  %v211_v22 = vld [vmem:[%s4382_s3 + $0x460] sm:$0xff]  ;;  %v226_v24 = vld [vmem:[%s4382_s3 + $0x4d8] sm:$0xff]  ;;  %v225_v28 = vld [vmem:[%s4382_s3 + $0x4d0] sm:$0xff] }
  0x34   :  { %2002 = vmatprep.subr.mxu1 %v191_v33  ;;  %1968 = vmatpush3.msra.mxu0 %v143_v34  ;;  %v243_v23 = vld [vmem:[%s4382_s3 + $0x560] sm:$0xff]  ;;  %v258_v25 = vld [vmem:[%s4382_s3 + $0x5d8] sm:$0xff]  ;;  %v257_v29 = vld [vmem:[%s4382_s3 + $0x5d0] sm:$0xff] }
  0x35   :  { %2003 = vmatpush3.msra.mxu1 %v175_v35  ;;  %1969 = vmatprep.subr.mxu0 %v158_v36  ;;  %v210_v26 = vld [vmem:[%s4382_s3 + $0x458] sm:$0xff]  ;;  %v209_v30 = vld [vmem:[%s4382_s3 + $0x450] sm:$0xff]  ;;  %v224_v32 = vld [vmem:[%s4382_s3 + $0x4c8] sm:$0xff] }
  0x36   :  { %2004 = vmatprep.subr.mxu1 %v190_v37  ;;  %1970 = vmatpush3.msra.mxu0 %v142_v38  ;;  %v242_v27 = vld [vmem:[%s4382_s3 + $0x558] sm:$0xff]  ;;  %v241_v31 = vld [vmem:[%s4382_s3 + $0x550] sm:$0xff]  ;;  %v256_v33 = vld [vmem:[%s4382_s3 + $0x5c8] sm:$0xff] }
  0x37   :  { %2005 = vmatpush3.msra.mxu1 %v174_v39  ;;  %1971 = vmatprep.subr.mxu0 %v157_v40  ;;  %v208_v34 = vld [vmem:[%s4382_s3 + $0x448] sm:$0xff]  ;;  %v223_v36 = vld [vmem:[%s4382_s3 + $0x4c0] sm:$0xff]  ;;  %v222_v40 = vld [vmem:[%s4382_s3 + $0x4b8] sm:$0xff] }
  0x38   :  { %2006 = vmatprep.subr.mxu1 %v189_v41  ;;  %1972 = vmatpush3.msra.mxu0 %v141_v42  ;;  %v240_v35 = vld [vmem:[%s4382_s3 + $0x548] sm:$0xff]  ;;  %v255_v37 = vld [vmem:[%s4382_s3 + $0x5c0] sm:$0xff]  ;;  %v254_v41 = vld [vmem:[%s4382_s3 + $0x5b8] sm:$0xff] }
  0x39   :  { %2007 = vmatpush3.msra.mxu1 %v173_v43  ;;  %1973 = vmatprep.subr.mxu0 %v156_v44  ;;  %v207_v38 = vld [vmem:[%s4382_s3 + $0x440] sm:$0xff]  ;;  %v206_v42 = vld [vmem:[%s4382_s3 + $0x438] sm:$0xff]  ;;  %v221_v44 = vld [vmem:[%s4382_s3 + $0x4b0] sm:$0xff] }
  0x3a   :  { %2008 = vmatprep.subr.mxu1 %v188_v45  ;;  %1974 = vmatpush3.msra.mxu0 %v140_v46  ;;  %v239_v39 = vld [vmem:[%s4382_s3 + $0x540] sm:$0xff]  ;;  %v238_v43 = vld [vmem:[%s4382_s3 + $0x538] sm:$0xff]  ;;  %v253_v45 = vld [vmem:[%s4382_s3 + $0x5b0] sm:$0xff] }
  0x3b   :  { %2009 = vmatpush3.msra.mxu1 %v172_v47  ;;  %1975 = vmatprep.subr.mxu0 %v155_v48  ;;  %v205_v46 = vld [vmem:[%s4382_s3 + $0x430] sm:$0xff]  ;;  %v220_v48 = vld [vmem:[%s4382_s3 + $0x4a8] sm:$0xff] }
  0x3c   :  { %2010 = vmatprep.subr.mxu1 %v187_v49  ;;  %1976 = vmatpush3.msra.mxu0 %v139_v50  ;;  %v237_v47 = vld [vmem:[%s4382_s3 + $0x530] sm:$0xff]  ;;  %v252_v49 = vld [vmem:[%s4382_s3 + $0x5a8] sm:$0xff] }
  0x3d   :  { %2011 = vmatpush3.msra.mxu1 %v171_v51  ;;  %1977 = vmatprep.subr.mxu0 %v154_v52  ;;  %v204_v50 = vld [vmem:[%s4382_s3 + $0x428] sm:$0xff]  ;;  %v219_v52 = vld [vmem:[%s4382_s3 + $0x4a0] sm:$0xff] }
  0x3e   :  { %2012 = vmatprep.subr.mxu1 %v186_v53  ;;  %1978 = vmatpush3.msra.mxu0 %v138_v54  ;;  %v236_v51 = vld [vmem:[%s4382_s3 + $0x528] sm:$0xff]  ;;  %v251_v53 = vld [vmem:[%s4382_s3 + $0x5a0] sm:$0xff] }
  0x3f   :  { %2013 = vmatpush3.msra.mxu1 %v170_v55  ;;  %1979 = vmatprep.subr.mxu0 %v153_v56  ;;  %v203_v54 = vld [vmem:[%s4382_s3 + $0x420] sm:$0xff]  ;;  %v218_v56 = vld [vmem:[%s4382_s3 + $0x498] sm:$0xff] }
  0x40   :  { %2014 = vmatprep.subr.mxu1 %v185_v57  ;;  %1980 = vmatpush3.msra.mxu0 %v137_v58  ;;  %v235_v55 = vld [vmem:[%s4382_s3 + $0x520] sm:$0xff]  ;;  %v250_v57 = vld [vmem:[%s4382_s3 + $0x598] sm:$0xff] }
  0x41   :  { %2015 = vmatpush3.msra.mxu1 %v169_v59  ;;  %1981 = vmatprep.subr.mxu0 %v152_v60  ;;  %v202_v58 = vld [vmem:[%s4382_s3 + $0x418] sm:$0xff]  ;;  %v217_v60 = vld [vmem:[%s4382_s3 + $0x490] sm:$0xff] }
  0x42   :  { %2016 = vmatprep.subr.mxu1 %v184_v61  ;;  %1982 = vmatpush3.msra.mxu0 %v136_v62  ;;  %v234_v59 = vld [vmem:[%s4382_s3 + $0x518] sm:$0xff]  ;;  %v249_v61 = vld [vmem:[%s4382_s3 + $0x590] sm:$0xff] }
  0x43   :  { %2017 = vmatpush3.msra.mxu1 %v168_v63  ;;  %1983 = vmatprep.subr.mxu0 %v151_v0  ;;  %v201_v62 = vld [vmem:[%s4382_s3 + $0x410] sm:$0xff]  ;;  %v216_v0 = vld [vmem:[%s4382_s3 + $0x488] sm:$0xff] }
  0x44   :  { %2018 = vmatprep.subr.mxu1 %v183_v1  ;;  %1984 = vmatpush3.msra.mxu0 %v135_v2  ;;  %v233_v63 = vld [vmem:[%s4382_s3 + $0x510] sm:$0xff]  ;;  %v248_v1 = vld [vmem:[%s4382_s3 + $0x588] sm:$0xff] }
  0x45   :  { %803 = vmatprep.mubr.f32.mxu0 %v43_v3  ;;  %2019 = vmatpush3.msra.mxu1 %v167_v4  ;;  %v200_v2 = vld [vmem:[%s4382_s3 + $0x408] sm:$0xff]  ;;  %v215_v4 = vld [vmem:[%s4382_s3 + $0x480] sm:$0xff] }
  0x46   :  { %804 = vmatmul.mubr.f32.vlgmr.msra.gmra.mxu0 %v42_v5  ;;  %873 = vmatprep.mubr.f32.mxu1 %v45_v6  ;;  %v232_v3 = vld [vmem:[%s4382_s3 + $0x508] sm:$0xff]  ;;  %v247_v5 = vld [vmem:[%s4382_s3 + $0x580] sm:$0xff] }
  0x47   :  { %2023 = vmatprep.subr.mxu0 %v230_v7  ;;  %2058 = vmatprep.subr.mxu1 %v262_v8  ;;  %v199_v6 = vld [vmem:[%s4382_s3 + $0x400] sm:$0xff]  ;;  %v47_v7 = vld [vmem:[%s4380_s1 + $0x48] sm:$0xff] }
  0x48   :  { %874 = vmatmul.mubr.f32.vlgmr.msra.gmra.mxu1 %v44_v9  ;;  %2024 = vmatpush3.msra.mxu0 %v214_v10  ;;  %v231_v8 = vld [vmem:[%s4382_s3 + $0x500] sm:$0xff]  ;;  %v49_v10 = vld [vmem:[%s4380_s1 + $0x58] sm:$0xff] }
  0x49   :  { %2059 = vmatpush3.msra.mxu1 %v246_v11  ;;  %2025 = vmatprep.subr.mxu0 %v229_v12  ;;  %v46_v9 = vld [vmem:[%s4380_s1 + $0x40] sm:$0xff]  ;;  %v294_v11 = vld [vmem:[%s4382_s3 + $0x6f8] sm:$0xff] }
  0x4a   :  { %2060 = vmatprep.subr.mxu1 %v261_v13  ;;  %2026 = vmatpush3.msra.mxu0 %v213_v14  ;;  %v326_v12 = vld [vmem:[%s4382_s3 + $0x7f8] sm:$0xff]  ;;  %v48_v13 = vld [vmem:[%s4380_s1 + $0x50] sm:$0xff] }
  0x4b   :  { %2061 = vmatpush3.msra.mxu1 %v245_v15  ;;  %2027 = vmatprep.subr.mxu0 %v228_v16  ;;  %v278_v14 = vld [vmem:[%s4382_s3 + $0x678] sm:$0xff]  ;;  %v293_v16 = vld [vmem:[%s4382_s3 + $0x6f0] sm:$0xff] }
  0x4c   :  { %2062 = vmatprep.subr.mxu1 %v260_v17  ;;  %2028 = vmatpush3.msra.mxu0 %v212_v18  ;;  %v310_v15 = vld [vmem:[%s4382_s3 + $0x778] sm:$0xff]  ;;  %v325_v17 = vld [vmem:[%s4382_s3 + $0x7f0] sm:$0xff] }
  0x4d   :  { %2063 = vmatpush3.msra.mxu1 %v244_v19  ;;  %2029 = vmatprep.subr.mxu0 %v227_v20  ;;  %v277_v18 = vld [vmem:[%s4382_s3 + $0x670] sm:$0xff]  ;;  %v292_v20 = vld [vmem:[%s4382_s3 + $0x6e8] sm:$0xff] }
  0x4e   :  { %2064 = vmatprep.subr.mxu1 %v259_v21  ;;  %2030 = vmatpush3.msra.mxu0 %v211_v22  ;;  %v309_v19 = vld [vmem:[%s4382_s3 + $0x770] sm:$0xff]  ;;  %v324_v21 = vld [vmem:[%s4382_s3 + $0x7e8] sm:$0xff] }
  0x4f   :  { %2065 = vmatpush3.msra.mxu1 %v243_v23  ;;  %2031 = vmatprep.subr.mxu0 %v226_v24  ;;  %v276_v22 = vld [vmem:[%s4382_s3 + $0x668] sm:$0xff]  ;;  %v291_v24 = vld [vmem:[%s4382_s3 + $0x6e0] sm:$0xff] }
  0x50   :  { %2066 = vmatprep.subr.mxu1 %v258_v25  ;;  %2032 = vmatpush3.msra.mxu0 %v210_v26  ;;  %v308_v23 = vld [vmem:[%s4382_s3 + $0x768] sm:$0xff]  ;;  %v323_v25 = vld [vmem:[%s4382_s3 + $0x7e0] sm:$0xff] }
  0x51   :  { %2067 = vmatpush3.msra.mxu1 %v242_v27  ;;  %2033 = vmatprep.subr.mxu0 %v225_v28  ;;  %v275_v26 = vld [vmem:[%s4382_s3 + $0x660] sm:$0xff]  ;;  %v290_v28 = vld [vmem:[%s4382_s3 + $0x6d8] sm:$0xff] }
  0x52   :  { %2068 = vmatprep.subr.mxu1 %v257_v29  ;;  %2034 = vmatpush3.msra.mxu0 %v209_v30  ;;  %v307_v27 = vld [vmem:[%s4382_s3 + $0x760] sm:$0xff]  ;;  %v322_v29 = vld [vmem:[%s4382_s3 + $0x7d8] sm:$0xff] }
  0x53   :  { %2069 = vmatpush3.msra.mxu1 %v241_v31  ;;  %2035 = vmatprep.subr.mxu0 %v224_v32  ;;  %v274_v30 = vld [vmem:[%s4382_s3 + $0x658] sm:$0xff]  ;;  %v289_v32 = vld [vmem:[%s4382_s3 + $0x6d0] sm:$0xff] }
  0x54   :  { %2070 = vmatprep.subr.mxu1 %v256_v33  ;;  %2036 = vmatpush3.msra.mxu0 %v208_v34  ;;  %v306_v31 = vld [vmem:[%s4382_s3 + $0x758] sm:$0xff]  ;;  %v321_v33 = vld [vmem:[%s4382_s3 + $0x7d0] sm:$0xff] }
  0x55   :  { %2071 = vmatpush3.msra.mxu1 %v240_v35  ;;  %2037 = vmatprep.subr.mxu0 %v223_v36  ;;  %v273_v34 = vld [vmem:[%s4382_s3 + $0x650] sm:$0xff]  ;;  %v288_v36 = vld [vmem:[%s4382_s3 + $0x6c8] sm:$0xff] }
  0x56   :  { %2072 = vmatprep.subr.mxu1 %v255_v37  ;;  %2038 = vmatpush3.msra.mxu0 %v207_v38  ;;  %v305_v35 = vld [vmem:[%s4382_s3 + $0x750] sm:$0xff]  ;;  %v320_v37 = vld [vmem:[%s4382_s3 + $0x7c8] sm:$0xff] }
  0x57   :  { %2073 = vmatpush3.msra.mxu1 %v239_v39  ;;  %2039 = vmatprep.subr.mxu0 %v222_v40  ;;  %v272_v38 = vld [vmem:[%s4382_s3 + $0x648] sm:$0xff]  ;;  %v287_v40 = vld [vmem:[%s4382_s3 + $0x6c0] sm:$0xff] }
  0x58   :  { %2074 = vmatprep.subr.mxu1 %v254_v41  ;;  %2040 = vmatpush3.msra.mxu0 %v206_v42  ;;  %v304_v39 = vld [vmem:[%s4382_s3 + $0x748] sm:$0xff]  ;;  %v319_v41 = vld [vmem:[%s4382_s3 + $0x7c0] sm:$0xff] }
  0x59   :  { %2075 = vmatpush3.msra.mxu1 %v238_v43  ;;  %2041 = vmatprep.subr.mxu0 %v221_v44  ;;  %v271_v42 = vld [vmem:[%s4382_s3 + $0x640] sm:$0xff]  ;;  %v286_v44 = vld [vmem:[%s4382_s3 + $0x6b8] sm:$0xff] }
  0x5a   :  { %2076 = vmatprep.subr.mxu1 %v253_v45  ;;  %2042 = vmatpush3.msra.mxu0 %v205_v46  ;;  %v303_v43 = vld [vmem:[%s4382_s3 + $0x740] sm:$0xff]  ;;  %v318_v45 = vld [vmem:[%s4382_s3 + $0x7b8] sm:$0xff] }
  0x5b   :  { %2077 = vmatpush3.msra.mxu1 %v237_v47  ;;  %2043 = vmatprep.subr.mxu0 %v220_v48  ;;  %v270_v46 = vld [vmem:[%s4382_s3 + $0x638] sm:$0xff]  ;;  %v285_v48 = vld [vmem:[%s4382_s3 + $0x6b0] sm:$0xff] }
  0x5c   :  { %2078 = vmatprep.subr.mxu1 %v252_v49  ;;  %2044 = vmatpush3.msra.mxu0 %v204_v50  ;;  %v302_v47 = vld [vmem:[%s4382_s3 + $0x738] sm:$0xff]  ;;  %v317_v49 = vld [vmem:[%s4382_s3 + $0x7b0] sm:$0xff] }
  0x5d   :  { %2079 = vmatpush3.msra.mxu1 %v236_v51  ;;  %2045 = vmatprep.subr.mxu0 %v219_v52  ;;  %v269_v50 = vld [vmem:[%s4382_s3 + $0x630] sm:$0xff]  ;;  %v284_v52 = vld [vmem:[%s4382_s3 + $0x6a8] sm:$0xff] }
  0x5e   :  { %2080 = vmatprep.subr.mxu1 %v251_v53  ;;  %2046 = vmatpush3.msra.mxu0 %v203_v54  ;;  %v301_v51 = vld [vmem:[%s4382_s3 + $0x730] sm:$0xff]  ;;  %v316_v53 = vld [vmem:[%s4382_s3 + $0x7a8] sm:$0xff] }
  0x5f   :  { %2081 = vmatpush3.msra.mxu1 %v235_v55  ;;  %2047 = vmatprep.subr.mxu0 %v218_v56  ;;  %v268_v54 = vld [vmem:[%s4382_s3 + $0x628] sm:$0xff]  ;;  %v283_v56 = vld [vmem:[%s4382_s3 + $0x6a0] sm:$0xff] }
  0x60   :  { %2082 = vmatprep.subr.mxu1 %v250_v57  ;;  %2048 = vmatpush3.msra.mxu0 %v202_v58  ;;  %v300_v55 = vld [vmem:[%s4382_s3 + $0x728] sm:$0xff]  ;;  %v315_v57 = vld [vmem:[%s4382_s3 + $0x7a0] sm:$0xff] }
  0x61   :  { %2083 = vmatpush3.msra.mxu1 %v234_v59  ;;  %2049 = vmatprep.subr.mxu0 %v217_v60  ;;  %v267_v58 = vld [vmem:[%s4382_s3 + $0x620] sm:$0xff]  ;;  %v282_v60 = vld [vmem:[%s4382_s3 + $0x698] sm:$0xff] }
  0x62   :  { %2084 = vmatprep.subr.mxu1 %v249_v61  ;;  %2050 = vmatpush3.msra.mxu0 %v201_v62  ;;  %v299_v59 = vld [vmem:[%s4382_s3 + $0x720] sm:$0xff]  ;;  %v314_v61 = vld [vmem:[%s4382_s3 + $0x798] sm:$0xff] }
  0x63   :  { %2085 = vmatpush3.msra.mxu1 %v233_v63  ;;  %2051 = vmatprep.subr.mxu0 %v216_v0  ;;  %v266_v62 = vld [vmem:[%s4382_s3 + $0x618] sm:$0xff]  ;;  %v281_v0 = vld [vmem:[%s4382_s3 + $0x690] sm:$0xff] }
  0x64   :  { %2086 = vmatprep.subr.mxu1 %v248_v1  ;;  %2052 = vmatpush3.msra.mxu0 %v200_v2  ;;  %v298_v63 = vld [vmem:[%s4382_s3 + $0x718] sm:$0xff]  ;;  %v313_v1 = vld [vmem:[%s4382_s3 + $0x790] sm:$0xff] }
  0x65   :  { %2087 = vmatpush3.msra.mxu1 %v232_v3  ;;  %2053 = vmatprep.subr.mxu0 %v215_v4  ;;  %v265_v2 = vld [vmem:[%s4382_s3 + $0x610] sm:$0xff]  ;;  %v280_v4 = vld [vmem:[%s4382_s3 + $0x688] sm:$0xff] }
  0x66   :  { %2088 = vmatprep.subr.mxu1 %v247_v5  ;;  %2054 = vmatpush3.msra.mxu0 %v199_v6  ;;  %v297_v3 = vld [vmem:[%s4382_s3 + $0x710] sm:$0xff]  ;;  %v312_v5 = vld [vmem:[%s4382_s3 + $0x788] sm:$0xff] }
  0x67   :  { %943 = vmatprep.mubr.f32.mxu0 %v47_v7  ;;  %2089 = vmatpush3.msra.mxu1 %v231_v8  ;;  %v264_v6 = vld [vmem:[%s4382_s3 + $0x608] sm:$0xff]  ;;  %v279_v8 = vld [vmem:[%s4382_s3 + $0x680] sm:$0xff] }
  0x68   :  { %944 = vmatmul.mubr.f32.vlgmr.msra.gmra.mxu0 %v46_v9  ;;  %1013 = vmatprep.mubr.f32.mxu1 %v49_v10  ;;  %v296_v7 = vld [vmem:[%s4382_s3 + $0x708] sm:$0xff]  ;;  %v311_v9 = vld [vmem:[%s4382_s3 + $0x780] sm:$0xff] }
  0x69   :  { %2093 = vmatprep.subr.mxu0 %v294_v11  ;;  %2128 = vmatprep.subr.mxu1 %v326_v12  ;;  %v263_v10 = vld [vmem:[%s4382_s3 + $0x600] sm:$0xff]  ;;  %v51_v11 = vld [vmem:[%s4380_s1 + $0x68] sm:$0xff] }
  0x6a   :  { %1014 = vmatmul.mubr.f32.vlgmr.msra.gmra.mxu1 %v48_v13  ;;  %2094 = vmatpush3.msra.mxu0 %v278_v14  ;;  %v295_v12 = vld [vmem:[%s4382_s3 + $0x700] sm:$0xff]  ;;  %v53_v14 = vld [vmem:[%s4380_s1 + $0x78] sm:$0xff] }
  0x6b   :  { %2129 = vmatpush3.msra.mxu1 %v310_v15  ;;  %2095 = vmatprep.subr.mxu0 %v293_v16  ;;  %v50_v13 = vld [vmem:[%s4380_s1 + $0x60] sm:$0xff]  ;;  %v358_v15 = vld [vmem:[%s4382_s3 + $0x8f8] sm:$0xff] }
  0x6c   :  { %2130 = vmatprep.subr.mxu1 %v325_v17  ;;  %2096 = vmatpush3.msra.mxu0 %v277_v18  ;;  %v390_v16 = vld [vmem:[%s4382_s3 + $0x9f8] sm:$0xff]  ;;  %v52_v17 = vld [vmem:[%s4380_s1 + $0x70] sm:$0xff] }
  0x6d   :  { %2131 = vmatpush3.msra.mxu1 %v309_v19  ;;  %2097 = vmatprep.subr.mxu0 %v292_v20  ;;  %v342_v18 = vld [vmem:[%s4382_s3 + $0x878] sm:$0xff]  ;;  %v357_v20 = vld [vmem:[%s4382_s3 + $0x8f0] sm:$0xff] }
  0x6e   :  { %2132 = vmatprep.subr.mxu1 %v324_v21  ;;  %2098 = vmatpush3.msra.mxu0 %v276_v22  ;;  %v374_v19 = vld [vmem:[%s4382_s3 + $0x978] sm:$0xff]  ;;  %v389_v21 = vld [vmem:[%s4382_s3 + $0x9f0] sm:$0xff] }
  0x6f   :  { %2133 = vmatpush3.msra.mxu1 %v308_v23  ;;  %2099 = vmatprep.subr.mxu0 %v291_v24  ;;  %v341_v22 = vld [vmem:[%s4382_s3 + $0x870] sm:$0xff]  ;;  %v356_v24 = vld [vmem:[%s4382_s3 + $0x8e8] sm:$0xff] }
  0x70   :  { %2134 = vmatprep.subr.mxu1 %v323_v25  ;;  %2100 = vmatpush3.msra.mxu0 %v275_v26  ;;  %v373_v23 = vld [vmem:[%s4382_s3 + $0x970] sm:$0xff]  ;;  %v388_v25 = vld [vmem:[%s4382_s3 + $0x9e8] sm:$0xff] }
  0x71   :  { %2135 = vmatpush3.msra.mxu1 %v307_v27  ;;  %2101 = vmatprep.subr.mxu0 %v290_v28  ;;  %v340_v26 = vld [vmem:[%s4382_s3 + $0x868] sm:$0xff]  ;;  %v355_v28 = vld [vmem:[%s4382_s3 + $0x8e0] sm:$0xff] }
  0x72   :  { %2136 = vmatprep.subr.mxu1 %v322_v29  ;;  %2102 = vmatpush3.msra.mxu0 %v274_v30  ;;  %v372_v27 = vld [vmem:[%s4382_s3 + $0x968] sm:$0xff]  ;;  %v387_v29 = vld [vmem:[%s4382_s3 + $0x9e0] sm:$0xff] }
  0x73   :  { %2137 = vmatpush3.msra.mxu1 %v306_v31  ;;  %2103 = vmatprep.subr.mxu0 %v289_v32  ;;  %v339_v30 = vld [vmem:[%s4382_s3 + $0x860] sm:$0xff]  ;;  %v354_v32 = vld [vmem:[%s4382_s3 + $0x8d8] sm:$0xff] }
  0x74   :  { %2138 = vmatprep.subr.mxu1 %v321_v33  ;;  %2104 = vmatpush3.msra.mxu0 %v273_v34  ;;  %v371_v31 = vld [vmem:[%s4382_s3 + $0x960] sm:$0xff]  ;;  %v386_v33 = vld [vmem:[%s4382_s3 + $0x9d8] sm:$0xff] }
  0x75   :  { %2139 = vmatpush3.msra.mxu1 %v305_v35  ;;  %2105 = vmatprep.subr.mxu0 %v288_v36  ;;  %v338_v34 = vld [vmem:[%s4382_s3 + $0x858] sm:$0xff]  ;;  %v353_v36 = vld [vmem:[%s4382_s3 + $0x8d0] sm:$0xff] }
  0x76   :  { %2140 = vmatprep.subr.mxu1 %v320_v37  ;;  %2106 = vmatpush3.msra.mxu0 %v272_v38  ;;  %v370_v35 = vld [vmem:[%s4382_s3 + $0x958] sm:$0xff]  ;;  %v385_v37 = vld [vmem:[%s4382_s3 + $0x9d0] sm:$0xff] }
  0x77   :  { %2141 = vmatpush3.msra.mxu1 %v304_v39  ;;  %2107 = vmatprep.subr.mxu0 %v287_v40  ;;  %v337_v38 = vld [vmem:[%s4382_s3 + $0x850] sm:$0xff]  ;;  %v352_v40 = vld [vmem:[%s4382_s3 + $0x8c8] sm:$0xff] }
  0x78   :  { %2142 = vmatprep.subr.mxu1 %v319_v41  ;;  %2108 = vmatpush3.msra.mxu0 %v271_v42  ;;  %v369_v39 = vld [vmem:[%s4382_s3 + $0x950] sm:$0xff]  ;;  %v384_v41 = vld [vmem:[%s4382_s3 + $0x9c8] sm:$0xff] }
  0x79   :  { %2143 = vmatpush3.msra.mxu1 %v303_v43  ;;  %2109 = vmatprep.subr.mxu0 %v286_v44  ;;  %v336_v42 = vld [vmem:[%s4382_s3 + $0x848] sm:$0xff]  ;;  %v351_v44 = vld [vmem:[%s4382_s3 + $0x8c0] sm:$0xff] }
  0x7a   :  { %2144 = vmatprep.subr.mxu1 %v318_v45  ;;  %2110 = vmatpush3.msra.mxu0 %v270_v46  ;;  %v368_v43 = vld [vmem:[%s4382_s3 + $0x948] sm:$0xff]  ;;  %v383_v45 = vld [vmem:[%s4382_s3 + $0x9c0] sm:$0xff] }
  0x7b   :  { %2145 = vmatpush3.msra.mxu1 %v302_v47  ;;  %2111 = vmatprep.subr.mxu0 %v285_v48  ;;  %v335_v46 = vld [vmem:[%s4382_s3 + $0x840] sm:$0xff]  ;;  %v350_v48 = vld [vmem:[%s4382_s3 + $0x8b8] sm:$0xff] }
  0x7c   :  { %2146 = vmatprep.subr.mxu1 %v317_v49  ;;  %2112 = vmatpush3.msra.mxu0 %v269_v50  ;;  %v367_v47 = vld [vmem:[%s4382_s3 + $0x940] sm:$0xff]  ;;  %v382_v49 = vld [vmem:[%s4382_s3 + $0x9b8] sm:$0xff] }
  0x7d   :  { %2147 = vmatpush3.msra.mxu1 %v301_v51  ;;  %2113 = vmatprep.subr.mxu0 %v284_v52  ;;  %v334_v50 = vld [vmem:[%s4382_s3 + $0x838] sm:$0xff]  ;;  %v349_v52 = vld [vmem:[%s4382_s3 + $0x8b0] sm:$0xff] }
  0x7e   :  { %2148 = vmatprep.subr.mxu1 %v316_v53  ;;  %2114 = vmatpush3.msra.mxu0 %v268_v54  ;;  %v366_v51 = vld [vmem:[%s4382_s3 + $0x938] sm:$0xff]  ;;  %v381_v53 = vld [vmem:[%s4382_s3 + $0x9b0] sm:$0xff] }
  0x7f   :  { %2149 = vmatpush3.msra.mxu1 %v300_v55  ;;  %2115 = vmatprep.subr.mxu0 %v283_v56  ;;  %v333_v54 = vld [vmem:[%s4382_s3 + $0x830] sm:$0xff]  ;;  %v348_v56 = vld [vmem:[%s4382_s3 + $0x8a8] sm:$0xff] }
  0x80   :  { %2150 = vmatprep.subr.mxu1 %v315_v57  ;;  %2116 = vmatpush3.msra.mxu0 %v267_v58  ;;  %v365_v55 = vld [vmem:[%s4382_s3 + $0x930] sm:$0xff]  ;;  %v380_v57 = vld [vmem:[%s4382_s3 + $0x9a8] sm:$0xff] }
  0x81   :  { %2151 = vmatpush3.msra.mxu1 %v299_v59  ;;  %2117 = vmatprep.subr.mxu0 %v282_v60  ;;  %v332_v58 = vld [vmem:[%s4382_s3 + $0x828] sm:$0xff]  ;;  %v347_v60 = vld [vmem:[%s4382_s3 + $0x8a0] sm:$0xff] }
  0x82   :  { %2152 = vmatprep.subr.mxu1 %v314_v61  ;;  %2118 = vmatpush3.msra.mxu0 %v266_v62  ;;  %v364_v59 = vld [vmem:[%s4382_s3 + $0x928] sm:$0xff]  ;;  %v379_v61 = vld [vmem:[%s4382_s3 + $0x9a0] sm:$0xff] }
  0x83   :  { %2153 = vmatpush3.msra.mxu1 %v298_v63  ;;  %2119 = vmatprep.subr.mxu0 %v281_v0  ;;  %v331_v62 = vld [vmem:[%s4382_s3 + $0x820] sm:$0xff]  ;;  %v346_v0 = vld [vmem:[%s4382_s3 + $0x898] sm:$0xff] }
  0x84   :  { %2154 = vmatprep.subr.mxu1 %v313_v1  ;;  %2120 = vmatpush3.msra.mxu0 %v265_v2  ;;  %v363_v63 = vld [vmem:[%s4382_s3 + $0x920] sm:$0xff]  ;;  %v378_v1 = vld [vmem:[%s4382_s3 + $0x998] sm:$0xff] }
  0x85   :  { %2155 = vmatpush3.msra.mxu1 %v297_v3  ;;  %2121 = vmatprep.subr.mxu0 %v280_v4  ;;  %v330_v2 = vld [vmem:[%s4382_s3 + $0x818] sm:$0xff]  ;;  %v345_v4 = vld [vmem:[%s4382_s3 + $0x890] sm:$0xff] }
  0x86   :  { %2156 = vmatprep.subr.mxu1 %v312_v5  ;;  %2122 = vmatpush3.msra.mxu0 %v264_v6  ;;  %v362_v3 = vld [vmem:[%s4382_s3 + $0x918] sm:$0xff]  ;;  %v377_v5 = vld [vmem:[%s4382_s3 + $0x990] sm:$0xff] }
  0x87   :  { %2157 = vmatpush3.msra.mxu1 %v296_v7  ;;  %2123 = vmatprep.subr.mxu0 %v279_v8  ;;  %v329_v6 = vld [vmem:[%s4382_s3 + $0x810] sm:$0xff]  ;;  %v344_v8 = vld [vmem:[%s4382_s3 + $0x888] sm:$0xff] }
  0x88   :  { %2158 = vmatprep.subr.mxu1 %v311_v9  ;;  %2124 = vmatpush3.msra.mxu0 %v263_v10  ;;  %v361_v7 = vld [vmem:[%s4382_s3 + $0x910] sm:$0xff]  ;;  %v376_v9 = vld [vmem:[%s4382_s3 + $0x988] sm:$0xff] }
  0x89   :  { %1083 = vmatprep.mubr.f32.mxu0 %v51_v11  ;;  %2159 = vmatpush3.msra.mxu1 %v295_v12  ;;  %v328_v10 = vld [vmem:[%s4382_s3 + $0x808] sm:$0xff]  ;;  %v343_v12 = vld [vmem:[%s4382_s3 + $0x880] sm:$0xff] }
  0x8a   :  { %1084 = vmatmul.mubr.f32.vlgmr.msra.gmra.mxu0 %v50_v13  ;;  %1153 = vmatprep.mubr.f32.mxu1 %v53_v14  ;;  %v360_v11 = vld [vmem:[%s4382_s3 + $0x908] sm:$0xff]  ;;  %v375_v13 = vld [vmem:[%s4382_s3 + $0x980] sm:$0xff] }
  0x8b   :  { %2163 = vmatprep.subr.mxu0 %v358_v15  ;;  %2198 = vmatprep.subr.mxu1 %v390_v16  ;;  %v327_v14 = vld [vmem:[%s4382_s3 + $0x800] sm:$0xff]  ;;  %v55_v15 = vld [vmem:[%s4380_s1 + $0x88] sm:$0xff] }
  0x8c   :  { %1154 = vmatmul.mubr.f32.vlgmr.msra.gmra.mxu1 %v52_v17  ;;  %2164 = vmatpush3.msra.mxu0 %v342_v18  ;;  %v359_v16 = vld [vmem:[%s4382_s3 + $0x900] sm:$0xff]  ;;  %v57_v18 = vld [vmem:[%s4380_s1 + $0x98] sm:$0xff] }
  0x8d   :  { %2199 = vmatpush3.msra.mxu1 %v374_v19  ;;  %2165 = vmatprep.subr.mxu0 %v357_v20  ;;  %v54_v17 = vld [vmem:[%s4380_s1 + $0x80] sm:$0xff]  ;;  %v422_v19 = vld [vmem:[%s4382_s3 + $0xaf8] sm:$0xff] }
  0x8e   :  { %2200 = vmatprep.subr.mxu1 %v389_v21  ;;  %2166 = vmatpush3.msra.mxu0 %v341_v22  ;;  %v454_v20 = vld [vmem:[%s4382_s3 + $0xbf8] sm:$0xff]  ;;  %v56_v21 = vld [vmem:[%s4380_s1 + $0x90] sm:$0xff] }
  0x8f   :  { %2201 = vmatpush3.msra.mxu1 %v373_v23  ;;  %2167 = vmatprep.subr.mxu0 %v356_v24  ;;  %v406_v22 = vld [vmem:[%s4382_s3 + $0xa78] sm:$0xff]  ;;  %v421_v24 = vld [vmem:[%s4382_s3 + $0xaf0] sm:$0xff] }
  0x90   :  { %2202 = vmatprep.subr.mxu1 %v388_v25  ;;  %2168 = vmatpush3.msra.mxu0 %v340_v26  ;;  %v438_v23 = vld [vmem:[%s4382_s3 + $0xb78] sm:$0xff]  ;;  %v453_v25 = vld [vmem:[%s4382_s3 + $0xbf0] sm:$0xff] }
  0x91   :  { %2203 = vmatpush3.msra.mxu1 %v372_v27  ;;  %2169 = vmatprep.subr.mxu0 %v355_v28  ;;  %v405_v26 = vld [vmem:[%s4382_s3 + $0xa70] sm:$0xff]  ;;  %v420_v28 = vld [vmem:[%s4382_s3 + $0xae8] sm:$0xff] }
  0x92   :  { %2204 = vmatprep.subr.mxu1 %v387_v29  ;;  %2170 = vmatpush3.msra.mxu0 %v339_v30  ;;  %v437_v27 = vld [vmem:[%s4382_s3 + $0xb70] sm:$0xff]  ;;  %v452_v29 = vld [vmem:[%s4382_s3 + $0xbe8] sm:$0xff] }
  0x93   :  { %2205 = vmatpush3.msra.mxu1 %v371_v31  ;;  %2171 = vmatprep.subr.mxu0 %v354_v32  ;;  %v404_v30 = vld [vmem:[%s4382_s3 + $0xa68] sm:$0xff]  ;;  %v419_v32 = vld [vmem:[%s4382_s3 + $0xae0] sm:$0xff] }
  0x94   :  { %2206 = vmatprep.subr.mxu1 %v386_v33  ;;  %2172 = vmatpush3.msra.mxu0 %v338_v34  ;;  %v436_v31 = vld [vmem:[%s4382_s3 + $0xb68] sm:$0xff]  ;;  %v451_v33 = vld [vmem:[%s4382_s3 + $0xbe0] sm:$0xff] }
  0x95   :  { %2207 = vmatpush3.msra.mxu1 %v370_v35  ;;  %2173 = vmatprep.subr.mxu0 %v353_v36  ;;  %v403_v34 = vld [vmem:[%s4382_s3 + $0xa60] sm:$0xff]  ;;  %v418_v36 = vld [vmem:[%s4382_s3 + $0xad8] sm:$0xff] }
  0x96   :  { %2208 = vmatprep.subr.mxu1 %v385_v37  ;;  %2174 = vmatpush3.msra.mxu0 %v337_v38  ;;  %v435_v35 = vld [vmem:[%s4382_s3 + $0xb60] sm:$0xff]  ;;  %v450_v37 = vld [vmem:[%s4382_s3 + $0xbd8] sm:$0xff] }
  0x97   :  { %2209 = vmatpush3.msra.mxu1 %v369_v39  ;;  %2175 = vmatprep.subr.mxu0 %v352_v40  ;;  %v402_v38 = vld [vmem:[%s4382_s3 + $0xa58] sm:$0xff]  ;;  %v417_v40 = vld [vmem:[%s4382_s3 + $0xad0] sm:$0xff] }
  0x98   :  { %2210 = vmatprep.subr.mxu1 %v384_v41  ;;  %2176 = vmatpush3.msra.mxu0 %v336_v42  ;;  %v434_v39 = vld [vmem:[%s4382_s3 + $0xb58] sm:$0xff]  ;;  %v449_v41 = vld [vmem:[%s4382_s3 + $0xbd0] sm:$0xff] }
  0x99   :  { %2211 = vmatpush3.msra.mxu1 %v368_v43  ;;  %2177 = vmatprep.subr.mxu0 %v351_v44  ;;  %v401_v42 = vld [vmem:[%s4382_s3 + $0xa50] sm:$0xff]  ;;  %v416_v44 = vld [vmem:[%s4382_s3 + $0xac8] sm:$0xff] }
  0x9a   :  { %2212 = vmatprep.subr.mxu1 %v383_v45  ;;  %2178 = vmatpush3.msra.mxu0 %v335_v46  ;;  %v433_v43 = vld [vmem:[%s4382_s3 + $0xb50] sm:$0xff]  ;;  %v448_v45 = vld [vmem:[%s4382_s3 + $0xbc8] sm:$0xff] }
  0x9b   :  { %2213 = vmatpush3.msra.mxu1 %v367_v47  ;;  %2179 = vmatprep.subr.mxu0 %v350_v48  ;;  %v400_v46 = vld [vmem:[%s4382_s3 + $0xa48] sm:$0xff]  ;;  %v415_v48 = vld [vmem:[%s4382_s3 + $0xac0] sm:$0xff] }
  0x9c   :  { %2214 = vmatprep.subr.mxu1 %v382_v49  ;;  %2180 = vmatpush3.msra.mxu0 %v334_v50  ;;  %v432_v47 = vld [vmem:[%s4382_s3 + $0xb48] sm:$0xff]  ;;  %v447_v49 = vld [vmem:[%s4382_s3 + $0xbc0] sm:$0xff] }
  0x9d   :  { %2215 = vmatpush3.msra.mxu1 %v366_v51  ;;  %2181 = vmatprep.subr.mxu0 %v349_v52  ;;  %v399_v50 = vld [vmem:[%s4382_s3 + $0xa40] sm:$0xff]  ;;  %v414_v52 = vld [vmem:[%s4382_s3 + $0xab8] sm:$0xff] }
  0x9e   :  { %2216 = vmatprep.subr.mxu1 %v381_v53  ;;  %2182 = vmatpush3.msra.mxu0 %v333_v54  ;;  %v431_v51 = vld [vmem:[%s4382_s3 + $0xb40] sm:$0xff]  ;;  %v446_v53 = vld [vmem:[%s4382_s3 + $0xbb8] sm:$0xff] }
  0x9f   :  { %2217 = vmatpush3.msra.mxu1 %v365_v55  ;;  %2183 = vmatprep.subr.mxu0 %v348_v56  ;;  %v398_v54 = vld [vmem:[%s4382_s3 + $0xa38] sm:$0xff]  ;;  %v413_v56 = vld [vmem:[%s4382_s3 + $0xab0] sm:$0xff] }
  0xa0   :  { %2218 = vmatprep.subr.mxu1 %v380_v57  ;;  %2184 = vmatpush3.msra.mxu0 %v332_v58  ;;  %v430_v55 = vld [vmem:[%s4382_s3 + $0xb38] sm:$0xff]  ;;  %v445_v57 = vld [vmem:[%s4382_s3 + $0xbb0] sm:$0xff] }
  0xa1   :  { %2219 = vmatpush3.msra.mxu1 %v364_v59  ;;  %2185 = vmatprep.subr.mxu0 %v347_v60  ;;  %v397_v58 = vld [vmem:[%s4382_s3 + $0xa30] sm:$0xff]  ;;  %v412_v60 = vld [vmem:[%s4382_s3 + $0xaa8] sm:$0xff] }
  0xa2   :  { %2220 = vmatprep.subr.mxu1 %v379_v61  ;;  %2186 = vmatpush3.msra.mxu0 %v331_v62  ;;  %v429_v59 = vld [vmem:[%s4382_s3 + $0xb30] sm:$0xff]  ;;  %v444_v61 = vld [vmem:[%s4382_s3 + $0xba8] sm:$0xff] }
  0xa3   :  { %2221 = vmatpush3.msra.mxu1 %v363_v63  ;;  %2187 = vmatprep.subr.mxu0 %v346_v0  ;;  %v396_v62 = vld [vmem:[%s4382_s3 + $0xa28] sm:$0xff]  ;;  %v411_v0 = vld [vmem:[%s4382_s3 + $0xaa0] sm:$0xff] }
  0xa4   :  { %2222 = vmatprep.subr.mxu1 %v378_v1  ;;  %2188 = vmatpush3.msra.mxu0 %v330_v2  ;;  %v428_v63 = vld [vmem:[%s4382_s3 + $0xb28] sm:$0xff]  ;;  %v443_v1 = vld [vmem:[%s4382_s3 + $0xba0] sm:$0xff] }
  0xa5   :  { %2223 = vmatpush3.msra.mxu1 %v362_v3  ;;  %2189 = vmatprep.subr.mxu0 %v345_v4  ;;  %v395_v2 = vld [vmem:[%s4382_s3 + $0xa20] sm:$0xff]  ;;  %v410_v4 = vld [vmem:[%s4382_s3 + $0xa98] sm:$0xff] }
  0xa6   :  { %2224 = vmatprep.subr.mxu1 %v377_v5  ;;  %2190 = vmatpush3.msra.mxu0 %v329_v6  ;;  %v427_v3 = vld [vmem:[%s4382_s3 + $0xb20] sm:$0xff]  ;;  %v442_v5 = vld [vmem:[%s4382_s3 + $0xb98] sm:$0xff] }
  0xa7   :  { %2225 = vmatpush3.msra.mxu1 %v361_v7  ;;  %2191 = vmatprep.subr.mxu0 %v344_v8 }
  0xa8   :  { %2226 = vmatprep.subr.mxu1 %v376_v9  ;;  %2192 = vmatpush3.msra.mxu0 %v328_v10 }
  0xa9   :  { %2227 = vmatpush3.msra.mxu1 %v360_v11  ;;  %2193 = vmatprep.subr.mxu0 %v343_v12 }
  0xaa   :  { %2228 = vmatprep.subr.mxu1 %v375_v13  ;;  %2194 = vmatpush3.msra.mxu0 %v327_v14 }
  0xab   :  { %1223 = vmatprep.mubr.f32.mxu0 %v55_v15  ;;  %2229 = vmatpush3.msra.mxu1 %v359_v16 }
  0xac   :  { %1224 = vmatmul.mubr.f32.vlgmr.msra.gmra.mxu0 %v54_v17  ;;  %1293 = vmatprep.mubr.f32.mxu1 %v57_v18 }
  0xad   :  { %2233 = vmatprep.subr.mxu0 %v422_v19  ;;  %2268 = vmatprep.subr.mxu1 %v454_v20 }
  0xae   :  { %1294 = vmatmul.mubr.f32.vlgmr.msra.gmra.mxu1 %v56_v21  ;;  %2234 = vmatpush3.msra.mxu0 %v406_v22 }
  0xaf   :  { %2269 = vmatpush3.msra.mxu1 %v438_v23  ;;  %2235 = vmatprep.subr.mxu0 %v421_v24 }
  0xb0   :  { %2270 = vmatprep.subr.mxu1 %v453_v25  ;;  %2236 = vmatpush3.msra.mxu0 %v405_v26 }
  0xb1   :  { %2271 = vmatpush3.msra.mxu1 %v437_v27  ;;  %2237 = vmatprep.subr.mxu0 %v420_v28 }
  0xb2   :  { %2272 = vmatprep.subr.mxu1 %v452_v29  ;;  %2238 = vmatpush3.msra.mxu0 %v404_v30 }
  0xb3   :  { %2273 = vmatpush3.msra.mxu1 %v436_v31  ;;  %2239 = vmatprep.subr.mxu0 %v419_v32 }
  0xb4   :  { %2274 = vmatprep.subr.mxu1 %v451_v33  ;;  %2240 = vmatpush3.msra.mxu0 %v403_v34 }
  0xb5   :  { %2275 = vmatpush3.msra.mxu1 %v435_v35  ;;  %2241 = vmatprep.subr.mxu0 %v418_v36 }
  0xb6   :  { %2276 = vmatprep.subr.mxu1 %v450_v37  ;;  %2242 = vmatpush3.msra.mxu0 %v402_v38 }
  0xb7   :  { %2277 = vmatpush3.msra.mxu1 %v434_v39  ;;  %2243 = vmatprep.subr.mxu0 %v417_v40 }
  0xb8   :  { %2278 = vmatprep.subr.mxu1 %v449_v41  ;;  %2244 = vmatpush3.msra.mxu0 %v401_v42 }
  0xb9   :  { %2279 = vmatpush3.msra.mxu1 %v433_v43  ;;  %2245 = vmatprep.subr.mxu0 %v416_v44 }
  0xba   :  { %2280 = vmatprep.subr.mxu1 %v448_v45  ;;  %2246 = vmatpush3.msra.mxu0 %v400_v46 }
  0xbb   :  { %2281 = vmatpush3.msra.mxu1 %v432_v47  ;;  %2247 = vmatprep.subr.mxu0 %v415_v48 }
  0xbc   :  { %2282 = vmatprep.subr.mxu1 %v447_v49  ;;  %2248 = vmatpush3.msra.mxu0 %v399_v50 }
  0xbd   :  { %2283 = vmatpush3.msra.mxu1 %v431_v51  ;;  %2249 = vmatprep.subr.mxu0 %v414_v52 }
  0xbe   :  { %2284 = vmatprep.subr.mxu1 %v446_v53  ;;  %2250 = vmatpush3.msra.mxu0 %v398_v54 }
  0xbf   :  { %2285 = vmatpush3.msra.mxu1 %v430_v55  ;;  %2251 = vmatprep.subr.mxu0 %v413_v56 }
  0xc0   :  { %2286 = vmatprep.subr.mxu1 %v445_v57  ;;  %2252 = vmatpush3.msra.mxu0 %v397_v58 }
  0xc1   :  { %2287 = vmatpush3.msra.mxu1 %v429_v59  ;;  %2253 = vmatprep.subr.mxu0 %v412_v60 }
  0xc2   :  { %2288 = vmatprep.subr.mxu1 %v444_v61  ;;  %2254 = vmatpush3.msra.mxu0 %v396_v62 }
  0xc3   :  { %2289 = vmatpush3.msra.mxu1 %v428_v63 }
  0xc4   :  { %10 = vsyncpa [#allocation3], 0  ;;  %2255 = vmatprep.subr.mxu0 %v411_v0  ;;  %2290 = vmatprep.subr.mxu1 %v443_v1  ;;  %v394_v6 = vld [vmem:[%s4382_s3 + $0xa18] sm:$0xff]  ;;  %v409_v8 = vld [vmem:[%s4382_s3 + $0xa90] sm:$0xff]  ;;  %vm2573_vm0 = vmmov 0  }
  0xc5   :  { %v426_v7 = vld [vmem:[%s4382_s3 + $0xb18] sm:$0xff]  ;;  %2256 = vmatpush3.msra.mxu0 %v395_v2  ;;  %2291 = vmatpush3.msra.mxu1 %v427_v3  ;;  %v441_v9 = vld [vmem:[%s4382_s3 + $0xb90] sm:$0xff]  ;;  %v408_v12 = vld [vmem:[%s4382_s3 + $0xa88] sm:$0xff] }
  0xc6   :  { %2257 = vmatprep.subr.mxu0 %v410_v4  ;;  %2292 = vmatprep.subr.mxu1 %v442_v5  ;;  %v393_v10 = vld [vmem:[%s4382_s3 + $0xa10] sm:$0xff]  ;;  %v440_v13 = vld [vmem:[%s4382_s3 + $0xb88] sm:$0xff]  ;;  %v407_v16 = vld [vmem:[%s4382_s3 + $0xa80] sm:$0xff] }
  0xc7   :  { %v425_v11 = vld [vmem:[%s4382_s3 + $0xb10] sm:$0xff]  ;;  %2258 = vmatpush3.msra.mxu0 %v394_v6  ;;  %2293 = vmatpush3.msra.mxu1 %v426_v7  ;;  %v392_v14 = vld [vmem:[%s4382_s3 + $0xa08] sm:$0xff]  ;;  %v439_v17 = vld [vmem:[%s4382_s3 + $0xb80] sm:$0xff] }
  0xc8   :  { %2259 = vmatprep.subr.mxu0 %v409_v8  ;;  %2294 = vmatprep.subr.mxu1 %v441_v9  ;;  %v424_v15 = vld [vmem:[%s4382_s3 + $0xb08] sm:$0xff]  ;;  %v391_v18 = vld [vmem:[%s4382_s3 + $0xa00] sm:$0xff]  ;;  %v61_v22 = vld [vmem:[%s4380_s1 + $0xb8] sm:$0xff] }
  0xc9   :  { %2260 = vmatpush3.msra.mxu0 %v393_v10  ;;  %2295 = vmatpush3.msra.mxu1 %v425_v11  ;;  %v59_v19 = vld [vmem:[%s4380_s1 + $0xa8] sm:$0xff]  ;;  %v423_v20 = vld [vmem:[%s4382_s3 + $0xb00] sm:$0xff]  ;;  %v486_v23 = vld [vmem:[%s4382_s3 + $0xcf8] sm:$0xff] }
  0xca   :  { %2261 = vmatprep.subr.mxu0 %v408_v12  ;;  %2296 = vmatprep.subr.mxu1 %v440_v13  ;;  %v58_v21 = vld [vmem:[%s4380_s1 + $0xa0] sm:$0xff]  ;;  %v518_v24 = vld [vmem:[%s4382_s3 + $0xdf8] sm:$0xff]  ;;  %v60_v25 = vld [vmem:[%s4380_s1 + $0xb0] sm:$0xff] }
  0xcb   :  { %2262 = vmatpush3.msra.mxu0 %v392_v14  ;;  %2297 = vmatpush3.msra.mxu1 %v424_v15  ;;  %v470_v26 = vld [vmem:[%s4382_s3 + $0xc78] sm:$0xff]  ;;  %v485_v28 = vld [vmem:[%s4382_s3 + $0xcf0] sm:$0xff]  ;;  %v484_v32 = vld [vmem:[%s4382_s3 + $0xce8] sm:$0xff] }
  0xcc   :  { %2263 = vmatprep.subr.mxu0 %v407_v16  ;;  %2298 = vmatprep.subr.mxu1 %v439_v17  ;;  %v502_v27 = vld [vmem:[%s4382_s3 + $0xd78] sm:$0xff]  ;;  %v517_v29 = vld [vmem:[%s4382_s3 + $0xdf0] sm:$0xff]  ;;  %v516_v33 = vld [vmem:[%s4382_s3 + $0xde8] sm:$0xff] }
  0xcd   :  { %2264 = vmatpush3.msra.mxu0 %v391_v18  ;;  %1363 = vmatprep.mubr.f32.mxu0 %v59_v19  ;;  %v469_v30 = vld [vmem:[%s4382_s3 + $0xc70] sm:$0xff]  ;;  %v468_v34 = vld [vmem:[%s4382_s3 + $0xc68] sm:$0xff]  ;;  %v483_v36 = vld [vmem:[%s4382_s3 + $0xce0] sm:$0xff] }
  0xce   :  { %2299 = vmatpush3.msra.mxu1 %v423_v20  ;;  %1364 = vmatmul.mubr.f32.vlgmr.msra.gmra.mxu0 %v58_v21  ;;  %v501_v31 = vld [vmem:[%s4382_s3 + $0xd70] sm:$0xff]  ;;  %v500_v35 = vld [vmem:[%s4382_s3 + $0xd68] sm:$0xff]  ;;  %v515_v37 = vld [vmem:[%s4382_s3 + $0xde0] sm:$0xff] }
  0xcf   :  { %1433 = vmatprep.mubr.f32.mxu1 %v61_v22  ;;  %2303 = vmatprep.subr.mxu0 %v486_v23  ;;  %v467_v38 = vld [vmem:[%s4382_s3 + $0xc60] sm:$0xff]  ;;  %v482_v40 = vld [vmem:[%s4382_s3 + $0xcd8] sm:$0xff]  ;;  %v481_v44 = vld [vmem:[%s4382_s3 + $0xcd0] sm:$0xff] }
  0xd0   :  { %2338 = vmatprep.subr.mxu1 %v518_v24  ;;  %1434 = vmatmul.mubr.f32.vlgmr.msra.gmra.mxu1 %v60_v25  ;;  %v499_v39 = vld [vmem:[%s4382_s3 + $0xd60] sm:$0xff]  ;;  %v514_v41 = vld [vmem:[%s4382_s3 + $0xdd8] sm:$0xff]  ;;  %v513_v45 = vld [vmem:[%s4382_s3 + $0xdd0] sm:$0xff] }
  0xd1   :  { %2304 = vmatpush3.msra.mxu0 %v470_v26  ;;  %2339 = vmatpush3.msra.mxu1 %v502_v27  ;;  %v466_v42 = vld [vmem:[%s4382_s3 + $0xc58] sm:$0xff]  ;;  %v465_v46 = vld [vmem:[%s4382_s3 + $0xc50] sm:$0xff]  ;;  %v480_v48 = vld [vmem:[%s4382_s3 + $0xcc8] sm:$0xff] }
  0xd2   :  { %2305 = vmatprep.subr.mxu0 %v485_v28  ;;  %2340 = vmatprep.subr.mxu1 %v517_v29  ;;  %v498_v43 = vld [vmem:[%s4382_s3 + $0xd58] sm:$0xff]  ;;  %v497_v47 = vld [vmem:[%s4382_s3 + $0xd50] sm:$0xff]  ;;  %v512_v49 = vld [vmem:[%s4382_s3 + $0xdc8] sm:$0xff] }
  0xd3   :  { %2306 = vmatpush3.msra.mxu0 %v469_v30  ;;  %2341 = vmatpush3.msra.mxu1 %v501_v31  ;;  %v464_v50 = vld [vmem:[%s4382_s3 + $0xc48] sm:$0xff]  ;;  %v479_v52 = vld [vmem:[%s4382_s3 + $0xcc0] sm:$0xff]  ;;  %v478_v56 = vld [vmem:[%s4382_s3 + $0xcb8] sm:$0xff] }
  0xd4   :  { %2307 = vmatprep.subr.mxu0 %v484_v32  ;;  %2342 = vmatprep.subr.mxu1 %v516_v33  ;;  %v496_v51 = vld [vmem:[%s4382_s3 + $0xd48] sm:$0xff]  ;;  %v511_v53 = vld [vmem:[%s4382_s3 + $0xdc0] sm:$0xff]  ;;  %v510_v57 = vld [vmem:[%s4382_s3 + $0xdb8] sm:$0xff] }
  0xd5   :  { %2308 = vmatpush3.msra.mxu0 %v468_v34  ;;  %2343 = vmatpush3.msra.mxu1 %v500_v35  ;;  %v463_v54 = vld [vmem:[%s4382_s3 + $0xc40] sm:$0xff]  ;;  %v462_v58 = vld [vmem:[%s4382_s3 + $0xc38] sm:$0xff]  ;;  %v477_v60 = vld [vmem:[%s4382_s3 + $0xcb0] sm:$0xff] }
  0xd6   :  { %2309 = vmatprep.subr.mxu0 %v483_v36  ;;  %2344 = vmatprep.subr.mxu1 %v515_v37  ;;  %v495_v55 = vld [vmem:[%s4382_s3 + $0xd40] sm:$0xff]  ;;  %v494_v59 = vld [vmem:[%s4382_s3 + $0xd38] sm:$0xff]  ;;  %v509_v61 = vld [vmem:[%s4382_s3 + $0xdb0] sm:$0xff] }
  0xd7   :  { %2310 = vmatpush3.msra.mxu0 %v467_v38  ;;  %2345 = vmatpush3.msra.mxu1 %v499_v39  ;;  %v461_v62 = vld [vmem:[%s4382_s3 + $0xc30] sm:$0xff]  ;;  %v476_v0 = vld [vmem:[%s4382_s3 + $0xca8] sm:$0xff]  ;;  %v475_v4 = vld [vmem:[%s4382_s3 + $0xca0] sm:$0xff] }
  0xd8   :  { %2311 = vmatprep.subr.mxu0 %v482_v40  ;;  %2346 = vmatprep.subr.mxu1 %v514_v41  ;;  %v493_v63 = vld [vmem:[%s4382_s3 + $0xd30] sm:$0xff]  ;;  %v508_v1 = vld [vmem:[%s4382_s3 + $0xda8] sm:$0xff]  ;;  %v507_v5 = vld [vmem:[%s4382_s3 + $0xda0] sm:$0xff] }
  0xd9   :  { %2312 = vmatpush3.msra.mxu0 %v466_v42  ;;  %2347 = vmatpush3.msra.mxu1 %v498_v43  ;;  %v460_v2 = vld [vmem:[%s4382_s3 + $0xc28] sm:$0xff]  ;;  %v459_v6 = vld [vmem:[%s4382_s3 + $0xc20] sm:$0xff]  ;;  %v474_v8 = vld [vmem:[%s4382_s3 + $0xc98] sm:$0xff] }
  0xda   :  { %2313 = vmatprep.subr.mxu0 %v481_v44  ;;  %2348 = vmatprep.subr.mxu1 %v513_v45  ;;  %v492_v3 = vld [vmem:[%s4382_s3 + $0xd28] sm:$0xff]  ;;  %v491_v7 = vld [vmem:[%s4382_s3 + $0xd20] sm:$0xff]  ;;  %v506_v9 = vld [vmem:[%s4382_s3 + $0xd98] sm:$0xff] }
  0xdb   :  { %2314 = vmatpush3.msra.mxu0 %v465_v46  ;;  %2349 = vmatpush3.msra.mxu1 %v497_v47  ;;  %v458_v10 = vld [vmem:[%s4382_s3 + $0xc18] sm:$0xff]  ;;  %v473_v12 = vld [vmem:[%s4382_s3 + $0xc90] sm:$0xff]  ;;  %v472_v16 = vld [vmem:[%s4382_s3 + $0xc88] sm:$0xff] }
  0xdc   :  { %2315 = vmatprep.subr.mxu0 %v480_v48  ;;  %2350 = vmatprep.subr.mxu1 %v512_v49  ;;  %v490_v11 = vld [vmem:[%s4382_s3 + $0xd18] sm:$0xff]  ;;  %v505_v13 = vld [vmem:[%s4382_s3 + $0xd90] sm:$0xff]  ;;  %v504_v17 = vld [vmem:[%s4382_s3 + $0xd88] sm:$0xff] }
  0xdd   :  { %2316 = vmatpush3.msra.mxu0 %v464_v50  ;;  %2351 = vmatpush3.msra.mxu1 %v496_v51  ;;  %v457_v14 = vld [vmem:[%s4382_s3 + $0xc10] sm:$0xff]  ;;  %v456_v18 = vld [vmem:[%s4382_s3 + $0xc08] sm:$0xff]  ;;  %v471_v20 = vld [vmem:[%s4382_s3 + $0xc80] sm:$0xff] }
  0xde   :  { %2317 = vmatprep.subr.mxu0 %v479_v52  ;;  %2352 = vmatprep.subr.mxu1 %v511_v53  ;;  %v489_v15 = vld [vmem:[%s4382_s3 + $0xd10] sm:$0xff]  ;;  %v488_v19 = vld [vmem:[%s4382_s3 + $0xd08] sm:$0xff]  ;;  %v503_v21 = vld [vmem:[%s4382_s3 + $0xd80] sm:$0xff] }
  0xdf   :  { %2318 = vmatpush3.msra.mxu0 %v463_v54  ;;  %2353 = vmatpush3.msra.mxu1 %v495_v55  ;;  %v455_v22 = vld [vmem:[%s4382_s3 + $0xc00] sm:$0xff]  ;;  %v63_v23 = vld [vmem:[%s4380_s1 + $0xc8] sm:$0xff]  ;;  %v65_v26 = vld [vmem:[%s4380_s1 + $0xd8] sm:$0xff] }
  0xe0   :  { %2319 = vmatprep.subr.mxu0 %v478_v56  ;;  %2354 = vmatprep.subr.mxu1 %v510_v57  ;;  %v487_v24 = vld [vmem:[%s4382_s3 + $0xd00] sm:$0xff]  ;;  %v550_v27 = vld [vmem:[%s4382_s3 + $0xef8] sm:$0xff]  ;;  %v64_v29 = vld [vmem:[%s4380_s1 + $0xd0] sm:$0xff] }
  0xe1   :  { %2320 = vmatpush3.msra.mxu0 %v462_v58  ;;  %2355 = vmatpush3.msra.mxu1 %v494_v59  ;;  %v62_v25 = vld [vmem:[%s4380_s1 + $0xc0] sm:$0xff]  ;;  %v582_v28 = vld [vmem:[%s4382_s3 + $0xff8] sm:$0xff]  ;;  %v549_v32 = vld [vmem:[%s4382_s3 + $0xef0] sm:$0xff] }
  0xe2   :  { %2321 = vmatprep.subr.mxu0 %v477_v60  ;;  %2356 = vmatprep.subr.mxu1 %v509_v61  ;;  %v534_v30 = vld [vmem:[%s4382_s3 + $0xe78] sm:$0xff]  ;;  %v581_v33 = vld [vmem:[%s4382_s3 + $0xff0] sm:$0xff]  ;;  %v548_v36 = vld [vmem:[%s4382_s3 + $0xee8] sm:$0xff] }
  0xe3   :  { %2322 = vmatpush3.msra.mxu0 %v461_v62  ;;  %2357 = vmatpush3.msra.mxu1 %v493_v63  ;;  %v566_v31 = vld [vmem:[%s4382_s3 + $0xf78] sm:$0xff]  ;;  %v533_v34 = vld [vmem:[%s4382_s3 + $0xe70] sm:$0xff]  ;;  %v580_v37 = vld [vmem:[%s4382_s3 + $0xfe8] sm:$0xff] }
  0xe4   :  { %2323 = vmatprep.subr.mxu0 %v476_v0  ;;  %2358 = vmatprep.subr.mxu1 %v508_v1  ;;  %v565_v35 = vld [vmem:[%s4382_s3 + $0xf70] sm:$0xff]  ;;  %v532_v38 = vld [vmem:[%s4382_s3 + $0xe68] sm:$0xff]  ;;  %v547_v40 = vld [vmem:[%s4382_s3 + $0xee0] sm:$0xff] }
  0xe5   :  { %2324 = vmatpush3.msra.mxu0 %v460_v2  ;;  %2359 = vmatpush3.msra.mxu1 %v492_v3  ;;  %v564_v39 = vld [vmem:[%s4382_s3 + $0xf68] sm:$0xff]  ;;  %v579_v41 = vld [vmem:[%s4382_s3 + $0xfe0] sm:$0xff]  ;;  %v546_v44 = vld [vmem:[%s4382_s3 + $0xed8] sm:$0xff] }
  0xe6   :  { %2325 = vmatprep.subr.mxu0 %v475_v4  ;;  %2360 = vmatprep.subr.mxu1 %v507_v5  ;;  %v531_v42 = vld [vmem:[%s4382_s3 + $0xe60] sm:$0xff]  ;;  %v578_v45 = vld [vmem:[%s4382_s3 + $0xfd8] sm:$0xff]  ;;  %v545_v48 = vld [vmem:[%s4382_s3 + $0xed0] sm:$0xff] }
  0xe7   :  { %2326 = vmatpush3.msra.mxu0 %v459_v6  ;;  %2361 = vmatpush3.msra.mxu1 %v491_v7  ;;  %v563_v43 = vld [vmem:[%s4382_s3 + $0xf60] sm:$0xff]  ;;  %v530_v46 = vld [vmem:[%s4382_s3 + $0xe58] sm:$0xff]  ;;  %v577_v49 = vld [vmem:[%s4382_s3 + $0xfd0] sm:$0xff] }
  0xe8   :  { %2327 = vmatprep.subr.mxu0 %v474_v8  ;;  %2362 = vmatprep.subr.mxu1 %v506_v9  ;;  %v562_v47 = vld [vmem:[%s4382_s3 + $0xf58] sm:$0xff]  ;;  %v529_v50 = vld [vmem:[%s4382_s3 + $0xe50] sm:$0xff]  ;;  %v544_v52 = vld [vmem:[%s4382_s3 + $0xec8] sm:$0xff] }
  0xe9   :  { %2328 = vmatpush3.msra.mxu0 %v458_v10  ;;  %2363 = vmatpush3.msra.mxu1 %v490_v11  ;;  %v561_v51 = vld [vmem:[%s4382_s3 + $0xf50] sm:$0xff]  ;;  %v576_v53 = vld [vmem:[%s4382_s3 + $0xfc8] sm:$0xff]  ;;  %v543_v56 = vld [vmem:[%s4382_s3 + $0xec0] sm:$0xff] }
  0xea   :  { %2329 = vmatprep.subr.mxu0 %v473_v12  ;;  %2364 = vmatprep.subr.mxu1 %v505_v13  ;;  %v528_v54 = vld [vmem:[%s4382_s3 + $0xe48] sm:$0xff]  ;;  %v575_v57 = vld [vmem:[%s4382_s3 + $0xfc0] sm:$0xff]  ;;  %v542_v60 = vld [vmem:[%s4382_s3 + $0xeb8] sm:$0xff] }
  0xeb   :  { %2330 = vmatpush3.msra.mxu0 %v457_v14  ;;  %2365 = vmatpush3.msra.mxu1 %v489_v15  ;;  %v560_v55 = vld [vmem:[%s4382_s3 + $0xf48] sm:$0xff]  ;;  %v527_v58 = vld [vmem:[%s4382_s3 + $0xe40] sm:$0xff]  ;;  %v574_v61 = vld [vmem:[%s4382_s3 + $0xfb8] sm:$0xff] }
  0xec   :  { %2331 = vmatprep.subr.mxu0 %v472_v16  ;;  %2366 = vmatprep.subr.mxu1 %v504_v17  ;;  %v559_v59 = vld [vmem:[%s4382_s3 + $0xf40] sm:$0xff]  ;;  %v526_v62 = vld [vmem:[%s4382_s3 + $0xe38] sm:$0xff]  ;;  %v541_v0 = vld [vmem:[%s4382_s3 + $0xeb0] sm:$0xff] }
  0xed   :  { %2332 = vmatpush3.msra.mxu0 %v456_v18  ;;  %2367 = vmatpush3.msra.mxu1 %v488_v19  ;;  %v558_v63 = vld [vmem:[%s4382_s3 + $0xf38] sm:$0xff]  ;;  %v573_v1 = vld [vmem:[%s4382_s3 + $0xfb0] sm:$0xff]  ;;  %v540_v4 = vld [vmem:[%s4382_s3 + $0xea8] sm:$0xff] }
  0xee   :  { %2333 = vmatprep.subr.mxu0 %v471_v20  ;;  %2368 = vmatprep.subr.mxu1 %v503_v21  ;;  %v525_v2 = vld [vmem:[%s4382_s3 + $0xe30] sm:$0xff]  ;;  %v572_v5 = vld [vmem:[%s4382_s3 + $0xfa8] sm:$0xff]  ;;  %v539_v8 = vld [vmem:[%s4382_s3 + $0xea0] sm:$0xff] }
  0xef   :  { %2334 = vmatpush3.msra.mxu0 %v455_v22  ;;  %1503 = vmatprep.mubr.f32.mxu0 %v63_v23  ;;  %v557_v3 = vld [vmem:[%s4382_s3 + $0xf30] sm:$0xff]  ;;  %v524_v6 = vld [vmem:[%s4382_s3 + $0xe28] sm:$0xff]  ;;  %v571_v9 = vld [vmem:[%s4382_s3 + $0xfa0] sm:$0xff] }
  0xf0   :  { %2369 = vmatpush3.msra.mxu1 %v487_v24  ;;  %1504 = vmatmul.mubr.f32.vlgmr.msra.gmra.mxu0 %v62_v25  ;;  %v556_v7 = vld [vmem:[%s4382_s3 + $0xf28] sm:$0xff]  ;;  %v523_v10 = vld [vmem:[%s4382_s3 + $0xe20] sm:$0xff]  ;;  %v538_v12 = vld [vmem:[%s4382_s3 + $0xe98] sm:$0xff] }
  0xf1   :  { %1573 = vmatprep.mubr.f32.mxu1 %v65_v26  ;;  %2373 = vmatprep.subr.mxu0 %v550_v27  ;;  %v555_v11 = vld [vmem:[%s4382_s3 + $0xf20] sm:$0xff]  ;;  %v570_v13 = vld [vmem:[%s4382_s3 + $0xf98] sm:$0xff]  ;;  %v537_v16 = vld [vmem:[%s4382_s3 + $0xe90] sm:$0xff] }
  0xf2   :  { %2408 = vmatprep.subr.mxu1 %v582_v28  ;;  %1574 = vmatmul.mubr.f32.vlgmr.msra.gmra.mxu1 %v64_v29  ;;  %v522_v14 = vld [vmem:[%s4382_s3 + $0xe18] sm:$0xff]  ;;  %v569_v17 = vld [vmem:[%s4382_s3 + $0xf90] sm:$0xff]  ;;  %v536_v20 = vld [vmem:[%s4382_s3 + $0xe88] sm:$0xff] }
  0xf3   :  { %2374 = vmatpush3.msra.mxu0 %v534_v30  ;;  %2409 = vmatpush3.msra.mxu1 %v566_v31  ;;  %v554_v15 = vld [vmem:[%s4382_s3 + $0xf18] sm:$0xff]  ;;  %v521_v18 = vld [vmem:[%s4382_s3 + $0xe10] sm:$0xff]  ;;  %v568_v21 = vld [vmem:[%s4382_s3 + $0xf88] sm:$0xff] }
  0xf4   :  { %2375 = vmatprep.subr.mxu0 %v549_v32  ;;  %2410 = vmatprep.subr.mxu1 %v581_v33  ;;  %v553_v19 = vld [vmem:[%s4382_s3 + $0xf10] sm:$0xff]  ;;  %v520_v22 = vld [vmem:[%s4382_s3 + $0xe08] sm:$0xff]  ;;  %v535_v24 = vld [vmem:[%s4382_s3 + $0xe80] sm:$0xff] }
  0xf5   :  { %2376 = vmatpush3.msra.mxu0 %v533_v34  ;;  %2411 = vmatpush3.msra.mxu1 %v565_v35  ;;  %v552_v23 = vld [vmem:[%s4382_s3 + $0xf08] sm:$0xff]  ;;  %v567_v25 = vld [vmem:[%s4382_s3 + $0xf80] sm:$0xff]  ;;  %v69_v30 = vld [vmem:[%s4380_s1 + $0xf8] sm:$0xff]  ;;  %v2572_v34 = vmov 0.0  }
  0xf6   :  { %2377 = vmatprep.subr.mxu0 %v548_v36  ;;  %2412 = vmatprep.subr.mxu1 %v580_v37  ;;  %v519_v26 = vld [vmem:[%s4382_s3 + $0xe00] sm:$0xff]  ;;  %v67_v27 = vld [vmem:[%s4380_s1 + $0xe8] sm:$0xff]  ;;  %v68_v31 = vld [vmem:[%s4380_s1 + $0xf0] sm:$0xff] }
  0xf7   :  { %2378 = vmatpush3.msra.mxu0 %v532_v38  ;;  %2413 = vmatpush3.msra.mxu1 %v564_v39  ;;  %v551_v28 = vld [vmem:[%s4382_s3 + $0xf00] sm:$0xff]  ;;  %v598_v32 = vld [vmem:[%s4382_s3 + $0x1078] sm:$0xff]  ;;  %v597_v35 = vld [vmem:[%s4382_s3 + $0x1070] sm:$0xff] }
  0xf8   :  { %2379 = vmatprep.subr.mxu0 %v547_v40  ;;  %2414 = vmatprep.subr.mxu1 %v579_v41  ;;  %v66_v29 = vld [vmem:[%s4380_s1 + $0xe0] sm:$0xff]  ;;  %v37_v33 = vld [vmem:[%s4381_s2 + $0x78] sm:$0xff]  ;;  %v36_v36 = vld [vmem:[%s4381_s2 + $0x70] sm:$0xff] }
  0xf9   :  { %2380 = vmatpush3.msra.mxu0 %v531_v42  ;;  %2415 = vmatpush3.msra.mxu1 %v563_v43  ;;  %v596_v37 = vld [vmem:[%s4382_s3 + $0x1068] sm:$0xff]  ;;  %v595_v39 = vld [vmem:[%s4382_s3 + $0x1060] sm:$0xff]  ;;  %v594_v41 = vld [vmem:[%s4382_s3 + $0x1058] sm:$0xff] }
  0xfa   :  { %2381 = vmatprep.subr.mxu0 %v546_v44  ;;  %2416 = vmatprep.subr.mxu1 %v578_v45  ;;  %v35_v38 = vld [vmem:[%s4381_s2 + $0x68] sm:$0xff]  ;;  %v34_v40 = vld [vmem:[%s4381_s2 + $0x60] sm:$0xff]  ;;  %v33_v42 = vld [vmem:[%s4381_s2 + $0x58] sm:$0xff] }
  0xfb   :  { %2382 = vmatpush3.msra.mxu0 %v530_v46  ;;  %2417 = vmatpush3.msra.mxu1 %v562_v47  ;;  %v593_v43 = vld [vmem:[%s4382_s3 + $0x1050] sm:$0xff]  ;;  %v592_v45 = vld [vmem:[%s4382_s3 + $0x1048] sm:$0xff]  ;;  %v591_v47 = vld [vmem:[%s4382_s3 + $0x1040] sm:$0xff] }
  0xfc   :  { %2383 = vmatprep.subr.mxu0 %v545_v48  ;;  %2418 = vmatprep.subr.mxu1 %v577_v49  ;;  %v32_v44 = vld [vmem:[%s4381_s2 + $0x50] sm:$0xff]  ;;  %v31_v46 = vld [vmem:[%s4381_s2 + $0x48] sm:$0xff]  ;;  %v30_v48 = vld [vmem:[%s4381_s2 + $0x40] sm:$0xff] }
  0xfd   :  { %2384 = vmatpush3.msra.mxu0 %v529_v50  ;;  %2419 = vmatpush3.msra.mxu1 %v561_v51  ;;  %v590_v49 = vld [vmem:[%s4382_s3 + $0x1038] sm:$0xff]  ;;  %v589_v51 = vld [vmem:[%s4382_s3 + $0x1030] sm:$0xff] }
  0xfe   :  { %2385 = vmatprep.subr.mxu0 %v544_v52  ;;  %2420 = vmatprep.subr.mxu1 %v576_v53  ;;  %v29_v50 = vld [vmem:[%s4381_s2 + $0x38] sm:$0xff]  ;;  %v28_v52 = vld [vmem:[%s4381_s2 + $0x30] sm:$0xff]  ;;  %v588_v53 = vld [vmem:[%s4382_s3 + $0x1028] sm:$0xff] }
  0xff   :  { %2386 = vmatpush3.msra.mxu0 %v528_v54  ;;  %2421 = vmatpush3.msra.mxu1 %v560_v55  ;;  %v27_v54 = vld [vmem:[%s4381_s2 + $0x28] sm:$0xff]  ;;  %v587_v55 = vld [vmem:[%s4382_s3 + $0x1020] sm:$0xff] }
 0x100   :  { %2387 = vmatprep.subr.mxu0 %v543_v56  ;;  %2422 = vmatprep.subr.mxu1 %v575_v57  ;;  %v26_v56 = vld [vmem:[%s4381_s2 + $0x20] sm:$0xff]  ;;  %v586_v57 = vld [vmem:[%s4382_s3 + $0x1018] sm:$0xff] }
 0x101   :  { %2388 = vmatpush3.msra.mxu0 %v527_v58  ;;  %2423 = vmatpush3.msra.mxu1 %v559_v59  ;;  %v25_v58 = vld [vmem:[%s4381_s2 + $0x18] sm:$0xff]  ;;  %v585_v59 = vld [vmem:[%s4382_s3 + $0x1010] sm:$0xff] }
 0x102   :  { %2389 = vmatprep.subr.mxu0 %v542_v60  ;;  %2424 = vmatprep.subr.mxu1 %v574_v61  ;;  %v24_v60 = vld [vmem:[%s4381_s2 + $0x10] sm:$0xff]  ;;  %v584_v61 = vld [vmem:[%s4382_s3 + $0x1008] sm:$0xff] }
 0x103   :  { %2390 = vmatpush3.msra.mxu0 %v526_v62  ;;  %2425 = vmatpush3.msra.mxu1 %v558_v63  ;;  %v23_v62 = vld [vmem:[%s4381_s2 + $0x8] sm:$0xff]  ;;  %v583_v63 = vld [vmem:[%s4382_s3 + $0x1000] sm:$0xff] }
 0x104   :  { %2391 = vmatprep.subr.mxu0 %v541_v0  ;;  %2426 = vmatprep.subr.mxu1 %v573_v1  ;;  %v22_v0 = vld [vmem:[%s4381_s2] sm:$0xff]  ;;  %s2574_s2 = smov [#allocation2]  }
 0x105   :  { %2392 = vmatpush3.msra.mxu0 %v525_v2  ;;  %2427 = vmatpush3.msra.mxu1 %v557_v3  ;;  %v70_v1 = vld [vmem:[%s4380_s1 + $0x100] sm:$0xff]  ;;  %v1915_v3 = vpop.f32.mrf.mxu0  ;;  %s1874_s3 = sshll.u32 %s2574_s2, 4  ;;  %s1875_s3 = int_to_ptr.vmem [resolvable:$true] %s1874_s3 }
 0x106   :  { %2393 = vmatprep.subr.mxu0 %v540_v4  ;;  %2428 = vmatprep.subr.mxu1 %v572_v5  ;;  %v21_v2 = vld [vmem:[%s4379_s0] sm:$0xff]  ;;  %v1950_v4 = vpop.f32.mrf.mxu1  ;;  %s2550_s24 = scalar_lea.vmem %s1875_s3, 128  ;;  %p2555_p1 = scmp.lt.s32.totalorder %s1875_s3, %s1875_s3 }
 0x107   :  { %2394 = vmatpush3.msra.mxu0 %v524_v6  ;;  %2429 = vmatpush3.msra.mxu1 %v556_v7  ;;  %v1916_v5 = vpop.f32.mrf.mxu0  ;;  %p2551_p0 = scmp.ne.s32.totalorder %s1875_s3, %s2550_s24  ;;  %p2556_p2 = scmp.lt.s32.totalorder %s2550_s24, %s2550_s24 }
 0x108   :  { %2395 = vmatprep.subr.mxu0 %v539_v8  ;;  %2430 = vmatprep.subr.mxu1 %v571_v9  ;;  %v1951_v7 = vpop.f32.mrf.mxu1 }
 0x109   :  { %2396 = vmatpush3.msra.mxu0 %v523_v10  ;;  %2431 = vmatpush3.msra.mxu1 %v555_v11  ;;  %v1985_v6 = vpop.f32.mrf.mxu0  ;;  %v1917_v10 = vadd.f32 %v1916_v5, %v1915_v3  ;;  %v1952_v11 = vadd.f32 %v1951_v7, %v1950_v4  ;;  %v1882_v7 = vld [vmem:[%s4383_s4] ss:$0 sm:$0xff]  ;;  %p2557_p3 = por %p2556_p2, %p2555_p1 }
 0x10a   :  { %2397 = vmatprep.subr.mxu0 %v538_v12  ;;  %2432 = vmatprep.subr.mxu1 %v570_v13  ;;  %v2020_v8 = vpop.f32.mrf.mxu1 }
 0x10b   :  { %2398 = vmatpush3.msra.mxu0 %v522_v14  ;;  %2433 = vmatpush3.msra.mxu1 %v554_v15  ;;  %v1986_v9 = vpop.f32.mrf.mxu0  ;;  %v736_v15 = vadd.f32 %v1952_v11, %v1917_v10  ;;  %p2558_p4 = pnand %p2557_p3, %p2551_p0 }
 0x10c   :  { %2399 = vmatprep.subr.mxu0 %v537_v16  ;;  %2434 = vmatprep.subr.mxu1 %v569_v17  ;;  %v1987_v13 = vadd.f32 %v1986_v9, %v1985_v6  ;;  %v2021_v14 = vpop.f32.mrf.mxu1 }
 0x10d   :  { %2400 = vmatpush3.msra.mxu0 %v521_v18  ;;  %2435 = vmatpush3.msra.mxu1 %v553_v19  ;;  %v2022_v19 = vadd.f32 %v2021_v14, %v2020_v8 }
 0x10e   :  { %2401 = vmatprep.subr.mxu0 %v536_v20  ;;  %2436 = vmatprep.subr.mxu1 %v568_v21  ;;  %v806_v18 = vadd.f32 %v1987_v13, %v736_v15 }
 0x10f   :  { %2402 = vmatpush3.msra.mxu0 %v520_v22  ;;  %2437 = vmatpush3.msra.mxu1 %v552_v23 }
 0x110   :  { %2403 = vmatprep.subr.mxu0 %v535_v24  ;;  %2438 = vmatprep.subr.mxu1 %v567_v25  ;;  %v876_v23 = vadd.f32 %v2022_v19, %v806_v18 }
 0x111   :  { %2404 = vmatpush3.msra.mxu0 %v519_v26  ;;  %1643 = vmatprep.mubr.f32.mxu0 %v67_v27 }
 0x112   :  { %2439 = vmatpush3.msra.mxu1 %v551_v28  ;;  %1644 = vmatmul.mubr.f32.vlgmr.msra.gmra.mxu0 %v66_v29 }
 0x113   :  { %1713 = vmatprep.mubr.f32.mxu1 %v69_v30  ;;  %2477 = vmatprep.subr.mxu0 %v2572_v34 }
 0x114   :  { %2512 = vmatprep.subr.mxu1 %v2572_v34  ;;  %1714 = vmatmul.mubr.f32.vlgmr.msra.gmra.mxu1 %v68_v31 }
 0x115   :  { %2478 = vmatpush3.msra.mxu0 %v598_v32  ;;  %2513 = vmatpush3.msra.mxu1 %v37_v33 }
 0x116   :  { %2479 = vmatprep.subr.mxu0 %v2572_v34  ;;  %2514 = vmatprep.subr.mxu1 %v2572_v34 }
 0x117   :  { %2480 = vmatpush3.msra.mxu0 %v597_v35  ;;  %2515 = vmatpush3.msra.mxu1 %v36_v36 }
 0x118   :  { %2481 = vmatprep.subr.mxu0 %v2572_v34  ;;  %2516 = vmatprep.subr.mxu1 %v2572_v34 }
 0x119   :  { %2482 = vmatpush3.msra.mxu0 %v596_v37  ;;  %2517 = vmatpush3.msra.mxu1 %v35_v38 }
 0x11a   :  { %2483 = vmatprep.subr.mxu0 %v2572_v34  ;;  %2518 = vmatprep.subr.mxu1 %v2572_v34 }
 0x11b   :  { %2484 = vmatpush3.msra.mxu0 %v595_v39  ;;  %2519 = vmatpush3.msra.mxu1 %v34_v40 }
 0x11c   :  { %2485 = vmatprep.subr.mxu0 %v2572_v34  ;;  %2520 = vmatprep.subr.mxu1 %v2572_v34 }
 0x11d   :  { %2486 = vmatpush3.msra.mxu0 %v594_v41  ;;  %2521 = vmatpush3.msra.mxu1 %v33_v42 }
 0x11e   :  { %2487 = vmatprep.subr.mxu0 %v2572_v34  ;;  %2522 = vmatprep.subr.mxu1 %v2572_v34 }
 0x11f   :  { %2488 = vmatpush3.msra.mxu0 %v593_v43  ;;  %2523 = vmatpush3.msra.mxu1 %v32_v44 }
 0x120   :  { %2489 = vmatprep.subr.mxu0 %v2572_v34  ;;  %2524 = vmatprep.subr.mxu1 %v2572_v34 }
 0x121   :  { %2490 = vmatpush3.msra.mxu0 %v592_v45  ;;  %2525 = vmatpush3.msra.mxu1 %v31_v46 }
 0x122   :  { %2491 = vmatprep.subr.mxu0 %v2572_v34  ;;  %2526 = vmatprep.subr.mxu1 %v2572_v34 }
 0x123   :  { %2492 = vmatpush3.msra.mxu0 %v591_v47  ;;  %2527 = vmatpush3.msra.mxu1 %v30_v48 }
 0x124   :  { %2493 = vmatprep.subr.mxu0 %v2572_v34  ;;  %2528 = vmatprep.subr.mxu1 %v2572_v34 }
 0x125   :  { %2494 = vmatpush3.msra.mxu0 %v590_v49  ;;  %2529 = vmatpush3.msra.mxu1 %v29_v50 }
 0x126   :  { %2495 = vmatprep.subr.mxu0 %v2572_v34  ;;  %2530 = vmatprep.subr.mxu1 %v2572_v34 }
 0x127   :  { %2496 = vmatpush3.msra.mxu0 %v589_v51  ;;  %2531 = vmatpush3.msra.mxu1 %v28_v52 }
 0x128   :  { %2497 = vmatprep.subr.mxu0 %v2572_v34  ;;  %2532 = vmatprep.subr.mxu1 %v2572_v34  ;;  %v2055_v12 = vpop.f32.mrf.mxu0 }
 0x129   :  { %2498 = vmatpush3.msra.mxu0 %v588_v53  ;;  %2533 = vmatpush3.msra.mxu1 %v27_v54 }
 0x12a   :  { %2499 = vmatprep.subr.mxu0 %v2572_v34  ;;  %2534 = vmatprep.subr.mxu1 %v2572_v34  ;;  %v2090_v16 = vpop.f32.mrf.mxu1  ;;  %v2056_v17 = vpop.f32.mrf.mxu0 }
 0x12b   :  { %2500 = vmatpush3.msra.mxu0 %v587_v55  ;;  %2535 = vmatpush3.msra.mxu1 %v26_v56  ;;  %v2057_v21 = vadd.f32 %v2056_v17, %v2055_v12 }
 0x12c   :  { %2501 = vmatprep.subr.mxu0 %v2572_v34  ;;  %2536 = vmatprep.subr.mxu1 %v2572_v34  ;;  %v2091_v22 = vpop.f32.mrf.mxu1 }
 0x12d   :  { %2502 = vmatpush3.msra.mxu0 %v586_v57  ;;  %2537 = vmatpush3.msra.mxu1 %v25_v58  ;;  %v946_v26 = vadd.f32 %v2057_v21, %v876_v23  ;;  %v2092_v27 = vadd.f32 %v2091_v22, %v2090_v16 }
 0x12e   :  { %2503 = vmatprep.subr.mxu0 %v2572_v34  ;;  %2538 = vmatprep.subr.mxu1 %v2572_v34 }
 0x12f   :  { %2504 = vmatpush3.msra.mxu0 %v585_v59  ;;  %2539 = vmatpush3.msra.mxu1 %v24_v60  ;;  %v1016_v31 = vadd.f32 %v2092_v27, %v946_v26 }
 0x130   :  { %2505 = vmatprep.subr.mxu0 %v2572_v34  ;;  %2540 = vmatprep.subr.mxu1 %v2572_v34 }
 0x131   :  { %2506 = vmatpush3.msra.mxu0 %v584_v61  ;;  %2541 = vmatpush3.msra.mxu1 %v23_v62 }
 0x132   :  { %2507 = vmatprep.subr.mxu0 %v2572_v34  ;;  %2542 = vmatprep.subr.mxu1 %v2572_v34 }
 0x133   :  { %2508 = vmatpush3.msra.mxu0 %v583_v63  ;;  %2509 = vmatprep.mubr.msk.f32.mxu0 %vm2573_vm0, %v2572_v34 }
 0x134   :  { %2543 = vmatpush3.msra.mxu1 %v22_v0  ;;  %2544 = vmatprep.mubr.msk.f32.mxu1 %vm2573_vm0, %v2572_v34 }
 0x135   :  { %2510 = vmatmul.mubr.f32.vlgmr.msra.gmra.mxu0 %v70_v1  ;;  %2545 = vmatmul.mubr.f32.vlgmr.msra.gmra.mxu1 %v21_v2 }
 0x14a   :  { %v2125_v20 = vpop.f32.mrf.mxu0 }
 0x14c   :  { %v2160_v24 = vpop.f32.mrf.mxu1  ;;  %v2126_v25 = vpop.f32.mrf.mxu0 }
 0x14d   :  { %v2127_v29 = vadd.f32 %v2126_v25, %v2125_v20 }
 0x14e   :  { %v2161_v30 = vpop.f32.mrf.mxu1 }
 0x14f   :  { %v1086_v34 = vadd.f32 %v2127_v29, %v1016_v31  ;;  %v2162_v35 = vadd.f32 %v2161_v30, %v2160_v24 }
 0x151   :  { %v1156_v39 = vadd.f32 %v2162_v35, %v1086_v34 }
 0x16c   :  { %v2195_v28 = vpop.f32.mrf.mxu0 }
 0x16e   :  { %v2230_v32 = vpop.f32.mrf.mxu1  ;;  %v2196_v33 = vpop.f32.mrf.mxu0 }
 0x16f   :  { %v2197_v37 = vadd.f32 %v2196_v33, %v2195_v28 }
 0x170   :  { %v2231_v38 = vpop.f32.mrf.mxu1 }
 0x171   :  { %v1226_v42 = vadd.f32 %v2197_v37, %v1156_v39  ;;  %v2232_v43 = vadd.f32 %v2231_v38, %v2230_v32 }
 0x173   :  { %v1296_v47 = vadd.f32 %v2232_v43, %v1226_v42 }
 0x18e   :  { %v2265_v36 = vpop.f32.mrf.mxu0 }
 0x190   :  { %v2300_v40 = vpop.f32.mrf.mxu1  ;;  %v2266_v41 = vpop.f32.mrf.mxu0 }
 0x191   :  { %v2267_v45 = vadd.f32 %v2266_v41, %v2265_v36 }
 0x192   :  { %v2301_v46 = vpop.f32.mrf.mxu1 }
 0x193   :  { %v1366_v50 = vadd.f32 %v2267_v45, %v1296_v47  ;;  %v2302_v51 = vadd.f32 %v2301_v46, %v2300_v40 }
 0x195   :  { %v1436_v55 = vadd.f32 %v2302_v51, %v1366_v50 }
 0x1b0   :  { %v2335_v44 = vpop.f32.mrf.mxu0 }
 0x1b2   :  { %v2370_v48 = vpop.f32.mrf.mxu1  ;;  %v2336_v49 = vpop.f32.mrf.mxu0 }
 0x1b3   :  { %v2337_v53 = vadd.f32 %v2336_v49, %v2335_v44 }
 0x1b4   :  { %v2371_v54 = vpop.f32.mrf.mxu1 }
 0x1b5   :  { %v1506_v58 = vadd.f32 %v2337_v53, %v1436_v55  ;;  %v2372_v59 = vadd.f32 %v2371_v54, %v2370_v48 }
 0x1b7   :  { %v1576_v62 = vadd.f32 %v2372_v59, %v1506_v58 }
 0x1d2   :  { %v2405_v52 = vpop.f32.mrf.mxu0 }
 0x1d4   :  { %v2440_v56 = vpop.f32.mrf.mxu1  ;;  %v2406_v57 = vpop.f32.mrf.mxu0 }
 0x1d5   :  { %v2407_v60 = vadd.f32 %v2406_v57, %v2405_v52 }
 0x1d6   :  { %v2441_v61 = vpop.f32.mrf.mxu1 }
 0x1d7   :  { %v1646_v63 = vadd.f32 %v2407_v60, %v1576_v62  ;;  %v2442_v0 = vadd.f32 %v2441_v61, %v2440_v56 }
 0x1d9   :  { %v1716_v1 = vadd.f32 %v2442_v0, %v1646_v63 }
 0x1f5   :  { %v1785_v2 = vpop.f32.mrf.mxu0  ;;  %v1855_v3 = vpop.f32.mrf.mxu1 }
 0x1f6   :  { %v1786_v4 = vadd.f32 %v1785_v2, %v1716_v1 }
 0x1f7   :  { %v2511_v5 = vpop.f32.mrf.mxu0  ;;  %v2546_v6 = vpop.f32.mrf.mxu1 }
 0x1f8   :  { %v1856_v8 = vadd.f32 %v1855_v3, %v1786_v4 }
 0x1fa   :  { %v1866_v9 = vadd.f32 %v1882_v7, %v1856_v8 }
 0x1fc   :  { %1867 = vst [vmem:[#allocation2] sm:$0xff] %v1866_v9 }
 0x1fd   :  { %2561 = shalt.err (!%p2558_p4)
}
 0x1fe   :  { %1877 = dma.vmem_to_hbm [thread:$0]  %s1875_s3, 128, %s4384_s5, [#allocation3]  }
 0x1ff   :  { %2570 = dma.done.wait [#allocation3], 128  }
 0x200   :  { %2571 = vsyncadd [#allocation3], 4294967168 }
 0x201   :  { %1881 = vsyncpa [#allocation3], 1 }

</bundles_post_ra>
